<compile_context>
chip_gen: v5e
topology: v5e:2x2
jax: 0.10.0
libtpu: 0.0.40
codegen_flags: <defaults>
</compile_context>

<pallas_src>
import functools

import jax
import jax.numpy as jnp
from jax.experimental import pallas as pl
from jax.experimental.pallas import tpu as pltpu

EPS = 1e-5
LANE = 128                    # TPU lane width; kernel tensors lane-padded to this
_MXU_DTYPE = jnp.bfloat16     # MXU operand dtype + inter-stage activation storage
_ROW_TILE = 512               # target pixel rows per tile for 1-D row kernels
_CONV_ROWS = 256              # target th*W rows for the 3x3-conv accumulator


def _round_up(a, b):
    return -(-a // b) * b


def _vmem_limit_bytes():
    """Generation-aware scoped-VMEM budget (~3/4 of physical, capped at 100 MiB:
    ~96 MiB on v5e/v6e, ~48 MiB on v7x).  Falls back to a safe 32 MiB."""
    try:
        info = pltpu.get_tpu_info()
        for name in ("vmem_capacity_bytes", "vmem_size_bytes", "vmem_bytes"):
            cap = getattr(info, name, None)
            if cap:
                return int(max(min(int(cap) * 3 // 4, 100 * 1024 * 1024),
                               32 * 1024 * 1024))
    except Exception:
        pass
    return 32 * 1024 * 1024


_VMEM_LIMIT = _vmem_limit_bytes()


def _cparams(dims):
    return pltpu.CompilerParams(dimension_semantics=dims,
                                vmem_limit_bytes=_VMEM_LIMIT)


def _row_tiling(m, target=_ROW_TILE, min_tiles=2):
    """Row tile (multiple of 32), #tiles and padded row count.

    m is padded up to a multiple of the tile (no 'one giant tile' fall-through)
    and the tile is capped so the grid has >= min_tiles steps whenever m allows
    it, keeping both v7x TensorCores busy on the 1-D kernels."""
    tile = min(target, max(32, _round_up(-(-m // min_tiles), 32)))
    m_pad = _round_up(m, tile)
    return tile, m_pad // tile, m_pad


def _pick_h_tile(h, w, row_target=_CONV_ROWS):
    """H-tile so one conv output block is ~row_target pixel rows (keeps the f32
    accumulator around 256x128 - easy on v5e's single store slot)."""
    t = max(1, min(h, row_target // max(w, 1)))
    for d in range(t, 0, -1):
        if h % d == 0:
            return d
    return 1


def _pad_lanes(x, width=LANE):
    c = x.shape[-1]
    if c == width:
        return x
    pad = [(0, 0)] * (x.ndim - 1) + [(0, width - c)]
    return jnp.pad(x, pad)


# --------------------------------- kernels --------------------------------- #

def _deconv_stats_kernel(x_ref, w_ref, b_ref, y_ref, stats_ref, *, m_valid, tile):
    """y = x @ w + b (lane-dense, bf16 out) and masked per-tile BN partials."""
    y = jnp.dot(x_ref[...], w_ref[...],
                preferred_element_type=jnp.float32) + b_ref[...]
    y_ref[...] = y.astype(y_ref.dtype)
    row = pl.program_id(0) * tile + jax.lax.broadcasted_iota(
        jnp.int32, (tile, LANE), 0)
    ym = jnp.where(row < m_valid, y, 0.0)       # exclude padded rows from stats
    s1 = jnp.sum(ym, axis=0, keepdims=True)
    s2 = jnp.sum(ym * ym, axis=0, keepdims=True)
    stats_ref[...] = jnp.concatenate([s1, s2], axis=0).reshape(1, 2, LANE)


def _conv3x3_fused_kernel(x_hbm, w_ref, b_ref, s_ref, t_ref, m_ref,
                          y_ref, stats_ref, xbuf, sem, *, th, h_out, w_out):
    """3x3 'same' conv on one (batch, H-tile) block.

    * The producer stage's BatchNorm+ReLU is fused into the input transform:
      lanes flagged by m_ref get relu(x*s+t); other lanes (raw bridge channels
      / zero lane padding) pass through unchanged.
    * The 'same'-padding ring is forced back to exactly zero (the affine shift
      would otherwise leak relu(t) into the border taps).
    * Halo rows are fetched by a manual DMA from the HBM-resident padded image,
      so VMEM use is O(th*W) independent of image height.
    * bf16 activations in/out; f32 accumulation and BN partials.
    """
    n_idx = pl.program_id(0)
    row0 = pl.program_id(1) * th
    cp = pltpu.make_async_copy(x_hbm.at[n_idx, pl.ds(row0, th + 2)],
                               xbuf, sem.at[0])
    cp.start()
    cp.wait()
    # TODO(synk): double-buffer this halo DMA (prefetch step+1) to hide its
    # latency at very large H; kept synchronous so both grid axes stay parallel.

    v = xbuf[...].astype(jnp.float32)                      # (th+2, wa, 128)
    bn = jnp.maximum(v * s_ref[...] + t_ref[...], 0.0)
    v = jnp.where(m_ref[...] != 0.0, bn, v)
    prow = row0 + jax.lax.broadcasted_iota(jnp.int32, v.shape, 0)
    pcol = jax.lax.broadcasted_iota(jnp.int32, v.shape, 1)
    interior = ((prow >= 1) & (prow <= h_out) &
                (pcol >= 1) & (pcol <= w_out))
    v = jnp.where(interior, v, 0.0)
    xin = v.astype(_MXU_DTYPE)                             # single bf16 cast

    acc = jnp.zeros((th * w_out, LANE), jnp.float32)
    for ky in range(3):
        rows = xin[ky:ky + th]                             # (th, wa, 128)
        for kx in range(3):
            xs = rows[:, kx:kx + w_out, :].reshape(th * w_out, LANE)
            acc = acc + jnp.dot(xs, w_ref[ky * 3 + kx],
                                preferred_element_type=jnp.float32)
    acc = acc + b_ref[...]                                 # conv bias
    y_ref[...] = acc.reshape(1, th, w_out, LANE).astype(y_ref.dtype)
    s1 = jnp.sum(acc, axis=0, keepdims=True)
    s2 = jnp.sum(acc * acc, axis=0, keepdims=True)
    stats_ref[...] = jnp.concatenate([s1, s2], axis=0).reshape(1, 1, 2, LANE)


def _scale_shift_relu_kernel(y_ref, s_ref, t_ref, o_ref):
    """Standalone BN apply + ReLU (only used for the final stage)."""
    o_ref[...] = jnp.maximum(
        y_ref[...].astype(jnp.float32) * s_ref[...] + t_ref[...], 0.0)


# ------------------------------ Pallas wrappers ----------------------------- #

def _bn_fold(s1, s2, count, gamma, beta):
    """Fold (sum, sumsq) partials into per-channel affine BN parameters."""
    mean = s1 / count
    var = jnp.maximum(s2 / count - mean * mean, 0.0)   # clamp: E[y^2]-m^2 may cancel
    scale = gamma * jax.lax.rsqrt(var + EPS)
    shift = beta - mean * scale
    return scale, shift


def conv_transpose2x2_prebn(x_nhwc, w_iohw, bias):
    """ConvTranspose2d(k=2, s=2) as one lane-padded matmul (pre-BN, bf16 out).

    Columns are laid out as (dy, dx, cout).  Also returns per-channel
    (sum, sumsq, count) batch-stat partials; stride==kernel means the 2x2
    interleave is a pure pixel permutation, so stats commute with it."""
    n, h, w, cin = x_nhwc.shape
    cout = w_iohw.shape[1]
    assert cin <= LANE and 4 * cout <= LANE, "channel-blocking >128 not implemented"
    m = n * h * w

    x2d = _pad_lanes(x_nhwc.reshape(m, cin)).astype(_MXU_DTYPE)
    # torch weight (Cin, Cout, 2, 2) -> (Cin, dy, dx, Cout) -> (Cin, 4*Cout)
    w2d = jnp.transpose(w_iohw, (0, 2, 3, 1)).reshape(cin, 4 * cout)
    w2d = jnp.pad(w2d, ((0, LANE - cin), (0, LANE - 4 * cout))).astype(_MXU_DTYPE)
    b4 = _pad_lanes(jnp.tile(bias, 4).reshape(1, 4 * cout)).astype(jnp.float32)

    tile, nt, m_pad = _row_tiling(m)
    if m_pad > m:
        x2d = jnp.pad(x2d, ((0, m_pad - m), (0, 0)))
    kernel = functools.partial(_deconv_stats_kernel, m_valid=m, tile=tile)
    y, stats = pl.pallas_call(
        kernel,
        out_shape=(jax.ShapeDtypeStruct((m_pad, LANE), _MXU_DTYPE),
                   jax.ShapeDtypeStruct((nt, 2, LANE), jnp.float32)),
        grid=(nt,),
        in_specs=[pl.BlockSpec((tile, LANE), lambda i: (i, 0)),
                  pl.BlockSpec((LANE, LANE), lambda i: (0, 0)),
                  pl.BlockSpec((1, LANE), lambda i: (0, 0))],
        out_specs=(pl.BlockSpec((tile, LANE), lambda i: (i, 0)),
                   pl.BlockSpec((1, 2, LANE), lambda i: (i, 0, 0))),
        compiler_params=_cparams(("parallel",)),
    )(x2d, w2d, b4)

    col = jnp.sum(stats, axis=0)[:, :4 * cout].reshape(2, 4, cout)
    s1 = jnp.sum(col[0], axis=0)
    s2 = jnp.sum(col[1], axis=0)
    y4 = y[:m, :4 * cout].reshape(n, h, w, 4 * cout)
    return y4, s1, s2, float(4 * m)


def _spatial_pad(x, w_out):
    """Zero-pad H by (1,1) and W by (1, 1+align): the padded width becomes a
    multiple of 16 so the bf16 halo DMA stays sublane-aligned."""
    wa = _round_up(w_out + 2, 16)
    return jnp.pad(x, ((0, 0), (1, 1), (1, wa - w_out - 1), (0, 0)))


def _assemble_conv1_input(y4, bridge_crop, cout):
    """XLA layout glue (fuses into a single copy pass): 2x2 pixel interleave of
    the deconv columns, channel concat with the cropped bridge, lane + spatial
    pad.  Values stay PRE-BatchNorm; the consumer conv kernel applies BN+ReLU."""
    n, h, w, _ = y4.shape
    up = y4.reshape(n, h, w, 2, 2, cout)
    up = jnp.transpose(up, (0, 1, 3, 2, 4, 5)).reshape(n, 2 * h, 2 * w, cout)
    xcat = jnp.concatenate([up, bridge_crop.astype(up.dtype)], axis=-1)
    return _spatial_pad(_pad_lanes(xcat), 2 * w)
    # TODO(synk): fold this interleave/concat into a Pallas assemble kernel with
    # strided sublane stores if XLA's fusion ever splits it into several passes.


def conv3x3_stage(xpad, w_oihw, bias, in_scale, in_shift, c_apply, h_out, w_out):
    """3x3 'same' conv + bias with the producer's BN+ReLU fused into the input.

    xpad: (N, h_out+2, Wa, 128) bf16, spatially zero-padded, pre-BN values.
    Lanes [0, c_apply) get relu(x*in_scale+in_shift); the remaining lanes pass
    through unchanged.  Returns the pre-BN activation (N, h_out, w_out, 128)
    bf16 plus this stage's per-channel BN partials (sum, sumsq, count)."""
    n = xpad.shape[0]
    wa = xpad.shape[2]
    cout, cin_w = w_oihw.shape[:2]
    assert cin_w <= LANE and cout <= LANE, "channel-blocking >128 not implemented"

    # torch weight (Cout, Cin, 3, 3) -> (ky, kx, Cin, Cout), padded, bf16
    wk = jnp.transpose(w_oihw, (2, 3, 1, 0))
    wk = jnp.pad(wk, ((0, 0), (0, 0), (0, LANE - cin_w), (0, LANE - cout)))
    wk = wk.reshape(9, LANE, LANE).astype(_MXU_DTYPE)
    b = _pad_lanes(bias.reshape(1, cout)).astype(jnp.float32)
    s = _pad_lanes(in_scale.reshape(1, c_apply)).astype(jnp.float32)
    t = _pad_lanes(in_shift.reshape(1, c_apply)).astype(jnp.float32)
    lane_mask = jnp.zeros((1, LANE), jnp.float32).at[0, :c_apply].set(1.0)

    th = _pick_h_tile(h_out, w_out)
    nh = h_out // th
    kernel = functools.partial(_conv3x3_fused_kernel,
                               th=th, h_out=h_out, w_out=w_out)
    y, stats = pl.pallas_call(
        kernel,
        out_shape=(jax.ShapeDtypeStruct((n, h_out, w_out, LANE), _MXU_DTYPE),
                   jax.ShapeDtypeStruct((n, nh, 2, LANE), jnp.float32)),
        grid=(n, nh),
        in_specs=[pl.BlockSpec(memory_space=pl.ANY),   # halo rows DMA'd manually
                  pl.BlockSpec((9, LANE, LANE), lambda i, j: (0, 0, 0)),
                  pl.BlockSpec((1, LANE), lambda i, j: (0, 0)),
                  pl.BlockSpec((1, LANE), lambda i, j: (0, 0)),
                  pl.BlockSpec((1, LANE), lambda i, j: (0, 0)),
                  pl.BlockSpec((1, LANE), lambda i, j: (0, 0))],
        out_specs=(pl.BlockSpec((1, th, w_out, LANE), lambda i, j: (i, j, 0, 0)),
                   pl.BlockSpec((1, 1, 2, LANE), lambda i, j: (i, j, 0, 0))),
        scratch_shapes=[pltpu.VMEM((th + 2, wa, LANE), _MXU_DTYPE),
                        pltpu.SemaphoreType.DMA((1,))],
        compiler_params=_cparams(("parallel", "parallel")),
    )(xpad, wk, b, s, t, lane_mask)

    ssum = jnp.sum(stats, axis=(0, 1))
    return y, ssum[0, :cout], ssum[1, :cout], float(n * h_out * w_out)


def bn_apply_relu(y2d, scale, shift):
    """Standalone BN-apply + ReLU (final stage only; no consumer to fuse into).
    y2d: (M, 128) bf16 pre-BN; scale/shift: (128,) f32.  Returns (M, 128) f32."""
    m = y2d.shape[0]
    tile, nt, m_pad = _row_tiling(m)
    if m_pad > m:
        y2d = jnp.pad(y2d, ((0, m_pad - m), (0, 0)))
    out = pl.pallas_call(
        _scale_shift_relu_kernel,
        out_shape=jax.ShapeDtypeStruct((m_pad, LANE), jnp.float32),
        grid=(nt,),
        in_specs=[pl.BlockSpec((tile, LANE), lambda i: (i, 0)),
                  pl.BlockSpec((1, LANE), lambda i: (0, 0)),
                  pl.BlockSpec((1, LANE), lambda i: (0, 0))],
        out_specs=pl.BlockSpec((tile, LANE), lambda i: (i, 0)),
        compiler_params=_cparams(("parallel",)),
    )(y2d, scale.reshape(1, LANE), shift.reshape(1, LANE))
    return out[:m]


# ----------------------------- UNetUpBlock forward -------------------------- #

def unet_up_block(params, x_nhwc, bridge_nhwc):
    n, h, w, _ = x_nhwc.shape
    cout = params['up_w'].shape[1]
    hu, wu = 2 * h, 2 * w

    # Stage 1: ConvTranspose2d(k=2,s=2) -> pre-BN bf16 + batch stats.
    y4, s1, s2, cnt = conv_transpose2x2_prebn(x_nhwc, params['up_w'],
                                              params['up_b'])
    sc_up, sh_up = _bn_fold(s1, s2, cnt, params['bnup_g'], params['bnup_b'])

    # XLA glue: interleave + center-crop concat + pads (single layout pass).
    xy1 = (bridge_nhwc.shape[1] - hu) // 2
    crop = bridge_nhwc[:, xy1:xy1 + hu, xy1:xy1 + hu, :]
    x1 = _assemble_conv1_input(y4, crop, cout)

    # Stage 2: conv1 with the deconv BN+ReLU fused into its input transform.
    y1, a1, a2, c1 = conv3x3_stage(x1, params['conv_w'], params['conv_b'],
                                   sc_up, sh_up, cout, hu, wu)
    sc1, sh1 = _bn_fold(a1, a2, c1, params['bn_g'], params['bn_b'])

    # Stage 3: conv2 with conv1's BN+ReLU fused into its input transform.
    x2 = _spatial_pad(y1, wu)
    y2, d1, d2, c2 = conv3x3_stage(x2, params['conv2_w'], params['conv2_b'],
                                   sc1, sh1, cout, hu, wu)
    sc2, sh2 = _bn_fold(d1, d2, c2, params['bn2_g'], params['bn2_b'])

    # Final stage has no consumer: standalone BN-apply + ReLU kernel.
    out2d = bn_apply_relu(y2.reshape(n * hu * wu, LANE),
                          jnp.pad(sc2, (0, LANE - cout)),
                          jnp.pad(sh2, (0, LANE - cout)))
    return out2d.reshape(n, hu, wu, LANE)[..., :cout]


# ------------------------- pure-XLA reference (check) ----------------------- #

def _bn_relu_mirror(y, gamma, beta, count):
    """Training-mode BN + ReLU mirroring the kernels: statistics from the f32
    pre-BN activation, applied to its bf16-stored copy."""
    s1 = jnp.sum(y, axis=(0, 1, 2))
    s2 = jnp.sum(y * y, axis=(0, 1, 2))
    scale, shift = _bn_fold(s1, s2, count, gamma, beta)
    yq = y.astype(_MXU_DTYPE).astype(jnp.float32)
    return jnp.maximum(yq * scale + shift, 0.0)


def unet_up_block_ref(params, x, bridge):
    """XLA reference mirroring the kernels' precision choices (bf16 MXU operands
    and bf16 inter-stage activation storage; the torch module itself is f32)."""
    n, h, w, _ = x.shape
    cout = params['up_w'].shape[1]
    up = jnp.einsum('nhwc,coyx->nhwyxo', x.astype(_MXU_DTYPE),
                    params['up_w'].astype(_MXU_DTYPE),
                    preferred_element_type=jnp.float32)
    up = jnp.transpose(up, (0, 1, 3, 2, 4, 5)).reshape(n, 2 * h, 2 * w, cout)
    up = up + params['up_b']
    up = _bn_relu_mirror(up, params['bnup_g'], params['bnup_b'],
                         float(n * 2 * h * 2 * w))
    hu = up.shape[1]
    xy1 = (bridge.shape[1] - hu) // 2
    crop = bridge[:, xy1:xy1 + hu, xy1:xy1 + hu, :]
    out = jnp.concatenate([up, crop], axis=-1)

    def conv_bn_relu(a, w_oihw, b, g, be):
        wk = jnp.transpose(w_oihw, (2, 3, 1, 0)).astype(_MXU_DTYPE)
        y = jax.lax.conv_general_dilated(
            a.astype(_MXU_DTYPE), wk, (1, 1), 'SAME',
            dimension_numbers=('NHWC', 'HWIO', 'NHWC'),
            preferred_element_type=jnp.float32) + b
        return _bn_relu_mirror(y, g, be,
                               float(y.shape[0] * y.shape[1] * y.shape[2]))

    out = conv_bn_relu(out, params['conv_w'], params['conv_b'],
                       params['bn_g'], params['bn_b'])
    out = conv_bn_relu(out, params['conv2_w'], params['conv2_b'],
                       params['bn2_g'], params['bn2_b'])
    return out


# ----------------------------------- main ----------------------------------- #

def init_params(key, in_size, out_size):
    ks = jax.random.split(key, 12)
    f32 = jnp.float32
    return {
        # ConvTranspose2d weight: (in_channels, out_channels, kH, kW)
        'up_w':    0.1 * jax.random.normal(ks[0], (in_size, out_size, 2, 2), f32),
        'up_b':    0.1 * jax.random.normal(ks[1], (out_size,), f32),
        'bnup_g':  1.0 + 0.1 * jax.random.normal(ks[2], (out_size,), f32),
        'bnup_b':  0.1 * jax.random.normal(ks[3], (out_size,), f32),
        # Conv2d weight: (out_channels, in_channels, kH, kW)
        'conv_w':  0.1 * jax.random.normal(ks[4], (out_size, in_size, 3, 3), f32),
        'conv_b':  0.1 * jax.random.normal(ks[5], (out_size,), f32),
        'bn_g':    1.0 + 0.1 * jax.random.normal(ks[6], (out_size,), f32),
        'bn_b':    0.1 * jax.random.normal(ks[7], (out_size,), f32),
        'conv2_w': 0.1 * jax.random.normal(ks[8], (out_size, out_size, 3, 3), f32),
        'conv2_b': 0.1 * jax.random.normal(ks[9], (out_size,), f32),
        'bn2_g':   1.0 + 0.1 * jax.random.normal(ks[10], (out_size,), f32),
        'bn2_b':   0.1 * jax.random.normal(ks[11], (out_size,), f32),
    }


if __name__ == "__main__":
    key = jax.random.PRNGKey(0)
    in_size, out_size = 8, 4
    N, H, W = 2, 8, 8          # x spatial; up-sampled output is 16x16
    HB = 20                    # bridge spatial, center-cropped to 16
    kp, kx, kb = jax.random.split(key, 3)

    params = init_params(kp, in_size, out_size)
    # NHWC inputs (NCHW-equivalent torch shapes: x (2,8,8,8), bridge (2,4,20,20))
    x = jax.random.normal(kx, (N, H, W, in_size), jnp.float32)
    bridge = jax.random.normal(kb, (N, HB, HB, in_size - out_size), jnp.float32)

    fwd = jax.jit(functools.partial(unet_up_block, params))
    out = jax.block_until_ready(fwd(x, bridge))

    assert out.shape == (N, 2 * H, 2 * W, out_size), out.shape
    assert bool(jnp.all(jnp.isfinite(out)))
    assert bool(jnp.all(out >= 0.0))   # final ReLU

    ref = jax.jit(functools.partial(unet_up_block_ref, params))(x, bridge)
    err = float(jnp.max(jnp.abs(out - ref)))
    assert err < 2e-2, f"max abs error vs reference = {err}"

    print("KERNEL_OK")
</pallas_src>

<mosaic_0001>
module attributes {stable_mosaic.version = 11 : i64} {
  func.func @_deconv_stats_kernel(%arg0: i32, %arg1: memref<64x128xbf16, #tpu.memory_space<vmem>>, %arg2: memref<128x128xbf16, #tpu.memory_space<vmem>>, %arg3: memref<1x128xf32, #tpu.memory_space<vmem>>, %arg4: memref<64x128xbf16, #tpu.memory_space<vmem>>, %arg5: memref<1x2x128xf32, #tpu.memory_space<vmem>>) attributes {dimension_semantics = [#tpu.dimension_semantics<parallel>], iteration_bounds = array<i64: 2>, scalar_prefetch = 0 : i64, scratch_operands = 0 : i64, tpu.core_type = #tpu.core_type<tc>, window_params = [{transform_indices = @transform_0, window_bounds = array<i64: 64, 128>}, {pipeline_mode = #tpu.pipeline_mode<synchronous>, transform_indices = @transform_1, window_bounds = array<i64: 128, 128>}, {pipeline_mode = #tpu.pipeline_mode<synchronous>, transform_indices = @transform_2, window_bounds = array<i64: 1, 128>}, {transform_indices = @transform_3, window_bounds = array<i64: 64, 128>}, {transform_indices = @transform_4, window_bounds = array<i64: 1, 2, 128>}]} {
    %c0 = arith.constant 0 : index
    %c0_0 = arith.constant 0 : index
    %0 = vector.load %arg1[%c0, %c0_0] : memref<64x128xbf16, #tpu.memory_space<vmem>>, vector<64x128xbf16>
    %c0_1 = arith.constant 0 : index
    %c0_2 = arith.constant 0 : index
    %1 = vector.load %arg2[%c0_1, %c0_2] : memref<128x128xbf16, #tpu.memory_space<vmem>>, vector<128x128xbf16>
    %cst = arith.constant dense<0.000000e+00> : vector<64x128xf32>
    %2 = tpu.matmul %0, %1, %cst {dimension_numbers = #tpu.dot_dimension_numbers<[1], [0], [0], [1], [0, 0, 1, 1], [], []>} : vector<64x128xbf16>, vector<128x128xbf16>, vector<64x128xf32> -> vector<64x128xf32>
    %c0_3 = arith.constant 0 : index
    %c0_4 = arith.constant 0 : index
    %3 = vector.load %arg3[%c0_3, %c0_4] : memref<1x128xf32, #tpu.memory_space<vmem>>, vector<1x128xf32>
    %4 = vector.broadcast %3 : vector<1x128xf32> to vector<64x128xf32>
    %5 = arith.addf %2, %4 : vector<64x128xf32>
    %6 = arith.truncf %5 : vector<64x128xf32> to vector<64x128xbf16>
    %c0_5 = arith.constant 0 : index
    %c0_6 = arith.constant 0 : index
    %7 = vector.load %arg4[%c0_5, %c0_6] : memref<64x128xbf16, #tpu.memory_space<vmem>>, vector<64x128xbf16>
    tpu.vector_store %arg4[%c0_5, %c0_6], %6 {strides = array<i32>} : memref<64x128xbf16, #tpu.memory_space<vmem>>, vector<64x128xbf16>,
    %c64_i32 = arith.constant 64 : i32
    %8 = arith.muli %arg0, %c64_i32 : i32
    %9 = tpu.iota {dimensions = array<i32: 0>} : vector<64x128xi32>
    %10 = vector.broadcast %8 : i32 to vector<64x128xi32>
    %11 = arith.addi %10, %9 : vector<64x128xi32>
    %c128_i32 = arith.constant 128 : i32
    %12 = vector.broadcast %c128_i32 : i32 to vector<64x128xi32>
    %13 = arith.cmpi slt, %11, %12 : vector<64x128xi32>
    %cst_7 = arith.constant 0.000000e+00 : f32
    %14 = vector.broadcast %cst_7 : f32 to vector<64x128xf32>
    %15 = arith.select %13, %5, %14 : vector<64x128xi1>, vector<64x128xf32>
    %cst_8 = arith.constant dense<0.000000e+00> : vector<128xf32>
    %16 = vector.multi_reduction <add>, %15, %cst_8 [0] : vector<64x128xf32> to vector<128xf32>
    %17 = vector.shape_cast %16 : vector<128xf32> to vector<1x128xf32>
    %18 = arith.mulf %15, %15 : vector<64x128xf32>
    %cst_9 = arith.constant dense<0.000000e+00> : vector<128xf32>
    %19 = vector.multi_reduction <add>, %18, %cst_9 [0] : vector<64x128xf32> to vector<128xf32>
    %20 = vector.shape_cast %19 : vector<128xf32> to vector<1x128xf32>
    %21 = tpu.concatenate %17, %20 in 0 : vector<1x128xf32>, vector<1x128xf32> -> vector<2x128xf32>
    %22 = vector.shape_cast %21 : vector<2x128xf32> to vector<1x2x128xf32>
    %c0_10 = arith.constant 0 : index
    %c0_11 = arith.constant 0 : index
    %c0_12 = arith.constant 0 : index
    %23 = vector.load %arg5[%c0_10, %c0_11, %c0_12] : memref<1x2x128xf32, #tpu.memory_space<vmem>>, vector<1x2x128xf32>
    tpu.vector_store %arg5[%c0_10, %c0_11, %c0_12], %22 {strides = array<i32>} : memref<1x2x128xf32, #tpu.memory_space<vmem>>, vector<1x2x128xf32>,
    return
  }
  func.func @transform_0(%arg0: i32) -> (i32, i32) {
    %c0_i32 = arith.constant 0 : i32
    %c0_i32_0 = arith.constant 0 : i32
    return %arg0, %c0_i32 : i32, i32
  }
  func.func @transform_1(%arg0: i32) -> (i32, i32) {
    %c0_i32 = arith.constant 0 : i32
    %c0_i32_0 = arith.constant 0 : i32
    %c0_i32_1 = arith.constant 0 : i32
    return %c0_i32, %c0_i32_0 : i32, i32
  }
  func.func @transform_2(%arg0: i32) -> (i32, i32) {
    %c0_i32 = arith.constant 0 : i32
    %c0_i32_0 = arith.constant 0 : i32
    %c0_i32_1 = arith.constant 0 : i32
    return %c0_i32, %c0_i32_0 : i32, i32
  }
  func.func @transform_3(%arg0: i32) -> (i32, i32) {
    %c0_i32 = arith.constant 0 : i32
    %c0_i32_0 = arith.constant 0 : i32
    return %arg0, %c0_i32 : i32, i32
  }
  func.func @transform_4(%arg0: i32) -> (i32, i32, i32) {
    %c0_i32 = arith.constant 0 : i32
    %c0_i32_0 = arith.constant 0 : i32
    %c0_i32_1 = arith.constant 0 : i32
    return %arg0, %c0_i32, %c0_i32_0 : i32, i32, i32
  }
}

module attributes {stable_mosaic.version = 11 : i64} {
  func.func @_scale_shift_relu_kernel(%arg0: i32, %arg1: memref<256x128xbf16, #tpu.memory_space<vmem>>, %arg2: memref<1x128xf32, #tpu.memory_space<vmem>>, %arg3: memref<1x128xf32, #tpu.memory_space<vmem>>, %arg4: memref<256x128xf32, #tpu.memory_space<vmem>>) attributes {dimension_semantics = [#tpu.dimension_semantics<parallel>], iteration_bounds = array<i64: 2>, scalar_prefetch = 0 : i64, scratch_operands = 0 : i64, tpu.core_type = #tpu.core_type<tc>, window_params = [{transform_indices = @transform_0, window_bounds = array<i64: 256, 128>}, {pipeline_mode = #tpu.pipeline_mode<synchronous>, transform_indices = @transform_1, window_bounds = array<i64: 1, 128>}, {pipeline_mode = #tpu.pipeline_mode<synchronous>, transform_indices = @transform_2, window_bounds = array<i64: 1, 128>}, {transform_indices = @transform_3, window_bounds = array<i64: 256, 128>}]} {
    %c0 = arith.constant 0 : index
    %c0_0 = arith.constant 0 : index
    %0 = vector.load %arg1[%c0, %c0_0] : memref<256x128xbf16, #tpu.memory_space<vmem>>, vector<256x128xbf16>
    %1 = arith.extf %0 : vector<256x128xbf16> to vector<256x128xf32>
    %c0_1 = arith.constant 0 : index
    %c0_2 = arith.constant 0 : index
    %2 = vector.load %arg2[%c0_1, %c0_2] : memref<1x128xf32, #tpu.memory_space<vmem>>, vector<1x128xf32>
    %3 = vector.broadcast %2 : vector<1x128xf32> to vector<256x128xf32>
    %4 = arith.mulf %1, %3 : vector<256x128xf32>
    %c0_3 = arith.constant 0 : index
    %c0_4 = arith.constant 0 : index
    %5 = vector.load %arg3[%c0_3, %c0_4] : memref<1x128xf32, #tpu.memory_space<vmem>>, vector<1x128xf32>
    %6 = vector.broadcast %5 : vector<1x128xf32> to vector<256x128xf32>
    %7 = arith.addf %4, %6 : vector<256x128xf32>
    %cst = arith.constant 0.000000e+00 : f32
    %8 = vector.broadcast %cst : f32 to vector<256x128xf32>
    %9 = arith.maximumf %7, %8 : vector<256x128xf32>
    %c0_5 = arith.constant 0 : index
    %c0_6 = arith.constant 0 : index
    %10 = vector.load %arg4[%c0_5, %c0_6] : memref<256x128xf32, #tpu.memory_space<vmem>>, vector<256x128xf32>
    tpu.vector_store %arg4[%c0_5, %c0_6], %9 {strides = array<i32>} : memref<256x128xf32, #tpu.memory_space<vmem>>, vector<256x128xf32>,
    return
  }
  func.func @transform_0(%arg0: i32) -> (i32, i32) {
    %c0_i32 = arith.constant 0 : i32
    %c0_i32_0 = arith.constant 0 : i32
    return %arg0, %c0_i32 : i32, i32
  }
  func.func @transform_1(%arg0: i32) -> (i32, i32) {
    %c0_i32 = arith.constant 0 : i32
    %c0_i32_0 = arith.constant 0 : i32
    %c0_i32_1 = arith.constant 0 : i32
    return %c0_i32, %c0_i32_0 : i32, i32
  }
  func.func @transform_2(%arg0: i32) -> (i32, i32) {
    %c0_i32 = arith.constant 0 : i32
    %c0_i32_0 = arith.constant 0 : i32
    %c0_i32_1 = arith.constant 0 : i32
    return %c0_i32, %c0_i32_0 : i32, i32
  }
  func.func @transform_3(%arg0: i32) -> (i32, i32) {
    %c0_i32 = arith.constant 0 : i32
    %c0_i32_0 = arith.constant 0 : i32
    return %arg0, %c0_i32 : i32, i32
  }
}

module attributes {stable_mosaic.version = 11 : i64} {
  func.func @_conv3x3_fused_kernel(%arg0: i32, %arg1: i32, %arg2: memref<2x18x32x128xbf16, #tpu.memory_space<any>>, %arg3: memref<9x128x128xbf16, #tpu.memory_space<vmem>>, %arg4: memref<1x128xf32, #tpu.memory_space<vmem>>, %arg5: memref<1x128xf32, #tpu.memory_space<vmem>>, %arg6: memref<1x128xf32, #tpu.memory_space<vmem>>, %arg7: memref<1x128xf32, #tpu.memory_space<vmem>>, %arg8: memref<1x16x16x128xbf16, #tpu.memory_space<vmem>>, %arg9: memref<1x1x2x128xf32, #tpu.memory_space<vmem>>, %arg10: memref<18x32x128xbf16, #tpu.memory_space<vmem>>, %arg11: memref<1x!tpu.dma_semaphore, #tpu.memory_space<semaphore_mem>>) attributes {dimension_semantics = [#tpu.dimension_semantics<parallel>, #tpu.dimension_semantics<parallel>], iteration_bounds = array<i64: 2, 1>, scalar_prefetch = 0 : i64, scratch_operands = 2 : i64, tpu.core_type = #tpu.core_type<tc>, window_params = [{}, {pipeline_mode = #tpu.pipeline_mode<synchronous>, transform_indices = @transform_1, window_bounds = array<i64: 9, 128, 128>}, {pipeline_mode = #tpu.pipeline_mode<synchronous>, transform_indices = @transform_2, window_bounds = array<i64: 1, 128>}, {pipeline_mode = #tpu.pipeline_mode<synchronous>, transform_indices = @transform_3, window_bounds = array<i64: 1, 128>}, {pipeline_mode = #tpu.pipeline_mode<synchronous>, transform_indices = @transform_4, window_bounds = array<i64: 1, 128>}, {pipeline_mode = #tpu.pipeline_mode<synchronous>, transform_indices = @transform_5, window_bounds = array<i64: 1, 128>}, {transform_indices = @transform_6, window_bounds = array<i64: 1, 16, 16, 128>}, {transform_indices = @transform_7, window_bounds = array<i64: 1, 1, 2, 128>}]} {
    %c16_i32 = arith.constant 16 : i32
    %0 = arith.muli %arg1, %c16_i32 : i32
    %c0_i32 = arith.constant 0 : i32
    %c0_i32_0 = arith.constant 0 : i32
    %c0_i32_1 = arith.constant 0 : i32
    %1 = tpu.memref_slice %arg2[%arg0, %0, %c0_i32_0, %c0_i32_1] : memref<2x18x32x128xbf16, #tpu.memory_space<any>> -> memref<1x18x32x128xbf16, #tpu.memory_space<any>>
    %2 = tpu.memref_squeeze %1 : memref<1x18x32x128xbf16, #tpu.memory_space<any>> -> memref<18x32x128xbf16, #tpu.memory_space<any>>
    %3 = tpu.memref_slice %arg11[%c0_i32] : memref<1x!tpu.dma_semaphore, #tpu.memory_space<semaphore_mem>> -> memref<1x!tpu.dma_semaphore, #tpu.memory_space<semaphore_mem>>
    %4 = tpu.memref_squeeze %3 : memref<1x!tpu.dma_semaphore, #tpu.memory_space<semaphore_mem>> -> memref<!tpu.dma_semaphore, #tpu.memory_space<semaphore_mem>>
    tpu.enqueue_dma source(%2 : memref<18x32x128xbf16, #tpu.memory_space<any>>) target(%arg10 : memref<18x32x128xbf16, #tpu.memory_space<vmem>>) target_semaphore(%4 : memref<!tpu.dma_semaphore, #tpu.memory_space<semaphore_mem>>)
    %c0_i32_2 = arith.constant 0 : i32
    %c0_i32_3 = arith.constant 0 : i32
    %c0_i32_4 = arith.constant 0 : i32
    %5 = tpu.memref_slice %arg2[%arg0, %0, %c0_i32_3, %c0_i32_4] : memref<2x18x32x128xbf16, #tpu.memory_space<any>> -> memref<1x18x32x128xbf16, #tpu.memory_space<any>>
    %6 = tpu.memref_squeeze %5 : memref<1x18x32x128xbf16, #tpu.memory_space<any>> -> memref<18x32x128xbf16, #tpu.memory_space<any>>
    %7 = tpu.memref_slice %arg11[%c0_i32_2] : memref<1x!tpu.dma_semaphore, #tpu.memory_space<semaphore_mem>> -> memref<1x!tpu.dma_semaphore, #tpu.memory_space<semaphore_mem>>
    %8 = tpu.memref_squeeze %7 : memref<1x!tpu.dma_semaphore, #tpu.memory_space<semaphore_mem>> -> memref<!tpu.dma_semaphore, #tpu.memory_space<semaphore_mem>>
    tpu.wait_dma2 semaphore(%8 : memref<!tpu.dma_semaphore, #tpu.memory_space<semaphore_mem>>) src(%6 : memref<18x32x128xbf16, #tpu.memory_space<any>>) dst(%arg10 : memref<18x32x128xbf16, #tpu.memory_space<vmem>>)
    %c0 = arith.constant 0 : index
    %c0_5 = arith.constant 0 : index
    %c0_6 = arith.constant 0 : index
    %9 = vector.load %arg10[%c0, %c0_5, %c0_6] : memref<18x32x128xbf16, #tpu.memory_space<vmem>>, vector<18x32x128xbf16>
    %10 = arith.extf %9 : vector<18x32x128xbf16> to vector<18x32x128xf32>
    %c0_7 = arith.constant 0 : index
    %c0_8 = arith.constant 0 : index
    %11 = vector.load %arg5[%c0_7, %c0_8] : memref<1x128xf32, #tpu.memory_space<vmem>>, vector<1x128xf32>
    %12 = vector.shape_cast %11 : vector<1x128xf32> to vector<1x1x128xf32>
    %13 = vector.broadcast %12 : vector<1x1x128xf32> to vector<18x32x128xf32>
    %14 = arith.mulf %10, %13 : vector<18x32x128xf32>
    %c0_9 = arith.constant 0 : index
    %c0_10 = arith.constant 0 : index
    %15 = vector.load %arg6[%c0_9, %c0_10] : memref<1x128xf32, #tpu.memory_space<vmem>>, vector<1x128xf32>
    %16 = vector.shape_cast %15 : vector<1x128xf32> to vector<1x1x128xf32>
    %17 = vector.broadcast %16 : vector<1x1x128xf32> to vector<18x32x128xf32>
    %18 = arith.addf %14, %17 : vector<18x32x128xf32>
    %cst = arith.constant 0.000000e+00 : f32
    %19 = vector.broadcast %cst : f32 to vector<18x32x128xf32>
    %20 = arith.maximumf %18, %19 : vector<18x32x128xf32>
    %c0_11 = arith.constant 0 : index
    %c0_12 = arith.constant 0 : index
    %21 = vector.load %arg7[%c0_11, %c0_12] : memref<1x128xf32, #tpu.memory_space<vmem>>, vector<1x128xf32>
    %cst_13 = arith.constant 0.000000e+00 : f32
    %22 = vector.broadcast %cst_13 : f32 to vector<1x128xf32>
    %23 = arith.cmpf one, %21, %22 : vector<1x128xf32>
    %24 = vector.shape_cast %23 : vector<1x128xi1> to vector<1x1x128xi1>
    %25 = vector.broadcast %24 : vector<1x1x128xi1> to vector<18x32x128xi1>
    %26 = arith.select %25, %20, %10 : vector<18x32x128xi1>, vector<18x32x128xf32>
    %27 = tpu.iota {dimensions = array<i32: 0>} : vector<18x32x128xi32>
    %28 = vector.broadcast %0 : i32 to vector<18x32x128xi32>
    %29 = arith.addi %28, %27 : vector<18x32x128xi32>
    %30 = tpu.iota {dimensions = array<i32: 1>} : vector<18x32x128xi32>
    %c1_i32 = arith.constant 1 : i32
    %31 = vector.broadcast %c1_i32 : i32 to vector<18x32x128xi32>
    %32 = arith.cmpi sge, %29, %31 : vector<18x32x128xi32>
    %c16_i32_14 = arith.constant 16 : i32
    %33 = vector.broadcast %c16_i32_14 : i32 to vector<18x32x128xi32>
    %34 = arith.cmpi sle, %29, %33 : vector<18x32x128xi32>
    %35 = arith.andi %32, %34 : vector<18x32x128xi1>
    %c1_i32_15 = arith.constant 1 : i32
    %36 = vector.broadcast %c1_i32_15 : i32 to vector<18x32x128xi32>
    %37 = arith.cmpi sge, %30, %36 : vector<18x32x128xi32>
    %38 = arith.andi %35, %37 : vector<18x32x128xi1>
    %c16_i32_16 = arith.constant 16 : i32
    %39 = vector.broadcast %c16_i32_16 : i32 to vector<18x32x128xi32>
    %40 = arith.cmpi sle, %30, %39 : vector<18x32x128xi32>
    %41 = arith.andi %38, %40 : vector<18x32x128xi1>
    %cst_17 = arith.constant 0.000000e+00 : f32
    %42 = vector.broadcast %cst_17 : f32 to vector<18x32x128xf32>
    %43 = arith.select %41, %26, %42 : vector<18x32x128xi1>, vector<18x32x128xf32>
    %44 = arith.truncf %43 : vector<18x32x128xf32> to vector<18x32x128xbf16>
    %cst_18 = arith.constant 0.000000e+00 : f32
    %45 = vector.broadcast %cst_18 : f32 to vector<256x128xf32>
    %46 = vector.extract_strided_slice %44 {offsets = [0, 0, 0], sizes = [16, 32, 128], strides = [1, 1, 1]} : vector<18x32x128xbf16> to vector<16x32x128xbf16>
    %47 = vector.extract_strided_slice %46 {offsets = [0, 0, 0], sizes = [16, 16, 128], strides = [1, 1, 1]} : vector<16x32x128xbf16> to vector<16x16x128xbf16>
    %48 = vector.shape_cast %47 : vector<16x16x128xbf16> to vector<256x128xbf16>
    %c0_19 = arith.constant 0 : index
    %c0_20 = arith.constant 0 : index
    %c0_21 = arith.constant 0 : index
    %49 = vector.load %arg3[%c0_19, %c0_20, %c0_21] : memref<9x128x128xbf16, #tpu.memory_space<vmem>>, vector<1x128x128xbf16>
    %50 = vector.shape_cast %49 : vector<1x128x128xbf16> to vector<128x128xbf16>
    %cst_22 = arith.constant dense<0.000000e+00> : vector<256x128xf32>
    %51 = tpu.matmul %48, %50, %cst_22 {dimension_numbers = #tpu.dot_dimension_numbers<[1], [0], [0], [1], [0, 0, 1, 1], [], []>} : vector<256x128xbf16>, vector<128x128xbf16>, vector<256x128xf32> -> vector<256x128xf32>
    %52 = arith.addf %45, %51 : vector<256x128xf32>
    %53 = vector.extract_strided_slice %46 {offsets = [0, 1, 0], sizes = [16, 16, 128], strides = [1, 1, 1]} : vector<16x32x128xbf16> to vector<16x16x128xbf16>
    %54 = vector.shape_cast %53 : vector<16x16x128xbf16> to vector<256x128xbf16>
    %c1 = arith.constant 1 : index
    %c0_23 = arith.constant 0 : index
    %c0_24 = arith.constant 0 : index
    %55 = vector.load %arg3[%c1, %c0_23, %c0_24] : memref<9x128x128xbf16, #tpu.memory_space<vmem>>, vector<1x128x128xbf16>
    %56 = vector.shape_cast %55 : vector<1x128x128xbf16> to vector<128x128xbf16>
    %cst_25 = arith.constant dense<0.000000e+00> : vector<256x128xf32>
    %57 = tpu.matmul %54, %56, %cst_25 {dimension_numbers = #tpu.dot_dimension_numbers<[1], [0], [0], [1], [0, 0, 1, 1], [], []>} : vector<256x128xbf16>, vector<128x128xbf16>, vector<256x128xf32> -> vector<256x128xf32>
    %58 = arith.addf %52, %57 : vector<256x128xf32>
    %59 = vector.extract_strided_slice %46 {offsets = [0, 2, 0], sizes = [16, 16, 128], strides = [1, 1, 1]} : vector<16x32x128xbf16> to vector<16x16x128xbf16>
    %60 = vector.shape_cast %59 : vector<16x16x128xbf16> to vector<256x128xbf16>
    %c2 = arith.constant 2 : index
    %c0_26 = arith.constant 0 : index
    %c0_27 = arith.constant 0 : index
    %61 = vector.load %arg3[%c2, %c0_26, %c0_27] : memref<9x128x128xbf16, #tpu.memory_space<vmem>>, vector<1x128x128xbf16>
    %62 = vector.shape_cast %61 : vector<1x128x128xbf16> to vector<128x128xbf16>
    %cst_28 = arith.constant dense<0.000000e+00> : vector<256x128xf32>
    %63 = tpu.matmul %60, %62, %cst_28 {dimension_numbers = #tpu.dot_dimension_numbers<[1], [0], [0], [1], [0, 0, 1, 1], [], []>} : vector<256x128xbf16>, vector<128x128xbf16>, vector<256x128xf32> -> vector<256x128xf32>
    %64 = arith.addf %58, %63 : vector<256x128xf32>
    %65 = vector.extract_strided_slice %44 {offsets = [1, 0, 0], sizes = [16, 32, 128], strides = [1, 1, 1]} : vector<18x32x128xbf16> to vector<16x32x128xbf16>
    %66 = vector.extract_strided_slice %65 {offsets = [0, 0, 0], sizes = [16, 16, 128], strides = [1, 1, 1]} : vector<16x32x128xbf16> to vector<16x16x128xbf16>
    %67 = vector.shape_cast %66 : vector<16x16x128xbf16> to vector<256x128xbf16>
    %c3 = arith.constant 3 : index
    %c0_29 = arith.constant 0 : index
    %c0_30 = arith.constant 0 : index
    %68 = vector.load %arg3[%c3, %c0_29, %c0_30] : memref<9x128x128xbf16, #tpu.memory_space<vmem>>, vector<1x128x128xbf16>
    %69 = vector.shape_cast %68 : vector<1x128x128xbf16> to vector<128x128xbf16>
    %cst_31 = arith.constant dense<0.000000e+00> : vector<256x128xf32>
    %70 = tpu.matmul %67, %69, %cst_31 {dimension_numbers = #tpu.dot_dimension_numbers<[1], [0], [0], [1], [0, 0, 1, 1], [], []>} : vector<256x128xbf16>, vector<128x128xbf16>, vector<256x128xf32> -> vector<256x128xf32>
    %71 = arith.addf %64, %70 : vector<256x128xf32>
    %72 = vector.extract_strided_slice %65 {offsets = [0, 1, 0], sizes = [16, 16, 128], strides = [1, 1, 1]} : vector<16x32x128xbf16> to vector<16x16x128xbf16>
    %73 = vector.shape_cast %72 : vector<16x16x128xbf16> to vector<256x128xbf16>
    %c4 = arith.constant 4 : index
    %c0_32 = arith.constant 0 : index
    %c0_33 = arith.constant 0 : index
    %74 = vector.load %arg3[%c4, %c0_32, %c0_33] : memref<9x128x128xbf16, #tpu.memory_space<vmem>>, vector<1x128x128xbf16>
    %75 = vector.shape_cast %74 : vector<1x128x128xbf16> to vector<128x128xbf16>
    %cst_34 = arith.constant dense<0.000000e+00> : vector<256x128xf32>
    %76 = tpu.matmul %73, %75, %cst_34 {dimension_numbers = #tpu.dot_dimension_numbers<[1], [0], [0], [1], [0, 0, 1, 1], [], []>} : vector<256x128xbf16>, vector<128x128xbf16>, vector<256x128xf32> -> vector<256x128xf32>
    %77 = arith.addf %71, %76 : vector<256x128xf32>
    %78 = vector.extract_strided_slice %65 {offsets = [0, 2, 0], sizes = [16, 16, 128], strides = [1, 1, 1]} : vector<16x32x128xbf16> to vector<16x16x128xbf16>
    %79 = vector.shape_cast %78 : vector<16x16x128xbf16> to vector<256x128xbf16>
    %c5 = arith.constant 5 : index
    %c0_35 = arith.constant 0 : index
    %c0_36 = arith.constant 0 : index
    %80 = vector.load %arg3[%c5, %c0_35, %c0_36] : memref<9x128x128xbf16, #tpu.memory_space<vmem>>, vector<1x128x128xbf16>
    %81 = vector.shape_cast %80 : vector<1x128x128xbf16> to vector<128x128xbf16>
    %cst_37 = arith.constant dense<0.000000e+00> : vector<256x128xf32>
    %82 = tpu.matmul %79, %81, %cst_37 {dimension_numbers = #tpu.dot_dimension_numbers<[1], [0], [0], [1], [0, 0, 1, 1], [], []>} : vector<256x128xbf16>, vector<128x128xbf16>, vector<256x128xf32> -> vector<256x128xf32>
    %83 = arith.addf %77, %82 : vector<256x128xf32>
    %84 = vector.extract_strided_slice %44 {offsets = [2, 0, 0], sizes = [16, 32, 128], strides = [1, 1, 1]} : vector<18x32x128xbf16> to vector<16x32x128xbf16>
    %85 = vector.extract_strided_slice %84 {offsets = [0, 0, 0], sizes = [16, 16, 128], strides = [1, 1, 1]} : vector<16x32x128xbf16> to vector<16x16x128xbf16>
    %86 = vector.shape_cast %85 : vector<16x16x128xbf16> to vector<256x128xbf16>
    %c6 = arith.constant 6 : index
    %c0_38 = arith.constant 0 : index
    %c0_39 = arith.constant 0 : index
    %87 = vector.load %arg3[%c6, %c0_38, %c0_39] : memref<9x128x128xbf16, #tpu.memory_space<vmem>>, vector<1x128x128xbf16>
    %88 = vector.shape_cast %87 : vector<1x128x128xbf16> to vector<128x128xbf16>
    %cst_40 = arith.constant dense<0.000000e+00> : vector<256x128xf32>
    %89 = tpu.matmul %86, %88, %cst_40 {dimension_numbers = #tpu.dot_dimension_numbers<[1], [0], [0], [1], [0, 0, 1, 1], [], []>} : vector<256x128xbf16>, vector<128x128xbf16>, vector<256x128xf32> -> vector<256x128xf32>
    %90 = arith.addf %83, %89 : vector<256x128xf32>
    %91 = vector.extract_strided_slice %84 {offsets = [0, 1, 0], sizes = [16, 16, 128], strides = [1, 1, 1]} : vector<16x32x128xbf16> to vector<16x16x128xbf16>
    %92 = vector.shape_cast %91 : vector<16x16x128xbf16> to vector<256x128xbf16>
    %c7 = arith.constant 7 : index
    %c0_41 = arith.constant 0 : index
    %c0_42 = arith.constant 0 : index
    %93 = vector.load %arg3[%c7, %c0_41, %c0_42] : memref<9x128x128xbf16, #tpu.memory_space<vmem>>, vector<1x128x128xbf16>
    %94 = vector.shape_cast %93 : vector<1x128x128xbf16> to vector<128x128xbf16>
    %cst_43 = arith.constant dense<0.000000e+00> : vector<256x128xf32>
    %95 = tpu.matmul %92, %94, %cst_43 {dimension_numbers = #tpu.dot_dimension_numbers<[1], [0], [0], [1], [0, 0, 1, 1], [], []>} : vector<256x128xbf16>, vector<128x128xbf16>, vector<256x128xf32> -> vector<256x128xf32>
    %96 = arith.addf %90, %95 : vector<256x128xf32>
    %97 = vector.extract_strided_slice %84 {offsets = [0, 2, 0], sizes = [16, 16, 128], strides = [1, 1, 1]} : vector<16x32x128xbf16> to vector<16x16x128xbf16>
    %98 = vector.shape_cast %97 : vector<16x16x128xbf16> to vector<256x128xbf16>
    %c8 = arith.constant 8 : index
    %c0_44 = arith.constant 0 : index
    %c0_45 = arith.constant 0 : index
    %99 = vector.load %arg3[%c8, %c0_44, %c0_45] : memref<9x128x128xbf16, #tpu.memory_space<vmem>>, vector<1x128x128xbf16>
    %100 = vector.shape_cast %99 : vector<1x128x128xbf16> to vector<128x128xbf16>
    %cst_46 = arith.constant dense<0.000000e+00> : vector<256x128xf32>
    %101 = tpu.matmul %98, %100, %cst_46 {dimension_numbers = #tpu.dot_dimension_numbers<[1], [0], [0], [1], [0, 0, 1, 1], [], []>} : vector<256x128xbf16>, vector<128x128xbf16>, vector<256x128xf32> -> vector<256x128xf32>
    %102 = arith.addf %96, %101 : vector<256x128xf32>
    %c0_47 = arith.constant 0 : index
    %c0_48 = arith.constant 0 : index
    %103 = vector.load %arg4[%c0_47, %c0_48] : memref<1x128xf32, #tpu.memory_space<vmem>>, vector<1x128xf32>
    %104 = vector.broadcast %103 : vector<1x128xf32> to vector<256x128xf32>
    %105 = arith.addf %102, %104 : vector<256x128xf32>
    %106 = vector.shape_cast %105 : vector<256x128xf32> to vector<1x16x16x128xf32>
    %107 = arith.truncf %106 : vector<1x16x16x128xf32> to vector<1x16x16x128xbf16>
    %c0_49 = arith.constant 0 : index
    %c0_50 = arith.constant 0 : index
    %c0_51 = arith.constant 0 : index
    %c0_52 = arith.constant 0 : index
    %108 = vector.load %arg8[%c0_49, %c0_50, %c0_51, %c0_52] : memref<1x16x16x128xbf16, #tpu.memory_space<vmem>>, vector<1x16x16x128xbf16>
    tpu.vector_store %arg8[%c0_49, %c0_50, %c0_51, %c0_52], %107 {strides = array<i32>} : memref<1x16x16x128xbf16, #tpu.memory_space<vmem>>, vector<1x16x16x128xbf16>,
    %cst_53 = arith.constant dense<0.000000e+00> : vector<128xf32>
    %109 = vector.multi_reduction <add>, %105, %cst_53 [0] : vector<256x128xf32> to vector<128xf32>
    %110 = vector.shape_cast %109 : vector<128xf32> to vector<1x128xf32>
    %111 = arith.mulf %105, %105 : vector<256x128xf32>
    %cst_54 = arith.constant dense<0.000000e+00> : vector<128xf32>
    %112 = vector.multi_reduction <add>, %111, %cst_54 [0] : vector<256x128xf32> to vector<128xf32>
    %113 = vector.shape_cast %112 : vector<128xf32> to vector<1x128xf32>
    %114 = tpu.concatenate %110, %113 in 0 : vector<1x128xf32>, vector<1x128xf32> -> vector<2x128xf32>
    %115 = vector.shape_cast %114 : vector<2x128xf32> to vector<1x1x2x128xf32>
    %c0_55 = arith.constant 0 : index
    %c0_56 = arith.constant 0 : index
    %c0_57 = arith.constant 0 : index
    %c0_58 = arith.constant 0 : index
    %116 = vector.load %arg9[%c0_55, %c0_56, %c0_57, %c0_58] : memref<1x1x2x128xf32, #tpu.memory_space<vmem>>, vector<1x1x2x128xf32>
    tpu.vector_store %arg9[%c0_55, %c0_56, %c0_57, %c0_58], %115 {strides = array<i32>} : memref<1x1x2x128xf32, #tpu.memory_space<vmem>>, vector<1x1x2x128xf32>,
    return
  }
  func.func @transform_1(%arg0: i32, %arg1: i32) -> (i32, i32, i32) {
    %c0_i32 = arith.constant 0 : i32
    %c0_i32_0 = arith.constant 0 : i32
    %c0_i32_1 = arith.constant 0 : i32
    %c0_i32_2 = arith.constant 0 : i32
    return %c0_i32, %c0_i32_0, %c0_i32_1 : i32, i32, i32
  }
  func.func @transform_2(%arg0: i32, %arg1: i32) -> (i32, i32) {
    %c0_i32 = arith.constant 0 : i32
    %c0_i32_0 = arith.constant 0 : i32
    %c0_i32_1 = arith.constant 0 : i32
    return %c0_i32, %c0_i32_0 : i32, i32
  }
  func.func @transform_3(%arg0: i32, %arg1: i32) -> (i32, i32) {
    %c0_i32 = arith.constant 0 : i32
    %c0_i32_0 = arith.constant 0 : i32
    %c0_i32_1 = arith.constant 0 : i32
    return %c0_i32, %c0_i32_0 : i32, i32
  }
  func.func @transform_4(%arg0: i32, %arg1: i32) -> (i32, i32) {
    %c0_i32 = arith.constant 0 : i32
    %c0_i32_0 = arith.constant 0 : i32
    %c0_i32_1 = arith.constant 0 : i32
    return %c0_i32, %c0_i32_0 : i32, i32
  }
  func.func @transform_5(%arg0: i32, %arg1: i32) -> (i32, i32) {
    %c0_i32 = arith.constant 0 : i32
    %c0_i32_0 = arith.constant 0 : i32
    %c0_i32_1 = arith.constant 0 : i32
    return %c0_i32, %c0_i32_0 : i32, i32
  }
  func.func @transform_6(%arg0: i32, %arg1: i32) -> (i32, i32, i32, i32) {
    %c0_i32 = arith.constant 0 : i32
    %c0_i32_0 = arith.constant 0 : i32
    %c0_i32_1 = arith.constant 0 : i32
    return %arg0, %arg1, %c0_i32, %c0_i32_0 : i32, i32, i32, i32
  }
  func.func @transform_7(%arg0: i32, %arg1: i32) -> (i32, i32, i32, i32) {
    %c0_i32 = arith.constant 0 : i32
    %c0_i32_0 = arith.constant 0 : i32
    %c0_i32_1 = arith.constant 0 : i32
    return %arg0, %arg1, %c0_i32, %c0_i32_0 : i32, i32, i32, i32
  }
}

</mosaic_0001>

<bundles_post_ra>
// kernel: tile.6
= control target key start
LH: loop header
LB: loop body
LE: loop exit
PB: predicated region body
PF: predicated region fallthrough
CT: control target
= control target key end

     0   :  { %s22_s0 = inlined_call_operand.vmem [shape: f32[4], index: 0, kind: input, shape index: {}]   ;;  %s23_s1 = inlined_call_operand.vmem [shape: f32[4,4], index: 1, kind: output, shape index: {}]  }
   0x1   :  { %v4_v0 = vld [vmem:[%s22_s0] ss:$0 sm:$0xff] }
   0x2   :  { %5 = vst [vmem:[%s23_s1] sm:$0xf] %v4_v0 }

// kernel: tile.7
= control target key start
LH: loop header
LB: loop body
LE: loop exit
PB: predicated region body
PF: predicated region fallthrough
CT: control target
= control target key end

     0   :  { %s37_s8 = smov 4   ;;  %s38_s9 = smov 8   ;;  %vm7_vm0 = vcmask 31744   ;;  %vm13_vm1 = vcmask 130144   ;;  %vm19_vm2 = vcmask 97344   ;;  %vm25_vm3 = vcmask 64544   ;;  %s55_s0 = inlined_call_operand.vmem [shape: f32[4,4], index: 0, kind: input, shape index: {}]   ;;  %s56_s1 = inlined_call_operand.vmem [shape: f32[1,16], index: 1, kind: output, shape index: {}]  }
   0x1   :  { %v4_v0 = vld [vmem:[%s55_s0] sm:$0xf]  ;;  %s36_s0 = smov 12  }
   0x2   :  { %5 = vst [vmem:[#allocation1] sm:$0xf] %v4_v0 }
   0x9   :  { %v10_v1 = vld [vmem:[#allocation1 + $0x3] sm:$0x1]   ;;  %v22_v2 = vld [vmem:[#allocation1 + $0x1] sm:$0x1]   ;;  %v16_v3 = vld [vmem:[#allocation1 + $0x2] sm:$0x1]  }
   0xa   :  { %11 = vrot.lane.b32.xlu0 %v10_v1, %s36_s0  ;;  %23 = vrot.lane.b32.xlu1 %v22_v2, %s37_s8  ;;  %v6_v4 = vld [vmem:[#allocation1] sm:$0x1]  }
   0xb   :  { %8 = vst.msk [vmem:[#allocation0] sm:$0x1] %vm7_vm0, %v6_v4  }
  0x12   :  { %17 = vrot.lane.b32.xlu0 %v16_v3, %s38_s9 }
  0x7c   :  { %v12_v5 = vpop.permute.xlu0 %11   ;;  %v24_v6 = vpop.permute.xlu1 %23  }
  0x7d   :  { %14 = vst.msk [vmem:[#allocation0] sm:$0x1] %vm13_vm1, %v12_v5  }
  0x84   :  { %v18_v7 = vpop.permute.xlu0 %17  }
  0x85   :  { %20 = vst.msk [vmem:[#allocation0] sm:$0x1] %vm19_vm2, %v18_v7  }
  0x86   :  { %26 = vst.msk [vmem:[#allocation0] sm:$0x1] %vm25_vm3, %v24_v6  }
  0x8d   :  { %v29_v8 = vld [vmem:[#allocation0] sm:$0x1] }
  0x8e   :  { %32 = vst [vmem:[%s56_s1] sm:$0x1] %v29_v8 }

// kernel: squeeze.6
= control target key start
LH: loop header
LB: loop body
LE: loop exit
PB: predicated region body
PF: predicated region fallthrough
CT: control target
= control target key end

     0   :  { %s37_s8 = smov 116   ;;  %s38_s9 = smov 120   ;;  %vm7_vm0 = vcmask 31744   ;;  %s55_s0 = inlined_call_operand.vmem [shape: f32[16], index: 0, kind: input, shape index: {}]   ;;  %s56_s1 = inlined_call_operand.vmem [shape: f32[4,4], index: 1, kind: output, shape index: {}]  }
   0x1   :  { %v4_v0 = vld [vmem:[%s55_s0] sm:$0x1]  ;;  %s36_s0 = smov 124  }
   0x2   :  { %5 = vst [vmem:[#allocation1] sm:$0x1] %v4_v0 }
   0x9   :  { %v9_v1 = vld [vmem:[#allocation1] sm:$0x1]  }
   0xa   :  { %v21_v2 = vld [vmem:[#allocation1] sm:$0x1]   ;;  %10 = vrot.lane.b32.xlu0 %v9_v1, %s36_s0 }
   0xb   :  { %22 = vrot.lane.b32.xlu1 %v21_v2, %s37_s8  ;;  %v15_v3 = vld [vmem:[#allocation1] sm:$0x1]  }
   0xc   :  { %v6_v4 = vld [vmem:[#allocation1] sm:$0x1]  }
   0xd   :  { %8 = vst.msk [vmem:[#allocation0] sm:$0x1] %vm7_vm0, %v6_v4  }
  0x12   :  { %16 = vrot.lane.b32.xlu0 %v15_v3, %s38_s9 }
  0x7c   :  { %v11_v5 = vpop.permute.xlu0 %10  }
  0x7d   :  { %v23_v6 = vpop.permute.xlu1 %22   ;;  %14 = vst.msk [vmem:[#allocation0 + $0x1] sm:$0x1] %vm7_vm0, %v11_v5  }
  0x7e   :  { %26 = vst.msk [vmem:[#allocation0 + $0x3] sm:$0x1] %vm7_vm0, %v23_v6  }
  0x84   :  { %v17_v7 = vpop.permute.xlu0 %16  }
  0x85   :  { %20 = vst.msk [vmem:[#allocation0 + $0x2] sm:$0x1] %vm7_vm0, %v17_v7  }
  0x8c   :  { %v29_v8 = vld [vmem:[#allocation0] sm:$0xf] }
  0x8d   :  { %32 = vst [vmem:[%s56_s1] sm:$0xf] %v29_v8 }

// kernel: unet_up_block.4
= control target key start
LH: loop header
LB: loop body
LE: loop exit
PB: predicated region body
PF: predicated region fallthrough
CT: control target
= control target key end

     0   :  { %s678_s15 = smov 0   ;;  %s744_s0 = inlined_call_operand.vmem [shape: bf16[128,128], index: 0, kind: input, shape index: {}]   ;;  %s745_s1 = inlined_call_operand.vmem [shape: bf16[128,128], index: 1, kind: input, shape index: {}]   ;;  %s746_s2 = inlined_call_operand.vmem [shape: f32[1,128], index: 2, kind: input, shape index: {}]   ;;  %s747_s3 = inlined_call_operand.vmem [shape: bf16[128,128], index: 3, kind: output, shape index: {0}]   ;;  %s748_s4 = inlined_call_operand.vmem [shape: f32[2,2,128], index: 4, kind: output, shape index: {1}]  }
   0x1 LB: > { %s684_s16 = sadd.s32 4294967295, %s651_s15   ;;  %p520_p0 = scmp.ge.s32.totalorder %s651_s15, 1  ;;  %s651_s15 = sphi %s678_s15, %s15_s15  }
   0x2   : > { %p166_p1 = scmp.lt.s32.totalorder %s651_s15, 3 }
   0x4   : > { %p167_p2 = pnand %p520_p0, %p166_p1 }
   0x5   : > { %s521_s25 = sshll.u32 (!%p167_p2), %s684_s16, 3  ;;  %s574_s12 = sshll.u32 (!%p167_p2), %s684_s16, 6 }
   0x6   : > { %170 = sbr.rel (%p167_p2) target bundleno = 210 (0xd2), region = 32  ;;  %p197_p3 = scmp.lt.s32.totalorder (!%p167_p2), %s521_s25, 15 }
   0x7   : > { %p208_p4 = scmp.lt.s32.totalorder (!%p167_p2), %s684_s16, 1 }
   0xb   : > { %v588_v0 = vld [vmem:[%s745_s1 + $0x38] sm:$0xff]  ;;  %v587_v1 = vld [vmem:[%s745_s1 + $0x30] sm:$0xff]  ;;  %v586_v2 = vld [vmem:[%s745_s1 + $0x28] sm:$0xff]  ;;  %s750_s25 = smov (!%p197_p3, %s521_s25), 15  ;;  %v358_v12 = vlaneseq  ;;  %v367_v14 = vstv %s574_s12  ;;  %s752_s16 = smov (!%p208_p4, %s684_s16), 1  ;;  %vm426_vm8 = vcmask 1040384  }
   0xc   : > { %312 = vmatpush.bf16.msra.mxu0 %v588_v0  ;;  %612 = vmatpush.bf16.msra.mxu1 %v588_v0  ;;  %v585_v3 = vld [vmem:[%s745_s1 + $0x20] sm:$0xff]  ;;  %v584_v4 = vld [vmem:[%s745_s1 + $0x18] sm:$0xff]  ;;  %v583_v5 = vld [vmem:[%s745_s1 + $0x10] sm:$0xff]  ;;  %s522_s6 = sshll.u32 %s750_s25, 2  ;;  %s525_s20 = sshll.u32 %s752_s16, 1 }
   0xd   : > { %613 = vmatpush.bf16.msra.mxu2 %v588_v0  ;;  %614 = vmatpush.bf16.msra.mxu3 %v588_v0  ;;  %v582_v6 = vld [vmem:[%s745_s1 + $0x8] sm:$0xff]  ;;  %v581_v7 = vld [vmem:[%s745_s1] sm:$0xff]  ;;  %s200_s11 = scalar_lea.vmem %s744_s0, %s522_s6  ;;  %v359_v13 = vshrl.u32 %v358_v12, 7  ;;  %s730_s19 = scalar_lea.vmem %s747_s3, %s522_s6 }
   0xe   : > { %v577_v8 = vld [vmem:[%s200_s11] sm:$0xff]  ;;  %v578_v9 = vld [vmem:[%s200_s11 + $0x8] sm:$0xff]  ;;  %v579_v10 = vld [vmem:[%s200_s11 + $0x10] sm:$0xff]  ;;  %s211_s23 = scalar_lea.vmem %s748_s4, %s525_s20 }
   0xf   : > { %v580_v11 = vld [vmem:[%s200_s11 + $0x18] sm:$0xff]  ;;  %v644_v15 = vld [vmem:[%s746_s2] ss:$0 sm:$0xff]  ;;  %v361_v18 = vadd.s32 16, %v359_v13  ;;  %v360_v19 = vadd.s32 8, %v359_v13  ;;  %v368_v20 = vadd.s32 %v367_v14, %v359_v13  ;;  %v362_v21 = vadd.s32 24, %v359_v13 }
  0x10   : > { %313 = vmatpush.bf16.msra.mxu0 %v587_v1  ;;  %615 = vmatpush.bf16.msra.mxu1 %v587_v1  ;;  %v363_v22 = vadd.s32 32, %v359_v13  ;;  %v365_v28 = vadd.s32 48, %v359_v13  ;;  %v364_v29 = vadd.s32 40, %v359_v13  ;;  %v366_v38 = vadd.s32 56, %v359_v13 }
  0x11   : > { %616 = vmatpush.bf16.msra.mxu2 %v587_v1  ;;  %617 = vmatpush.bf16.msra.mxu3 %v587_v1  ;;  %v370_v24 = vadd.s32 %v367_v14, %v361_v18  ;;  %v369_v25 = vadd.s32 %v367_v14, %v360_v19  ;;  %vm376_vm0 = vcmp.lt.s32.totalorder %v368_v20, 128  ;;  %v371_v26 = vadd.s32 %v367_v14, %v362_v21 }
  0x12   : > { %v372_v27 = vadd.s32 %v367_v14, %v363_v22  ;;  %v374_v40 = vadd.s32 %v367_v14, %v365_v28  ;;  %v373_v41 = vadd.s32 %v367_v14, %v364_v29  ;;  %v375_v50 = vadd.s32 %v367_v14, %v366_v38 }
  0x13   : > { %vm378_vm1 = vcmp.lt.s32.totalorder %v370_v24, 128  ;;  %vm377_vm2 = vcmp.lt.s32.totalorder %v369_v25, 128  ;;  %vm379_vm3 = vcmp.lt.s32.totalorder %v371_v26, 128 }
  0x14   : > { %314 = vmatpush.bf16.msra.mxu0 %v586_v2  ;;  %618 = vmatpush.bf16.msra.mxu1 %v586_v2  ;;  %vm380_vm4 = vcmp.lt.s32.totalorder %v372_v27, 128  ;;  %vm382_vm5 = vcmp.lt.s32.totalorder %v374_v40, 128  ;;  %vm381_vm6 = vcmp.lt.s32.totalorder %v373_v41, 128  ;;  %vm383_vm7 = vcmp.lt.s32.totalorder %v375_v50, 128 }
  0x15   : > { %619 = vmatpush.bf16.msra.mxu2 %v586_v2  ;;  %620 = vmatpush.bf16.msra.mxu3 %v586_v2 }
  0x18   : > { %315 = vmatpush.bf16.msra.mxu0 %v585_v3  ;;  %621 = vmatpush.bf16.msra.mxu1 %v585_v3 }
  0x19   : > { %622 = vmatpush.bf16.msra.mxu2 %v585_v3  ;;  %623 = vmatpush.bf16.msra.mxu3 %v585_v3 }
  0x1c   : > { %316 = vmatpush.bf16.msra.mxu0 %v584_v4  ;;  %624 = vmatpush.bf16.msra.mxu1 %v584_v4 }
  0x1d   : > { %625 = vmatpush.bf16.msra.mxu2 %v584_v4  ;;  %626 = vmatpush.bf16.msra.mxu3 %v584_v4 }
  0x20   : > { %317 = vmatpush.bf16.msra.mxu0 %v583_v5  ;;  %627 = vmatpush.bf16.msra.mxu1 %v583_v5 }
  0x21   : > { %628 = vmatpush.bf16.msra.mxu2 %v583_v5  ;;  %629 = vmatpush.bf16.msra.mxu3 %v583_v5 }
  0x24   : > { %318 = vmatpush.bf16.msra.mxu0 %v582_v6  ;;  %630 = vmatpush.bf16.msra.mxu1 %v582_v6 }
  0x25   : > { %631 = vmatpush.bf16.msra.mxu2 %v582_v6  ;;  %632 = vmatpush.bf16.msra.mxu3 %v582_v6 }
  0x28   : > { %319 = vmatpush.bf16.msra.mxu0 %v581_v7  ;;  %633 = vmatpush.bf16.msra.mxu1 %v581_v7 }
  0x29   : > { %634 = vmatpush.bf16.msra.mxu2 %v581_v7  ;;  %635 = vmatpush.bf16.msra.mxu3 %v581_v7 }
  0x2b   : > { %320 = vmatmul.bf16.vlgmr.msra.gmra.mxu0 %v577_v8  ;;  %325 = vmatmul.bf16.vlgmr.msra.gmra.mxu1 %v578_v9 }
  0x2c   : > { %330 = vmatmul.bf16.vlgmr.msra.gmra.mxu2 %v579_v10  ;;  %335 = vmatmul.bf16.vlgmr.msra.gmra.mxu3 %v580_v11 }
  0xa8   : > { %v321_v16 = vpop.f32.mrf.mxu0  ;;  %v326_v17 = vpop.f32.mrf.mxu1 }
  0xa9   : > { %v322_v23 = vadd.f32 %v644_v15, %v321_v16  ;;  %v327_v30 = vadd.f32 %v644_v15, %v326_v17 }
  0xab   : > { %v384_v33 = vsel %vm376_vm0, %v322_v23, 0.0  ;;  %v386_v43 = vsel %vm378_vm1, %v327_v30, 0.0 }
  0xac   : > { %v405_v42 = vmul.f32 %v384_v33, %v384_v33  ;;  %v407_v51 = vmul.f32 %v386_v43, %v386_v43 }
  0xaf   : > { %v331_v31 = vpop.f32.mrf.mxu2  ;;  %v336_v32 = vpop.f32.mrf.mxu3 }
  0xb0   : > { %v323_v34 = vpop.f32.mrf.mxu0  ;;  %v328_v35 = vpop.f32.mrf.mxu1  ;;  %v332_v39 = vadd.f32 %v644_v15, %v331_v31  ;;  %v337_v55 = vadd.f32 %v644_v15, %v336_v32 }
  0xb1   : > { %v324_v36 = vadd.f32 %v644_v15, %v323_v34  ;;  %v329_v37 = vadd.f32 %v644_v15, %v328_v35 }
  0xb2   : > { %v388_v52 = vsel %vm380_vm4, %v332_v39, 0.0  ;;  %v390_v4 = vsel %vm382_vm5, %v337_v55, 0.0 }
  0xb3   : > { %v592_v44 = vpack.c.bf16 %v324_v36, %v322_v23  ;;  %v385_v45 = vsel %vm377_vm2, %v324_v36, 0.0  ;;  %v597_v48 = vpack.c.bf16 %v329_v37, %v327_v30  ;;  %v387_v49 = vsel %vm379_vm3, %v329_v37, 0.0 }
  0xb4   : > { %v392_v46 = vadd.f32 %v385_v45, %v384_v33  ;;  %v406_v47 = vmul.f32 %v385_v45, %v385_v45  ;;  %v408_v56 = vmul.f32 %v387_v49, %v387_v49  ;;  %v409_v63 = vmul.f32 %v388_v52, %v388_v52 }
  0xb5   : > { %593 = vst [vmem:[%s730_s19] sm:$0xff] %v592_v44   ;;  %v411_v10 = vmul.f32 %v390_v4, %v390_v4 }
  0xb6   : > { %v413_v53 = vadd.f32 %v406_v47, %v405_v42  ;;  %609 = vst [vmem:[%s730_s19 + $0x8] sm:$0xff] %v597_v48   ;;  %v393_v54 = vadd.f32 %v392_v46, %v386_v43 }
  0xb7   : > { %v333_v57 = vpop.f32.mrf.mxu2  ;;  %v338_v58 = vpop.f32.mrf.mxu3 }
  0xb8   : > { %v394_v59 = vadd.f32 %v393_v54, %v387_v49  ;;  %v414_v60 = vadd.f32 %v413_v53, %v407_v51  ;;  %v334_v61 = vadd.f32 %v644_v15, %v333_v57  ;;  %v339_v62 = vadd.f32 %v644_v15, %v338_v58 }
  0xba   : > { %v415_v0 = vadd.f32 %v414_v60, %v408_v56  ;;  %v602_v1 = vpack.c.bf16 %v334_v61, %v332_v39  ;;  %v389_v2 = vsel %vm381_vm6, %v334_v61, 0.0  ;;  %v395_v3 = vadd.f32 %v394_v59, %v388_v52 }
  0xbb   : > { %v607_v5 = vpack.c.bf16 %v339_v62, %v337_v55  ;;  %v410_v7 = vmul.f32 %v389_v2, %v389_v2  ;;  %v391_v9 = vsel %vm383_vm7, %v339_v62, 0.0 }
  0xbc   : > { %610 = vst [vmem:[%s730_s19 + $0x10] sm:$0xff] %v602_v1   ;;  %v396_v6 = vadd.f32 %v395_v3, %v389_v2  ;;  %v416_v8 = vadd.f32 %v415_v0, %v409_v63  ;;  %v412_v14 = vmul.f32 %v391_v9, %v391_v9 }
  0xbd   : > { %611 = vst [vmem:[%s730_s19 + $0x18] sm:$0xff] %v607_v5  }
  0xbe   : > { %v417_v11 = vadd.f32 %v416_v8, %v410_v7  ;;  %v397_v12 = vadd.f32 %v396_v6, %v390_v4 }
  0xc0   : > { %v398_v13 = vadd.f32 %v397_v12, %v391_v9  ;;  %v418_v15 = vadd.f32 %v417_v11, %v411_v10 }
  0xc2   : > { %v399_v16 = vrot.slane %v398_v13, 4  ;;  %v419_v17 = vadd.f32 %v418_v15, %v412_v14 }
  0xc4   : > { %v400_v18 = vadd.f32 %v399_v16, %v398_v13  ;;  %v420_v19 = vrot.slane %v419_v17, 4 }
  0xc6   : > { %v401_v20 = vrot.slane %v400_v18, 2  ;;  %v421_v21 = vadd.f32 %v420_v19, %v419_v17 }
  0xc8   : > { %v402_v22 = vadd.f32 %v401_v20, %v400_v18  ;;  %v422_v23 = vrot.slane %v421_v21, 2 }
  0xca   : > { %v403_v24 = vrot.slane %v402_v22, 1  ;;  %v423_v25 = vadd.f32 %v422_v23, %v421_v21 }
  0xcc   : > { %v424_v26 = vrot.slane %v423_v25, 1  ;;  %v404_v27 = vadd.f32 %v403_v24, %v402_v22 }
  0xce   : > { %v425_v28 = vadd.f32 %v424_v26, %v423_v25 }
  0xd0   : > { %v427_v29 = vsel %vm426_vm8, %v404_v27, %v425_v28 }
  0xd1   : > { %428 = vst [vmem:[%s211_s23] sm:$0x3] %v427_v29 }
  0xd2 PF: > { %s15_s15 = sadd.s32 1, %s651_s15  }
  0xd3   : > { %p12_p5 = scmp.ge.s32.totalorder %s15_s15, 4  }
  0xd5   :  { %14 = sbr.rel (!%p12_p5) target bundleno = 1 (0x1), region = 74 }

// kernel: unet_up_block.7
= control target key start
LH: loop header
LB: loop body
LE: loop exit
PB: predicated region body
PF: predicated region fallthrough
CT: control target
= control target key end

     0   :  { %s558_s12 = smov 0   ;;  %s705_s0 = inlined_call_operand.vmem [shape: bf16[512,128], index: 0, kind: input, shape index: {}]   ;;  %s706_s1 = inlined_call_operand.vmem [shape: f32[1,128], index: 1, kind: input, shape index: {}]   ;;  %s707_s2 = inlined_call_operand.vmem [shape: f32[1,128], index: 2, kind: input, shape index: {}]   ;;  %s708_s3 = inlined_call_operand.vmem [shape: f32[512,128], index: 3, kind: output, shape index: {}]  }
   0x1 LB: > { %s430_s13 = sadd.s32 4294967295, %s536_s12   ;;  %p434_p0 = scmp.ge.s32.totalorder %s536_s12, 1  ;;  %s536_s12 = sphi %s558_s12, %s13_s12  }
   0x2   : > { %p138_p1 = scmp.lt.s32.totalorder %s536_s12, 3 }
   0x4   : > { %p139_p2 = pnand %p434_p0, %p138_p1 }
   0x5   : > { %s435_s14 = sshll.u32 (!%p139_p2), %s430_s13, 5 }
   0x6   : > { %142 = sbr.rel (%p139_p2) target bundleno = 55 (0x37), region = 32  ;;  %p163_p3 = scmp.lt.s32.totalorder (!%p139_p2), %s435_s14, 63 }
   0xb   : > { %s710_s14 = smov (!%p163_p3, %s435_s14), 63  ;;  %v577_v0 = vld [vmem:[%s706_s1] ss:$0 sm:$0xff] }
   0xc   : > { %s436_s15 = sshll.u32 %s710_s14, 2  ;;  %v585_v5 = vld [vmem:[%s707_s2] ss:$0 sm:$0xff]  ;;  %s438_s23 = sshll.u32 %s710_s14, 3 }
   0xd   : > { %s572_s18 = scalar_lea.vmem %s705_s0, %s436_s15  ;;  %s604_s26 = scalar_lea.vmem %s708_s3, %s438_s23 }
   0xe   : > { %v442_v1 = vld [vmem:[%s572_s18] sm:$0xff]   ;;  %v505_v2 = vld [vmem:[%s572_s18 + $0x8] sm:$0xff]   ;;  %v506_v3 = vld [vmem:[%s572_s18 + $0x10] sm:$0xff]  }
   0xf   : > { %v443_v4 = vunpack.c.l.bf16 %v442_v1  ;;  %v444_v6 = vunpack.c.h.bf16 %v442_v1  ;;  %v447_v7 = vunpack.c.l.bf16 %v505_v2  ;;  %v448_v8 = vunpack.c.h.bf16 %v505_v2  ;;  %v507_v9 = vld [vmem:[%s572_s18 + $0x18] sm:$0xff]   ;;  %v508_v30 = vld [vmem:[%s572_s18 + $0x20] sm:$0xff]   ;;  %v509_v31 = vld [vmem:[%s572_s18 + $0x28] sm:$0xff]  }
  0x10   : > { %v451_v10 = vunpack.c.l.bf16 %v506_v3  ;;  %v452_v11 = vunpack.c.h.bf16 %v506_v3  ;;  %v455_v12 = vunpack.c.l.bf16 %v507_v9  ;;  %v456_v13 = vunpack.c.h.bf16 %v507_v9  ;;  %v510_v36 = vld [vmem:[%s572_s18 + $0x30] sm:$0xff]   ;;  %v511_v37 = vld [vmem:[%s572_s18 + $0x38] sm:$0xff]   ;;  %v512_v3 = vld [vmem:[%s572_s18 + $0x40] sm:$0xff]  }
  0x11   : > { %v242_v14 = vmul.f32 %v577_v0, %v443_v4  ;;  %v243_v15 = vmul.f32 %v577_v0, %v444_v6  ;;  %v244_v16 = vmul.f32 %v577_v0, %v447_v7  ;;  %v245_v17 = vmul.f32 %v577_v0, %v448_v8  ;;  %v513_v4 = vld [vmem:[%s572_s18 + $0x48] sm:$0xff]   ;;  %v514_v6 = vld [vmem:[%s572_s18 + $0x50] sm:$0xff]  }
  0x12   : > { %v246_v18 = vmul.f32 %v577_v0, %v451_v10  ;;  %v247_v19 = vmul.f32 %v577_v0, %v452_v11  ;;  %v248_v20 = vmul.f32 %v577_v0, %v455_v12  ;;  %v249_v21 = vmul.f32 %v577_v0, %v456_v13  ;;  %v515_v11 = vld [vmem:[%s572_s18 + $0x58] sm:$0xff]  }
  0x13   : > { %v278_v22 = vadd.f32 %v585_v5, %v242_v14  ;;  %v279_v23 = vadd.f32 %v585_v5, %v243_v15  ;;  %v280_v24 = vadd.f32 %v585_v5, %v244_v16  ;;  %v281_v25 = vadd.f32 %v585_v5, %v245_v17 }
  0x14   : > { %v282_v26 = vadd.f32 %v585_v5, %v246_v18  ;;  %v283_v27 = vadd.f32 %v585_v5, %v247_v19  ;;  %v284_v28 = vadd.f32 %v585_v5, %v248_v20  ;;  %v285_v29 = vadd.f32 %v585_v5, %v249_v21 }
  0x15   : > { %v310_v32 = vmax.f32 %v278_v22, 0.0  ;;  %v311_v33 = vmax.f32 %v279_v23, 0.0  ;;  %v312_v34 = vmax.f32 %v280_v24, 0.0  ;;  %v313_v35 = vmax.f32 %v281_v25, 0.0 }
  0x16   : > { %v314_v38 = vmax.f32 %v282_v26, 0.0  ;;  %v315_v39 = vmax.f32 %v283_v27, 0.0  ;;  %v316_v40 = vmax.f32 %v284_v28, 0.0  ;;  %v317_v41 = vmax.f32 %v285_v29, 0.0 }
  0x17   : > { %342 = vst [vmem:[%s604_s26] sm:$0xff] %v310_v32  ;;  %v459_v42 = vunpack.c.l.bf16 %v508_v30  ;;  %v460_v43 = vunpack.c.h.bf16 %v508_v30  ;;  %v463_v44 = vunpack.c.l.bf16 %v509_v31  ;;  %v464_v45 = vunpack.c.h.bf16 %v509_v31 }
  0x18   : > { %343 = vst [vmem:[%s604_s26 + $0x8] sm:$0xff] %v311_v33  ;;  %v467_v46 = vunpack.c.l.bf16 %v510_v36  ;;  %v468_v47 = vunpack.c.h.bf16 %v510_v36  ;;  %v471_v48 = vunpack.c.l.bf16 %v511_v37  ;;  %v472_v49 = vunpack.c.h.bf16 %v511_v37 }
  0x19   : > { %344 = vst [vmem:[%s604_s26 + $0x10] sm:$0xff] %v312_v34  ;;  %v250_v50 = vmul.f32 %v577_v0, %v459_v42  ;;  %v251_v51 = vmul.f32 %v577_v0, %v460_v43  ;;  %v252_v52 = vmul.f32 %v577_v0, %v463_v44  ;;  %v253_v53 = vmul.f32 %v577_v0, %v464_v45  ;;  %v518_v42 = vld [vmem:[%s572_s18 + $0x70] sm:$0xff]  }
  0x1a   : > { %345 = vst [vmem:[%s604_s26 + $0x18] sm:$0xff] %v313_v35  ;;  %v254_v54 = vmul.f32 %v577_v0, %v467_v46  ;;  %v255_v55 = vmul.f32 %v577_v0, %v468_v47  ;;  %v256_v56 = vmul.f32 %v577_v0, %v471_v48  ;;  %v257_v57 = vmul.f32 %v577_v0, %v472_v49  ;;  %v519_v47 = vld [vmem:[%s572_s18 + $0x78] sm:$0xff]  }
  0x1b   : > { %346 = vst [vmem:[%s604_s26 + $0x20] sm:$0xff] %v314_v38  ;;  %v286_v58 = vadd.f32 %v585_v5, %v250_v50  ;;  %v287_v59 = vadd.f32 %v585_v5, %v251_v51  ;;  %v288_v60 = vadd.f32 %v585_v5, %v252_v52  ;;  %v289_v61 = vadd.f32 %v585_v5, %v253_v53 }
  0x1c   : > { %347 = vst [vmem:[%s604_s26 + $0x28] sm:$0xff] %v315_v39  ;;  %v290_v62 = vadd.f32 %v585_v5, %v254_v54  ;;  %v291_v63 = vadd.f32 %v585_v5, %v255_v55  ;;  %v292_v1 = vadd.f32 %v585_v5, %v256_v56  ;;  %v293_v2 = vadd.f32 %v585_v5, %v257_v57 }
  0x1d   : > { %348 = vst [vmem:[%s604_s26 + $0x30] sm:$0xff] %v316_v40  ;;  %v318_v7 = vmax.f32 %v286_v58, 0.0  ;;  %v319_v8 = vmax.f32 %v287_v59, 0.0  ;;  %v320_v9 = vmax.f32 %v288_v60, 0.0  ;;  %v321_v10 = vmax.f32 %v289_v61, 0.0  ;;  %v516_v40 = vld [vmem:[%s572_s18 + $0x60] sm:$0xff]  }
  0x1e   : > { %349 = vst [vmem:[%s604_s26 + $0x38] sm:$0xff] %v317_v41  ;;  %v322_v12 = vmax.f32 %v290_v62, 0.0  ;;  %v323_v13 = vmax.f32 %v291_v63, 0.0  ;;  %v324_v14 = vmax.f32 %v292_v1, 0.0  ;;  %v325_v15 = vmax.f32 %v293_v2, 0.0  ;;  %v517_v41 = vld [vmem:[%s572_s18 + $0x68] sm:$0xff]  }
  0x1f   : > { %350 = vst [vmem:[%s604_s26 + $0x40] sm:$0xff] %v318_v7  ;;  %v475_v16 = vunpack.c.l.bf16 %v512_v3  ;;  %v476_v17 = vunpack.c.h.bf16 %v512_v3  ;;  %v479_v18 = vunpack.c.l.bf16 %v513_v4  ;;  %v480_v19 = vunpack.c.h.bf16 %v513_v4 }
  0x20   : > { %351 = vst [vmem:[%s604_s26 + $0x48] sm:$0xff] %v319_v8  ;;  %v483_v20 = vunpack.c.l.bf16 %v514_v6  ;;  %v484_v21 = vunpack.c.h.bf16 %v514_v6  ;;  %v487_v22 = vunpack.c.l.bf16 %v515_v11  ;;  %v488_v23 = vunpack.c.h.bf16 %v515_v11 }
  0x21   : > { %352 = vst [vmem:[%s604_s26 + $0x50] sm:$0xff] %v320_v9  ;;  %v258_v24 = vmul.f32 %v577_v0, %v475_v16  ;;  %v259_v25 = vmul.f32 %v577_v0, %v476_v17  ;;  %v260_v26 = vmul.f32 %v577_v0, %v479_v18  ;;  %v261_v27 = vmul.f32 %v577_v0, %v480_v19 }
  0x22   : > { %353 = vst [vmem:[%s604_s26 + $0x58] sm:$0xff] %v321_v10  ;;  %v262_v28 = vmul.f32 %v577_v0, %v483_v20  ;;  %v263_v29 = vmul.f32 %v577_v0, %v484_v21  ;;  %v264_v30 = vmul.f32 %v577_v0, %v487_v22  ;;  %v265_v31 = vmul.f32 %v577_v0, %v488_v23 }
  0x23   : > { %354 = vst [vmem:[%s604_s26 + $0x60] sm:$0xff] %v322_v12  ;;  %v294_v32 = vadd.f32 %v585_v5, %v258_v24  ;;  %v295_v33 = vadd.f32 %v585_v5, %v259_v25  ;;  %v296_v34 = vadd.f32 %v585_v5, %v260_v26  ;;  %v297_v35 = vadd.f32 %v585_v5, %v261_v27 }
  0x24   : > { %355 = vst [vmem:[%s604_s26 + $0x68] sm:$0xff] %v323_v13  ;;  %v298_v36 = vadd.f32 %v585_v5, %v262_v28  ;;  %v299_v37 = vadd.f32 %v585_v5, %v263_v29  ;;  %v300_v38 = vadd.f32 %v585_v5, %v264_v30  ;;  %v301_v39 = vadd.f32 %v585_v5, %v265_v31 }
  0x25   : > { %356 = vst [vmem:[%s604_s26 + $0x70] sm:$0xff] %v324_v14  ;;  %v326_v43 = vmax.f32 %v294_v32, 0.0  ;;  %v327_v44 = vmax.f32 %v295_v33, 0.0  ;;  %v328_v45 = vmax.f32 %v296_v34, 0.0  ;;  %v329_v46 = vmax.f32 %v297_v35, 0.0 }
  0x26   : > { %357 = vst [vmem:[%s604_s26 + $0x78] sm:$0xff] %v325_v15  ;;  %v330_v48 = vmax.f32 %v298_v36, 0.0  ;;  %v331_v49 = vmax.f32 %v299_v37, 0.0  ;;  %v332_v50 = vmax.f32 %v300_v38, 0.0  ;;  %v333_v51 = vmax.f32 %v301_v39, 0.0 }
  0x27   : > { %358 = vst [vmem:[%s604_s26 + $0x80] sm:$0xff] %v326_v43  ;;  %v491_v52 = vunpack.c.l.bf16 %v516_v40  ;;  %v492_v53 = vunpack.c.h.bf16 %v516_v40  ;;  %v495_v54 = vunpack.c.l.bf16 %v517_v41  ;;  %v496_v55 = vunpack.c.h.bf16 %v517_v41 }
  0x28   : > { %359 = vst [vmem:[%s604_s26 + $0x88] sm:$0xff] %v327_v44  ;;  %v499_v56 = vunpack.c.l.bf16 %v518_v42  ;;  %v500_v57 = vunpack.c.h.bf16 %v518_v42  ;;  %v503_v58 = vunpack.c.l.bf16 %v519_v47  ;;  %v504_v59 = vunpack.c.h.bf16 %v519_v47 }
  0x29   : > { %360 = vst [vmem:[%s604_s26 + $0x90] sm:$0xff] %v328_v45  ;;  %v266_v60 = vmul.f32 %v577_v0, %v491_v52  ;;  %v267_v61 = vmul.f32 %v577_v0, %v492_v53  ;;  %v268_v62 = vmul.f32 %v577_v0, %v495_v54  ;;  %v269_v63 = vmul.f32 %v577_v0, %v496_v55 }
  0x2a   : > { %361 = vst [vmem:[%s604_s26 + $0x98] sm:$0xff] %v329_v46  ;;  %v270_v1 = vmul.f32 %v577_v0, %v499_v56  ;;  %v271_v2 = vmul.f32 %v577_v0, %v500_v57  ;;  %v272_v3 = vmul.f32 %v577_v0, %v503_v58  ;;  %v273_v4 = vmul.f32 %v577_v0, %v504_v59 }
  0x2b   : > { %362 = vst [vmem:[%s604_s26 + $0xa0] sm:$0xff] %v330_v48  ;;  %v302_v6 = vadd.f32 %v585_v5, %v266_v60  ;;  %v303_v7 = vadd.f32 %v585_v5, %v267_v61  ;;  %v304_v8 = vadd.f32 %v585_v5, %v268_v62  ;;  %v305_v9 = vadd.f32 %v585_v5, %v269_v63 }
  0x2c   : > { %363 = vst [vmem:[%s604_s26 + $0xa8] sm:$0xff] %v331_v49  ;;  %v306_v10 = vadd.f32 %v585_v5, %v270_v1  ;;  %v307_v11 = vadd.f32 %v585_v5, %v271_v2  ;;  %v308_v14 = vadd.f32 %v585_v5, %v272_v3  ;;  %v309_v16 = vadd.f32 %v585_v5, %v273_v4 }
  0x2d   : > { %364 = vst [vmem:[%s604_s26 + $0xb0] sm:$0xff] %v332_v50  ;;  %v334_v0 = vmax.f32 %v302_v6, 0.0  ;;  %v335_v12 = vmax.f32 %v303_v7, 0.0  ;;  %v336_v13 = vmax.f32 %v304_v8, 0.0  ;;  %v337_v15 = vmax.f32 %v305_v9, 0.0 }
  0x2e   : > { %365 = vst [vmem:[%s604_s26 + $0xb8] sm:$0xff] %v333_v51  ;;  %v338_v17 = vmax.f32 %v306_v10, 0.0  ;;  %v339_v18 = vmax.f32 %v307_v11, 0.0  ;;  %v340_v19 = vmax.f32 %v308_v14, 0.0  ;;  %v341_v20 = vmax.f32 %v309_v16, 0.0 }
  0x2f   : > { %366 = vst [vmem:[%s604_s26 + $0xc0] sm:$0xff] %v334_v0 }
  0x30   : > { %367 = vst [vmem:[%s604_s26 + $0xc8] sm:$0xff] %v335_v12 }
  0x31   : > { %368 = vst [vmem:[%s604_s26 + $0xd0] sm:$0xff] %v336_v13 }
  0x32   : > { %369 = vst [vmem:[%s604_s26 + $0xd8] sm:$0xff] %v337_v15 }
  0x33   : > { %370 = vst [vmem:[%s604_s26 + $0xe0] sm:$0xff] %v338_v17 }
  0x34   : > { %371 = vst [vmem:[%s604_s26 + $0xe8] sm:$0xff] %v339_v18 }
  0x35   : > { %372 = vst [vmem:[%s604_s26 + $0xf0] sm:$0xff] %v340_v19 }
  0x36   : > { %373 = vst [vmem:[%s604_s26 + $0xf8] sm:$0xff] %v341_v20 }
  0x37 PF: > { %s13_s12 = sadd.s32 1, %s536_s12  }
  0x38   : > { %p10_p4 = scmp.ge.s32.totalorder %s13_s12, 4  }
  0x3a   :  { %12 = sbr.rel (!%p10_p4) target bundleno = 1 (0x1), region = 62 }

// kernel: unet_up_block.5
= control target key start
LH: loop header
LB: loop body
LE: loop exit
PB: predicated region body
PF: predicated region fallthrough
CT: control target
= control target key end

     0   :  { %s4613_s24 = smov 0   ;;  %s4615_s25 = smov 0   ;;  %s6188_s0 = inlined_call_operand.vmem [shape: bf16[2,18,32,128], index: 0, kind: input, shape index: {}]   ;;  %s6189_s1 = inlined_call_operand.vmem [shape: bf16[9,128,128], index: 1, kind: input, shape index: {}]   ;;  %s6190_s2 = inlined_call_operand.vmem [shape: f32[1,128], index: 2, kind: input, shape index: {}]   ;;  %s6191_s3 = inlined_call_operand.vmem [shape: f32[1,128], index: 3, kind: input, shape index: {}]   ;;  %s6192_s4 = inlined_call_operand.vmem [shape: f32[1,128], index: 4, kind: input, shape index: {}]   ;;  %s6193_s5 = inlined_call_operand.vmem [shape: f32[1,128], index: 5, kind: input, shape index: {}]   ;;  %s6194_s6 = inlined_call_operand.vmem [shape: bf16[2,16,16,128], index: 6, kind: output, shape index: {0}]   ;;  %s6195_s7 = inlined_call_operand.vmem [shape: f32[2,1,2,128], index: 7, kind: output, shape index: {1}]  }
   0x1   :  { %s4617_s26 = smov 0  }
   0x2 LB: > { %s30_s27 = sadd.s32 1, %s4565_s25  ;;  %p3797_p0 = scmp.ge.s32.totalorder %s4569_s26, 1  ;;  %s4569_s26 = sphi %s4617_s26, %s18_s26   ;;  %s4565_s25 = sphi %s4615_s25, %s6398_s25   ;;  %s4561_s24 = sphi %s4613_s24, %s6397_s24  }
   0x3   : > { %p32_p1 = scmp.ge.s32.totalorder %s30_s27, 2  ;;  %p222_p2 = scmp.lt.s32.totalorder %s4569_s26, 3 }
   0x5   : > { %s6400_s27 = smov (%p32_p1, %s30_s27), 0  ;;  %p223_p3 = pnand %p3797_p0, %p222_p2 }
   0x7   : > { %226 = sbr.rel (%p223_p3) target bundleno = 883 (0x373), region = 40 }
   0xc   : > { %p260_p4 = scmp.lt.s32.totalorder %s4561_s24, 1  ;;  %s4240_s28 = smul.u32 288, %s4561_s24 }
   0xe   : > { %s6402_s24 = smov (!%p260_p4, %s4561_s24), 1  ;;  %s4634_s8 = scalar_lea.vmem %s6188_s0, %s4240_s28 }
   0xf   : > { %s4239_s9 = sshll.u32 %s6402_s24, 7  ;;  %s3800_s10 = sshll.u32 %s6402_s24, 1  ;;  %v297_v0 = vld [vmem:[%s4634_s8 + $0x10] sm:$0xff]  ;;  %v299_v1 = vld [vmem:[%s4634_s8 + $0x18] sm:$0xff]  ;;  %v301_v2 = vld [vmem:[%s4634_s8 + $0x20] sm:$0xff] }
  0x10   : > { %s4640_s13 = scalar_lea.vmem %s6194_s6, %s4239_s9  ;;  %s4645_s16 = scalar_lea.vmem %s6195_s7, %s3800_s10  ;;  %298 = vst [vmem:[#allocation2 + $0x10] sm:$0xff] %v297_v0  ;;  %v303_v3 = vld [vmem:[%s4634_s8 + $0x28] sm:$0xff]  ;;  %v305_v4 = vld [vmem:[%s4634_s8 + $0x30] sm:$0xff]  ;;  %v307_v5 = vld [vmem:[%s4634_s8 + $0x38] sm:$0xff] }
  0x11   : > { %300 = vst [vmem:[#allocation2 + $0x48] sm:$0xff] %v299_v1  ;;  %v309_v6 = vld [vmem:[%s4634_s8 + $0x40] sm:$0xff]  ;;  %v311_v7 = vld [vmem:[%s4634_s8 + $0x48] sm:$0xff]  ;;  %v313_v8 = vld [vmem:[%s4634_s8 + $0x50] sm:$0xff] }
  0x12   : > { %302 = vst [vmem:[#allocation2 + $0x108] sm:$0xff] %v301_v2  ;;  %v315_v9 = vld [vmem:[%s4634_s8 + $0x58] sm:$0xff]  ;;  %v317_v10 = vld [vmem:[%s4634_s8 + $0x60] sm:$0xff]  ;;  %v319_v11 = vld [vmem:[%s4634_s8 + $0x68] sm:$0xff] }
  0x13   : > { %304 = vst [vmem:[#allocation2 + $0x68] sm:$0xff] %v303_v3  ;;  %v321_v12 = vld [vmem:[%s4634_s8 + $0x70] sm:$0xff]  ;;  %v323_v13 = vld [vmem:[%s4634_s8 + $0x78] sm:$0xff]  ;;  %v325_v14 = vld [vmem:[%s4634_s8 + $0x80] sm:$0xff] }
  0x14   : > { %306 = vst [vmem:[#allocation2 + $0x30] sm:$0xff] %v305_v4  ;;  %v327_v15 = vld [vmem:[%s4634_s8 + $0x88] sm:$0xff]  ;;  %v329_v16 = vld [vmem:[%s4634_s8 + $0x90] sm:$0xff]  ;;  %v331_v17 = vld [vmem:[%s4634_s8 + $0x98] sm:$0xff] }
  0x15   : > { %308 = vst [vmem:[#allocation2 + $0x18] sm:$0xff] %v307_v5  ;;  %v333_v18 = vld [vmem:[%s4634_s8 + $0xa0] sm:$0xff]  ;;  %v335_v19 = vld [vmem:[%s4634_s8 + $0xa8] sm:$0xff]  ;;  %v337_v20 = vld [vmem:[%s4634_s8 + $0xb0] sm:$0xff] }
  0x16   : > { %310 = vst [vmem:[#allocation2 + $0x80] sm:$0xff] %v309_v6  ;;  %v339_v21 = vld [vmem:[%s4634_s8 + $0xb8] sm:$0xff]  ;;  %v341_v22 = vld [vmem:[%s4634_s8 + $0xc0] sm:$0xff]  ;;  %v343_v23 = vld [vmem:[%s4634_s8 + $0xc8] sm:$0xff] }
  0x17   : > { %312 = vst [vmem:[#allocation2 + $0x110] sm:$0xff] %v311_v7  ;;  %v345_v24 = vld [vmem:[%s4634_s8 + $0xd0] sm:$0xff]  ;;  %v347_v25 = vld [vmem:[%s4634_s8 + $0xd8] sm:$0xff]  ;;  %v349_v26 = vld [vmem:[%s4634_s8 + $0xe0] sm:$0xff] }
  0x18   : > { %314 = vst [vmem:[#allocation2 + $0x118] sm:$0xff] %v313_v8  ;;  %v351_v27 = vld [vmem:[%s4634_s8 + $0xe8] sm:$0xff]  ;;  %v353_v28 = vld [vmem:[%s4634_s8 + $0xf0] sm:$0xff]  ;;  %v355_v29 = vld [vmem:[%s4634_s8 + $0xf8] sm:$0xff] }
  0x19   : > { %316 = vst [vmem:[#allocation2 + $0x98] sm:$0xff] %v315_v9  ;;  %v357_v30 = vld [vmem:[%s4634_s8 + $0x100] sm:$0xff]  ;;  %v359_v31 = vld [vmem:[%s4634_s8 + $0x108] sm:$0xff] }
  0x1a   : > { %318 = vst [vmem:[#allocation2 + $0xf8] sm:$0xff] %v317_v10 }
  0x1b   : > { %320 = vst [vmem:[#allocation2 + $0x38] sm:$0xff] %v319_v11 }
  0x1c   : > { %322 = vst [vmem:[#allocation2 + $0x8] sm:$0xff] %v321_v12 }
  0x1d   : > { %324 = vst [vmem:[#allocation2 + $0x78] sm:$0xff] %v323_v13 }
  0x1e   : > { %326 = vst [vmem:[#allocation2 + $0x20] sm:$0xff] %v325_v14 }
  0x1f   : > { %328 = vst [vmem:[#allocation2 + $0xc8] sm:$0xff] %v327_v15 }
  0x20   : > { %330 = vst [vmem:[#allocation2 + $0x90] sm:$0xff] %v329_v16 }
  0x21   : > { %332 = vst [vmem:[#allocation2 + $0xa0] sm:$0xff] %v331_v17 }
  0x22   : > { %334 = vst [vmem:[#allocation2 + $0x70] sm:$0xff] %v333_v18 }
  0x23   : > { %336 = vst [vmem:[#allocation2 + $0x58] sm:$0xff] %v335_v19 }
  0x24   : > { %338 = vst [vmem:[#allocation2 + $0xe0] sm:$0xff] %v337_v20 }
  0x25   : > { %340 = vst [vmem:[#allocation2 + $0x60] sm:$0xff] %v339_v21 }
  0x26   : > { %342 = vst [vmem:[#allocation2 + $0xa8] sm:$0xff] %v341_v22 }
  0x27   : > { %344 = vst [vmem:[#allocation2 + $0x88] sm:$0xff] %v343_v23 }
  0x28   : > { %346 = vst [vmem:[#allocation2 + $0xd8] sm:$0xff] %v345_v24 }
  0x29   : > { %348 = vst [vmem:[#allocation2 + $0xc0] sm:$0xff] %v347_v25 }
  0x2a   : > { %350 = vst [vmem:[#allocation2 + $0x50] sm:$0xff] %v349_v26 }
  0x2b   : > { %352 = vst [vmem:[#allocation2 + $0xf0] sm:$0xff] %v351_v27 }
  0x2c   : > { %354 = vst [vmem:[#allocation2 + $0xb8] sm:$0xff] %v353_v28 }
  0x2d   : > { %356 = vst [vmem:[#allocation2 + $0x28] sm:$0xff] %v355_v29 }
  0x2e   : > { %358 = vst [vmem:[#allocation2 + $0x100] sm:$0xff] %v357_v30 }
  0x2f   : > { %360 = vst [vmem:[#allocation2] sm:$0xff] %v359_v31 }
  0x30   : > { %370 = vsyncadd [#allocation3], 4608 }
  0x31   : > { %4557 = dma.done.wait [#allocation3], 4608 }
  0x32   : > { %4558 = vsyncadd [#allocation3], 4294962688  ;;  %v731_v32 = vlaneseq  ;;  %v4256_v35 = vld [vmem:[%s6189_s1 + $0x78] sm:$0xff]  ;;  %v4255_v36 = vld [vmem:[%s6189_s1 + $0x70] sm:$0xff]  ;;  %v4571_v50 = vmov 0   ;;  %vm1881_vm7 = vcmask 1042432  }
  0x33   : > { %4488 = vmatpush.bf16.msra.mxu1 %v4256_v35  ;;  %4489 = vmatpush.bf16.msra.mxu2 %v4256_v35  ;;  %v4460_v37 = vld [vmem:[#allocation2 + $0x80] sm:$0xff]   ;;  %v390_v40 = vld [vmem:[#allocation2 + $0x110] sm:$0xf]  ;;  %v4708_v48 = vld [vmem:[#allocation2 + $0xc8] sm:$0xf]  ;;  %v4713_v51 = vrot.slane %v4571_v50, 4 }
  0x34   : > { %v4678_v33 = vshrl.u32 %v731_v32, 7  ;;  %4490 = vmatpush.bf16.msra.mxu3 %v4256_v35  ;;  %1543 = vmatpush.bf16.msra.mxu0 %v4256_v35  ;;  %v4327_v38 = vunpack.c.l.bf16 %v4460_v37  ;;  %v4328_v39 = vunpack.c.h.bf16 %v4460_v37  ;;  %v4694_v41 = vld [vmem:[%s6191_s3] ss:$0 sm:$0xff]  ;;  %v444_v42 = vunpack.c.l.bf16 %v390_v40  ;;  %v4710_v49 = vld [vmem:[#allocation2 + $0xa8] sm:$0xff]   ;;  %v4252_v23 = vld [vmem:[%s6189_s1 + $0x58] sm:$0xff] }
  0x35   : > { %v4699_v43 = vld [vmem:[%s6192_s4] ss:$0 sm:$0xff]  ;;  %v4254_v52 = vld [vmem:[%s6189_s1 + $0x68] sm:$0xff]  ;;  %v456_v60 = vunpack.c.l.bf16 %v4708_v48  ;;  %vm1027_vm3 = vsmask.f32 3328  ;;  %v4359_v0 = vunpack.c.l.bf16 %v4710_v49  ;;  %v4360_v10 = vunpack.c.h.bf16 %v4710_v49 }
  0x36   : > { %v4681_v34 = vadd.s32 16, %v4678_v33  ;;  %vm789_vm0 = vcmp.ge.s32.totalorder %v4678_v33, 1  ;;  %v654_v44 = vld [vmem:[%s6193_s5] sm:$0x1]  ;;  %v500_v45 = vmul.f32 %v4694_v41, %v4327_v38  ;;  %v501_v46 = vmul.f32 %v4694_v41, %v4328_v39  ;;  %v4729_v1 = vld [vmem:[#allocation2 + $0x88] sm:$0xf] }
  0x37   : > { %vm655_vm2 = vcmp.ne.f32.partialorder %v654_v44, 0.0  ;;  %v4706_v47 = vld [vmem:[#allocation2 + $0x20] sm:$0xff]   ;;  %4491 = vmatpush.bf16.msra.mxu1 %v4255_v36  ;;  %4492 = vmatpush.bf16.msra.mxu2 %v4255_v36  ;;  %v502_v53 = vmul.f32 %v4694_v41, %v444_v42  ;;  %vm1028_vm4 = vsmask.f32 7440  ;;  %v514_v5 = vmul.f32 %v4694_v41, %v456_v60  ;;  %v4251_v44 = vld [vmem:[%s6189_s1 + $0x50] sm:$0xff] }
  0x38   : > { %6264 = vst [vmem:[#allocation6_spill] sm:$0xff] %v4681_v34  ;;  %vm848_vm1 = vcmp.le.s32.totalorder %v4681_v34, 16  ;;  %v656_v54 = vsel %vm655_vm2, 1, %v4571_v50  ;;  %v4343_v55 = vunpack.c.l.bf16 %v4706_v47  ;;  %v4344_v56 = vunpack.c.h.bf16 %v4706_v47  ;;  %4493 = vmatpush.bf16.msra.mxu3 %v4255_v36  ;;  %1544 = vmatpush.bf16.msra.mxu0 %v4255_v36  ;;  %v4253_v6 = vld [vmem:[%s6189_s1 + $0x60] sm:$0xff]  ;;  %vm4789_vm6 = vmor %vm1027_vm3, %vm1028_vm4 }
  0x39   : > { %v558_v57 = vadd.f32 %v4699_v43, %v500_v45  ;;  %v559_v58 = vadd.f32 %v4699_v43, %v501_v46  ;;  %v657_v59 = vperm.slane %v656_v54, 0  ;;  %v560_v61 = vadd.f32 %v4699_v43, %v502_v53 }
  0x3a   : > { %v512_v62 = vmul.f32 %v4694_v41, %v4343_v55  ;;  %v513_v63 = vmul.f32 %v4694_v41, %v4344_v56  ;;  %v572_v13 = vadd.f32 %v4699_v43, %v514_v5  ;;  %v468_v14 = vunpack.c.l.bf16 %v4729_v1  ;;  %v4248_v1 = vld [vmem:[%s6189_s1 + $0x38] sm:$0xff] }
  0x3b   : > { %v612_v2 = vmax.f32 %v558_v57, 0.0  ;;  %v613_v3 = vmax.f32 %v559_v58, 0.0  ;;  %vm4731_vm5 = vcmp.eq.s32.totalorder %v657_v59, 1  ;;  %4494 = vmatpush.bf16.msra.mxu1 %v4254_v52  ;;  %4495 = vmatpush.bf16.msra.mxu2 %v4254_v52  ;;  %v614_v7 = vmax.f32 %v560_v61, 0.0 }
  0x3c   : > { %v570_v8 = vadd.f32 %v4699_v43, %v512_v62  ;;  %v571_v9 = vadd.f32 %v4699_v43, %v513_v63  ;;  %4496 = vmatpush.bf16.msra.mxu3 %v4254_v52  ;;  %1545 = vmatpush.bf16.msra.mxu0 %v4254_v52  ;;  %v626_v22 = vmax.f32 %v572_v13, 0.0  ;;  %vm1882_vm8 = vcmask 1046532  }
  0x3d   : > { %v671_v11 = vsel %vm4731_vm5, %v612_v2, %v4327_v38  ;;  %v672_v12 = vsel %vm4731_vm5, %v613_v3, %v4328_v39  ;;  %v673_v15 = vsel %vm4731_vm5, %v614_v7, %v444_v42  ;;  %v525_v2 = vmul.f32 %v4694_v41, %v4360_v10  ;;  %v4250_v3 = vld [vmem:[%s6189_s1 + $0x48] sm:$0xff]  ;;  %vm5464_vm9 = vmor %vm1881_vm7, %vm1882_vm8 }
  0x3e   : > { %v915_v16 = vsel %vm789_vm0, %v671_v11, 0.0  ;;  %v4752_v17 = vpack.c.bf16 %v672_v12, %v672_v12  ;;  %v624_v18 = vmax.f32 %v570_v8, 0.0  ;;  %v917_v19 = vsel %vm848_vm1, %v673_v15, 0.0 }
  0x3f   : > { %v4756_v20 = vpack.c.bf16 %v915_v16, %v915_v16  ;;  %v625_v21 = vmax.f32 %v571_v9, 0.0  ;;  %4497 = vmatpush.bf16.msra.mxu1 %v4253_v6  ;;  %4498 = vmatpush.bf16.msra.mxu2 %v4253_v6  ;;  %v4761_v24 = vpack.c.bf16 %v917_v19, %v917_v19  ;;  %v685_v31 = vsel %vm4731_vm5, %v626_v22, %v456_v60  ;;  %v4809_v9 = vld [vmem:[#allocation2 + $0x118] sm:$0xff]  }
  0x40   : > { %v1136_v25 = vshll.u32 %v4752_v17, 16  ;;  %v1140_v26 = vshrl.u32 %v4752_v17, 16  ;;  %v683_v27 = vsel %vm4731_vm5, %v624_v18, %v4343_v55  ;;  %4499 = vmatpush.bf16.msra.mxu3 %v4253_v6  ;;  %1546 = vmatpush.bf16.msra.mxu0 %v4253_v6  ;;  %v929_v40 = vsel %vm848_vm1, %v685_v31, 0.0 }
  0x41   : > { %v1127_v28 = vshrl.u32 %v4756_v20, 16  ;;  %v1130_v29 = vshll.u32 %v4756_v20, 16  ;;  %v684_v30 = vsel %vm4731_vm5, %v625_v21, %v4344_v56  ;;  %v1146_v36 = vshll.u32 %v4761_v24, 16 }
  0x42   : > { %v1138_v32 = vrot.slane %v1136_v25, 5  ;;  %v1142_v35 = vrot.slane %v1140_v26, 4  ;;  %v927_v37 = vsel %vm789_vm0, %v683_v27, 0.0  ;;  %v4783_v47 = vpack.c.bf16 %v684_v30, %v684_v30  ;;  %v4249_v27 = vld [vmem:[%s6189_s1 + $0x40] sm:$0xff] }
  0x43   : > { %v1129_v38 = vrot.slane %v1127_v28, 4  ;;  %v1132_v39 = vrot.slane %v1130_v29, 5  ;;  %v4778_v42 = vpack.c.bf16 %v927_v37, %v927_v37  ;;  %4500 = vmatpush.bf16.msra.mxu1 %v4252_v23  ;;  %4501 = vmatpush.bf16.msra.mxu2 %v4252_v23  ;;  %v1148_v46 = vrot.slane %v1146_v36, 5  ;;  %v4830_v37 = vld [vmem:[#allocation2 + $0x98] sm:$0xf] }
  0x44   : > { %v1143_v45 = vor.u32 %v1142_v35, %v1138_v32  ;;  %v4785_v48 = vpack.c.bf16 %v929_v40, %v929_v40  ;;  %4502 = vmatpush.bf16.msra.mxu3 %v4252_v23  ;;  %1547 = vmatpush.bf16.msra.mxu0 %v4252_v23  ;;  %v524_v56 = vmul.f32 %v4694_v41, %v4359_v0  ;;  %v1232_v58 = vshll.u32 %v4783_v47, 16 }
  0x45   : > { %v1133_v53 = vor.u32 %v1132_v39, %v1129_v38  ;;  %v1223_v54 = vshrl.u32 %v4778_v42, 16  ;;  %v1226_v55 = vshll.u32 %v4778_v42, 16  ;;  %v1236_v59 = vshrl.u32 %v4783_v47, 16 }
  0x46   : > { %v1144_v57 = vrot.slane %v1143_v45, 4  ;;  %v1242_v60 = vshll.u32 %v4785_v48, 16  ;;  %v1234_v6 = vrot.slane %v1232_v58, 5  ;;  %v526_v15 = vmul.f32 %v4694_v41, %v468_v14  ;;  %v4272_v45 = vld [vmem:[%s6189_s1 + $0xf8] sm:$0xff] }
  0x47   : > { %v1134_v61 = vrot.slane %v1133_v53, 4  ;;  %v1225_v62 = vrot.slane %v1223_v54, 4  ;;  %v1228_v63 = vrot.slane %v1226_v55, 5  ;;  %4503 = vmatpush.bf16.msra.mxu1 %v4251_v44  ;;  %4504 = vmatpush.bf16.msra.mxu2 %v4251_v44  ;;  %v1238_v7 = vrot.slane %v1236_v59, 4 }
  0x48   : > { %v1149_v5 = vsel %vm4789_vm6, %v1144_v57, %v1148_v46  ;;  %v1244_v8 = vrot.slane %v1242_v60, 5  ;;  %4505 = vmatpush.bf16.msra.mxu3 %v4251_v44  ;;  %1548 = vmatpush.bf16.msra.mxu0 %v4251_v44  ;;  %v582_v19 = vadd.f32 %v4699_v43, %v524_v56  ;;  %v583_v21 = vadd.f32 %v4699_v43, %v525_v2  ;;  %v4263_v2 = vld [vmem:[%s6189_s1 + $0xb0] sm:$0xff] }
  0x49   : > { %v1139_v11 = vsel %vm4789_vm6, %v1134_v61, %v1138_v32  ;;  %v1440_v12 = vunpack.c.l.b16 %v1149_v5  ;;  %v1229_v13 = vor.u32 %v1228_v63, %v1225_v62  ;;  %v1239_v18 = vor.u32 %v1238_v7, %v1234_v6 }
  0x4a   : > { %v1439_v16 = vunpack.c.l.b16 %v1139_v11  ;;  %v584_v23 = vadd.f32 %v4699_v43, %v526_v15  ;;  %v1036_v25 = vrot.slane %v4571_v50, 5  ;;  %v4331_v26 = vunpack.c.l.bf16 %v4809_v9 }
  0x4b   : > { %v1230_v22 = vrot.slane %v1229_v13, 4  ;;  %4506 = vmatpush.bf16.msra.mxu1 %v4250_v3  ;;  %4507 = vmatpush.bf16.msra.mxu2 %v4250_v3  ;;  %v1240_v29 = vrot.slane %v1239_v18, 4  ;;  %v636_v30 = vmax.f32 %v582_v19, 0.0  ;;  %v637_v31 = vmax.f32 %v583_v21, 0.0  ;;  %v405_v21 = vld [vmem:[#allocation2 + $0xa0] sm:$0xf] }
  0x4c   : > { %v4824_v28 = vpack.c.b16 %v1440_v12, %v1439_v16  ;;  %4508 = vmatpush.bf16.msra.mxu3 %v4250_v3  ;;  %1549 = vmatpush.bf16.msra.mxu0 %v4250_v3  ;;  %v638_v35 = vmax.f32 %v584_v23, 0.0  ;;  %v1037_v50 = vor.u32 %v1036_v25, %v4713_v51  ;;  %v4332_v36 = vunpack.c.h.bf16 %v4809_v9  ;;  %v4264_v51 = vld [vmem:[%s6189_s1 + $0xb8] sm:$0xff]  ;;  %v4271_v3 = vld [vmem:[%s6189_s1 + $0xf0] sm:$0xff] }
  0x4d   : > { %v1235_v32 = vsel %vm4789_vm6, %v1230_v22, %v1234_v6  ;;  %v1245_v38 = vsel %vm4789_vm6, %v1240_v29, %v1244_v8  ;;  %v695_v40 = vsel %vm4731_vm5, %v636_v30, %v4359_v0  ;;  %v696_v44 = vsel %vm4731_vm5, %v637_v31, %v4360_v10  ;;  %v4889_v12 = vld [vmem:[#allocation2 + $0x90] sm:$0xff]  }
  0x4e   : > { %v1447_v39 = vunpack.c.l.b16 %v1235_v32  ;;  %v1448_v46 = vunpack.c.l.b16 %v1245_v38  ;;  %v697_v53 = vsel %vm4731_vm5, %v638_v35, %v468_v14  ;;  %v939_v49 = vsel %vm789_vm0, %v695_v40, 0.0  ;;  %v4280_v14 = vld [vmem:[%s6189_s1 + $0x138] sm:$0xff]  ;;  %v4247_v16 = vld [vmem:[%s6189_s1 + $0x30] sm:$0xff] }
  0x4f   : > { %v4854_v0 = vpack.c.bf16 %v696_v44, %v696_v44  ;;  %4509 = vmatpush.bf16.msra.mxu1 %v4249_v27  ;;  %4510 = vmatpush.bf16.msra.mxu2 %v4249_v27  ;;  %v941_v10 = vsel %vm848_vm1, %v697_v53, 0.0  ;;  %v4858_v54 = vpack.c.bf16 %v939_v49, %v939_v49  ;;  %v1038_v55 = vrot.slane %v1037_v50, 4 }
  0x50   : > { %v447_v56 = vunpack.c.l.bf16 %v4830_v37  ;;  %4511 = vmatpush.bf16.msra.mxu3 %v4249_v27  ;;  %1550 = vmatpush.bf16.msra.mxu0 %v4249_v27  ;;  %v4867_v57 = vpack.c.b16 %v1448_v46, %v1447_v39  ;;  %v4869_v58 = vpack.c.bf16 %v941_v10, %v941_v10  ;;  %v503_v5 = vmul.f32 %v4694_v41, %v4331_v26 }
  0x51   : > { %6269 = vst [vmem:[#allocation7_spill] sm:$0xff] %v4854_v0  ;;  %v1328_v59 = vshll.u32 %v4854_v0, 16  ;;  %v1332_v60 = vshrl.u32 %v4854_v0, 16  ;;  %v1319_v61 = vshrl.u32 %v4858_v54, 16  ;;  %v1322_v62 = vshll.u32 %v4858_v54, 16 }
  0x52   : > { %6270 = vst [vmem:[#allocation8_spill] sm:$0xff] %v4858_v54  ;;  %v1043_v63 = vsel %vm4789_vm6, %v1038_v55, %v1036_v25  ;;  %1571 = vmatmul.bf16.vlgmr.msra.gmra.mxu1 %v4824_v28  ;;  %1591 = vmatmul.bf16.vlgmr.msra.gmra.mxu2 %v4867_v57  ;;  %v1338_v8 = vshll.u32 %v4869_v58, 16  ;;  %v504_v18 = vmul.f32 %v4694_v41, %v4332_v36  ;;  %v4347_v32 = vunpack.c.l.bf16 %v4889_v12 }
  0x53   : > { %6271 = vst [vmem:[#allocation9_spill] sm:$0xff] %v4867_v57  ;;  %2125 = vmatpush.bf16.msrb.mxu2 %v4264_v51  ;;  %v1330_v6 = vrot.slane %v1328_v59, 5  ;;  %v1334_v7 = vrot.slane %v1332_v60, 4  ;;  %v1431_v11 = vunpack.c.l.b16 %v1043_v63  ;;  %v1321_v13 = vrot.slane %v1319_v61, 4  ;;  %1776 = vmatpush.bf16.msrb.mxu1 %v4248_v1 }
  0x54   : > { %6272 = vst [vmem:[#allocation10_spill] sm:$0xff] %v4869_v58  ;;  %2317 = vmatpush.bf16.msrb.mxu3 %v4272_v45  ;;  %v1324_v15 = vrot.slane %v1322_v62, 5  ;;  %2531 = vmatpush.bf16.msrb.mxu0 %v4280_v14  ;;  %v505_v19 = vmul.f32 %v4694_v41, %v447_v56  ;;  %v1340_v23 = vrot.slane %v1338_v8, 5  ;;  %v561_v27 = vadd.f32 %v4699_v43, %v503_v5 }
  0x55   : > { %v1335_v22 = vor.u32 %v1334_v7, %v1330_v6  ;;  %v4898_v25 = vpack.c.b16 %v1431_v11, %v1431_v11  ;;  %v562_v30 = vadd.f32 %v4699_v43, %v504_v18  ;;  %v4348_v37 = vunpack.c.h.bf16 %v4889_v12  ;;  %v4262_v18 = vld [vmem:[%s6189_s1 + $0xa8] sm:$0xff] }
  0x56   : > { %v1325_v29 = vor.u32 %v1324_v15, %v1321_v13  ;;  %v563_v31 = vadd.f32 %v4699_v43, %v505_v19  ;;  %v615_v50 = vmax.f32 %v561_v27, 0.0  ;;  %v459_v38 = vunpack.c.l.bf16 %v405_v21  ;;  %v4949_v27 = vld [vmem:[#allocation2 + $0xd8] sm:$0xff]  }
  0x57   : > { %6273 = vst [vmem:[#allocation11_spill] sm:$0xff] %v4898_v25  ;;  %2126 = vmatpush.bf16.msrb.mxu2 %v4263_v2  ;;  %v1336_v35 = vrot.slane %v1335_v22, 4  ;;  %1551 = vmatmul.bf16.vlgmr.msra.gmra.mxu0 %v4898_v25  ;;  %v616_v40 = vmax.f32 %v562_v30, 0.0  ;;  %v515_v51 = vmul.f32 %v4694_v41, %v4347_v32  ;;  %v516_v53 = vmul.f32 %v4694_v41, %v4348_v37 }
  0x58   : > { %2318 = vmatpush.bf16.msrb.mxu3 %v4271_v3  ;;  %v1326_v39 = vrot.slane %v1325_v29, 4  ;;  %1777 = vmatpush.bf16.msrb.mxu1 %v4247_v16  ;;  %v617_v44 = vmax.f32 %v563_v31, 0.0  ;;  %v674_v46 = vsel %vm4731_vm5, %v615_v50, %v4331_v26  ;;  %v517_v49 = vmul.f32 %v4694_v41, %v459_v38 }
  0x59   : > { %v1341_v45 = vsel %vm4789_vm6, %v1336_v35, %v1340_v23  ;;  %v675_v1 = vsel %vm4731_vm5, %v616_v40, %v4332_v36  ;;  %v918_v26 = vsel %vm789_vm0, %v674_v46, 0.0  ;;  %v573_v9 = vadd.f32 %v4699_v43, %v515_v51 }
  0x5a   : > { %v1331_v10 = vsel %vm4789_vm6, %v1326_v39, %v1330_v6  ;;  %v1456_v55 = vunpack.c.l.b16 %v1341_v45  ;;  %v676_v14 = vsel %vm4731_vm5, %v617_v44, %v447_v56  ;;  %v4927_v61 = vpack.c.bf16 %v675_v1, %v675_v1  ;;  %v4963_v44 = vld [vmem:[#allocation2 + $0xc0] sm:$0xf] }
  0x5b   : > { %v1455_v59 = vunpack.c.l.b16 %v1331_v10  ;;  %v920_v60 = vsel %vm848_vm1, %v676_v14, 0.0  ;;  %v4929_v62 = vpack.c.bf16 %v918_v26, %v918_v26  ;;  %v574_v36 = vadd.f32 %v4699_v43, %v516_v53  ;;  %2127 = vmatpush.bf16.msrb.mxu2 %v4262_v18  ;;  %v4270_v26 = vld [vmem:[%s6189_s1 + $0xe8] sm:$0xff] }
  0x5c   : > { %v4931_v63 = vpack.c.bf16 %v920_v60, %v920_v60  ;;  %v1160_v56 = vshll.u32 %v4927_v61, 16  ;;  %v1164_v3 = vshrl.u32 %v4927_v61, 16  ;;  %v575_v5 = vadd.f32 %v4699_v43, %v517_v49  ;;  %v4279_v60 = vld [vmem:[%s6189_s1 + $0x130] sm:$0xff]  ;;  %2319 = vmatpush.bf16.msrb.mxu3 %v4270_v26 }
  0x5d   : > { %v4935_v2 = vpack.c.b16 %v1456_v55, %v1455_v59  ;;  %v1151_v6 = vshrl.u32 %v4929_v62, 16  ;;  %v1154_v7 = vshll.u32 %v4929_v62, 16  ;;  %v627_v11 = vmax.f32 %v573_v9, 0.0  ;;  %v4246_v9 = vld [vmem:[%s6189_s1 + $0x28] sm:$0xff]  ;;  %2532 = vmatpush.bf16.msrb.mxu0 %v4279_v60 }
  0x5e   : > { %v1170_v8 = vshll.u32 %v4931_v63, 16  ;;  %v1162_v12 = vrot.slane %v1160_v56, 5  ;;  %v1166_v13 = vrot.slane %v1164_v3, 4  ;;  %v628_v15 = vmax.f32 %v574_v36, 0.0  ;;  %1778 = vmatpush.bf16.msrb.mxu1 %v4246_v9 }
  0x5f   : > { %6274 = vst [vmem:[#allocation12_spill] sm:$0xff] %v4935_v2  ;;  %1611 = vmatmul.bf16.vlgmr.msra.gmra.mxu3 %v4935_v2  ;;  %v629_v16 = vmax.f32 %v575_v5, 0.0  ;;  %v1153_v19 = vrot.slane %v1151_v6, 4  ;;  %v1156_v21 = vrot.slane %v1154_v7, 5  ;;  %v686_v23 = vsel %vm4731_vm5, %v627_v11, %v4347_v32  ;;  %v4988_v6 = vld [vmem:[#allocation2 + $0x10] sm:$0xff]   ;;  %v4261_v7 = vld [vmem:[%s6189_s1 + $0xa0] sm:$0xff] }
  0x60   : > { %v1172_v22 = vrot.slane %v1170_v8, 5  ;;  %v1167_v29 = vor.u32 %v1166_v13, %v1162_v12  ;;  %v687_v30 = vsel %vm4731_vm5, %v628_v15, %v4348_v37  ;;  %v930_v35 = vsel %vm789_vm0, %v686_v23, 0.0  ;;  %v4278_v23 = vld [vmem:[%s6189_s1 + $0x128] sm:$0xff]  ;;  %2128 = vmatpush.bf16.msrb.mxu2 %v4261_v7 }
  0x61   : > { %v688_v31 = vsel %vm4731_vm5, %v629_v16, %v459_v38  ;;  %v1157_v50 = vor.u32 %v1156_v21, %v1153_v19  ;;  %v4959_v40 = vpack.c.bf16 %v930_v35, %v930_v35  ;;  %v4961_v32 = vpack.c.bf16 %v687_v30, %v687_v30  ;;  %v4269_v16 = vld [vmem:[%s6189_s1 + $0xe0] sm:$0xff]  ;;  %2533 = vmatpush.bf16.msrb.mxu0 %v4278_v23 }
  0x62   : > { %v932_v39 = vsel %vm848_vm1, %v688_v31, 0.0  ;;  %v1168_v51 = vrot.slane %v1167_v29, 4  ;;  %v4363_v37 = vunpack.c.l.bf16 %v4949_v27  ;;  %v4364_v38 = vunpack.c.h.bf16 %v4949_v27  ;;  %v4245_v27 = vld [vmem:[%s6189_s1 + $0x20] sm:$0xff]  ;;  %2320 = vmatpush.bf16.msrb.mxu3 %v4269_v16 }
  0x63   : > { %v4965_v45 = vpack.c.bf16 %v932_v39, %v932_v39  ;;  %v1158_v46 = vrot.slane %v1157_v50, 4  ;;  %v1247_v53 = vshrl.u32 %v4959_v40, 16  ;;  %v1250_v49 = vshll.u32 %v4959_v40, 16  ;;  %1779 = vmatpush.bf16.msrb.mxu1 %v4245_v27 }
  0x64   : > { %v1256_v10 = vshll.u32 %v4961_v32, 16  ;;  %v1173_v55 = vsel %vm4789_vm6, %v1168_v51, %v1172_v22  ;;  %v1260_v1 = vshrl.u32 %v4961_v32, 16  ;;  %v471_v59 = vunpack.c.l.bf16 %v4963_v44  ;;  %v381_v22 = vld [vmem:[#allocation2 + $0x48] sm:$0xf] }
  0x65   : > { %v1266_v14 = vshll.u32 %v4965_v45, 16  ;;  %v1163_v36 = vsel %vm4789_vm6, %v1158_v46, %v1162_v12  ;;  %v1442_v56 = vunpack.c.l.b16 %v1173_v55  ;;  %v1249_v3 = vrot.slane %v1247_v53, 4 }
  0x66   : > { %v1252_v5 = vrot.slane %v1250_v49, 5  ;;  %v1441_v8 = vunpack.c.l.b16 %v1163_v36  ;;  %v1258_v11 = vrot.slane %v1256_v10, 5  ;;  %v1262_v13 = vrot.slane %v1260_v1, 4 }
  0x67   : > { %v1268_v15 = vrot.slane %v1266_v14, 5  ;;  %v527_v18 = vmul.f32 %v4694_v41, %v4363_v37  ;;  %v528_v19 = vmul.f32 %v4694_v41, %v4364_v38  ;;  %v529_v21 = vmul.f32 %v4694_v41, %v471_v59 }
  0x68   : > { %v1253_v12 = vor.u32 %v1252_v5, %v1249_v3  ;;  %v5005_v29 = vpack.c.b16 %v1442_v56, %v1441_v8  ;;  %v1263_v30 = vor.u32 %v1262_v13, %v1258_v11  ;;  %v4315_v31 = vunpack.c.l.bf16 %v4988_v6 }
  0x69   : > { %v4316_v35 = vunpack.c.h.bf16 %v4988_v6  ;;  %v585_v39 = vadd.f32 %v4699_v43, %v527_v18  ;;  %v586_v44 = vadd.f32 %v4699_v43, %v528_v19  ;;  %v587_v51 = vadd.f32 %v4699_v43, %v529_v21 }
  0x6a   : > { %v1254_v50 = vrot.slane %v1253_v12, 4  ;;  %1576 = vmatmul.bf16.gmra.mxu1 %v5005_v29  ;;  %v1264_v46 = vrot.slane %v1263_v30, 4  ;;  %v435_v53 = vunpack.c.l.bf16 %v381_v22  ;;  %v491_v49 = vmul.f32 %v4694_v41, %v4315_v31 }
  0x6b   : > { %v492_v10 = vmul.f32 %v4694_v41, %v4316_v35  ;;  %v639_v1 = vmax.f32 %v585_v39, 0.0  ;;  %v640_v14 = vmax.f32 %v586_v44, 0.0  ;;  %v641_v26 = vmax.f32 %v587_v51, 0.0 }
  0x6c   : > { %v1259_v55 = vsel %vm4789_vm6, %v1254_v50, %v1258_v11  ;;  %v1269_v60 = vsel %vm4789_vm6, %v1264_v46, %v1268_v15  ;;  %v493_v36 = vmul.f32 %v4694_v41, %v435_v53  ;;  %v549_v56 = vadd.f32 %v4699_v43, %v491_v49  ;;  %v5051_v46 = vld [vmem:[#allocation2 + $0xf8] sm:$0xff]  }
  0x6d   : > { %v1449_v9 = vunpack.c.l.b16 %v1259_v55  ;;  %v1450_v3 = vunpack.c.l.b16 %v1269_v60  ;;  %v698_v5 = vsel %vm4731_vm5, %v639_v1, %v4363_v37  ;;  %v699_v6 = vsel %vm4731_vm5, %v640_v14, %v4364_v38 }
  0x6e   : > { %v700_v7 = vsel %vm4731_vm5, %v641_v26, %v471_v59  ;;  %v942_v8 = vsel %vm789_vm0, %v698_v5, 0.0  ;;  %v5031_v13 = vpack.c.bf16 %v699_v6, %v699_v6  ;;  %v550_v15 = vadd.f32 %v4699_v43, %v492_v10 }
  0x6f   : > { %v944_v11 = vsel %vm848_vm1, %v700_v7, 0.0  ;;  %v5034_v16 = vpack.c.b16 %v1450_v3, %v1449_v9  ;;  %v5036_v12 = vpack.c.bf16 %v942_v8, %v942_v8  ;;  %v551_v38 = vadd.f32 %v4699_v43, %v493_v36  ;;  %v396_v3 = vld [vmem:[#allocation2 + $0x38] sm:$0xf] }
  0x70   : > { %6275 = vst [vmem:[#allocation13_spill] sm:$0xff] %v5031_v13  ;;  %v5038_v37 = vpack.c.bf16 %v944_v11, %v944_v11  ;;  %v1352_v59 = vshll.u32 %v5031_v13, 16  ;;  %v1356_v18 = vshrl.u32 %v5031_v13, 16  ;;  %v603_v19 = vmax.f32 %v549_v56, 0.0 }
  0x71   : > { %6276 = vst [vmem:[#allocation14_spill] sm:$0xff] %v5034_v16  ;;  %v604_v21 = vmax.f32 %v550_v15, 0.0  ;;  %1596 = vmatmul.bf16.gmra.mxu2 %v5034_v16  ;;  %v1343_v22 = vshrl.u32 %v5036_v12, 16  ;;  %v1346_v23 = vshll.u32 %v5036_v12, 16  ;;  %v605_v30 = vmax.f32 %v551_v38, 0.0 }
  0x72   : > { %6277 = vst [vmem:[#allocation15_spill] sm:$0xff] %v5036_v12  ;;  %v1362_v27 = vshll.u32 %v5038_v37, 16  ;;  %v1354_v50 = vrot.slane %v1352_v59, 5  ;;  %v1358_v39 = vrot.slane %v1356_v18, 4  ;;  %v662_v44 = vsel %vm4731_vm5, %v603_v19, %v4315_v31  ;;  %v5363_v16 = vld [vmem:[#allocation2 + $0x18] sm:$0xf] }
  0x73   : > { %6278 = vst [vmem:[#allocation16_spill] sm:$0xff] %v5038_v37  ;;  %v663_v51 = vsel %vm4731_vm5, %v604_v21, %v4316_v35  ;;  %v1345_v49 = vrot.slane %v1343_v22, 4  ;;  %v1348_v10 = vrot.slane %v1346_v23, 5  ;;  %v664_v1 = vsel %vm4731_vm5, %v605_v30, %v435_v53  ;;  %v4466_v22 = vld [vmem:[#allocation2 + $0x70] sm:$0xff]  }
  0x74   : > { %v1364_v55 = vrot.slane %v1362_v27, 5  ;;  %v1359_v14 = vor.u32 %v1358_v39, %v1354_v50  ;;  %v906_v26 = vsel %vm789_vm0, %v662_v44, 0.0  ;;  %v908_v60 = vsel %vm848_vm1, %v664_v1, 0.0 }
  0x75   : > { %v5059_v9 = vpack.c.bf16 %v663_v51, %v663_v51  ;;  %v1349_v31 = vor.u32 %v1348_v10, %v1345_v49  ;;  %v5061_v36 = vpack.c.bf16 %v906_v26, %v906_v26  ;;  %v5063_v35 = vpack.c.bf16 %v908_v60, %v908_v60  ;;  %v408_v10 = vld [vmem:[#allocation2 + $0x58] sm:$0xf] }
  0x76   : > { %v4335_v56 = vunpack.c.l.bf16 %v5051_v46  ;;  %v1360_v5 = vrot.slane %v1359_v14, 4  ;;  %v4336_v7 = vunpack.c.h.bf16 %v5051_v46  ;;  %v450_v21 = vunpack.c.l.bf16 %v396_v3 }
  0x77   : > { %v1064_v53 = vshll.u32 %v5059_v9, 16  ;;  %v1068_v6 = vshrl.u32 %v5059_v9, 16  ;;  %v1350_v8 = vrot.slane %v1349_v31, 4  ;;  %v1055_v11 = vshrl.u32 %v5061_v36, 16 }
  0x78   : > { %v1058_v15 = vshll.u32 %v5061_v36, 16  ;;  %v1074_v38 = vshll.u32 %v5063_v35, 16  ;;  %v1365_v59 = vsel %vm4789_vm6, %v1360_v5, %v1364_v55  ;;  %v506_v49 = vmul.f32 %v4694_v41, %v4335_v56 }
  0x79   : > { %v1066_v18 = vrot.slane %v1064_v53, 5  ;;  %v1070_v19 = vrot.slane %v1068_v6, 4  ;;  %v1355_v23 = vsel %vm4789_vm6, %v1350_v8, %v1354_v50  ;;  %v1458_v27 = vunpack.c.l.b16 %v1365_v59 }
  0x7a   : > { %v1057_v30 = vrot.slane %v1055_v11, 4  ;;  %v1060_v39 = vrot.slane %v1058_v15, 5  ;;  %v1457_v44 = vunpack.c.l.b16 %v1355_v23  ;;  %v1076_v46 = vrot.slane %v1074_v38, 5 }
  0x7b   : > { %v1071_v51 = vor.u32 %v1070_v19, %v1066_v18  ;;  %v507_v14 = vmul.f32 %v4694_v41, %v4336_v7  ;;  %v508_v55 = vmul.f32 %v4694_v41, %v450_v21  ;;  %v4351_v26 = vunpack.c.l.bf16 %v4466_v22 }
  0x7c   : > { %v1061_v1 = vor.u32 %v1060_v39, %v1057_v30  ;;  %v5079_v60 = vpack.c.b16 %v1458_v27, %v1457_v44  ;;  %v564_v50 = vadd.f32 %v4699_v43, %v506_v49  ;;  %v4352_v3 = vunpack.c.h.bf16 %v4466_v22 }
  0x7d   : > { %v1072_v31 = vrot.slane %v1071_v51, 4  ;;  %v565_v53 = vadd.f32 %v4699_v43, %v507_v14  ;;  %v566_v6 = vadd.f32 %v4699_v43, %v508_v55  ;;  %v462_v8 = vunpack.c.l.bf16 %v408_v10 }
  0x7e   : > { %6279 = vst [vmem:[#allocation17_spill] sm:$0xff] %v5079_v60  ;;  %v1062_v5 = vrot.slane %v1061_v1, 4  ;;  %1616 = vmatmul.bf16.gmra.mxu3 %v5079_v60  ;;  %v618_v15 = vmax.f32 %v564_v50, 0.0  ;;  %v518_v38 = vmul.f32 %v4694_v41, %v4351_v26  ;;  %v519_v59 = vmul.f32 %v4694_v41, %v4352_v3 }
  0x7f   : > { %v1077_v11 = vsel %vm4789_vm6, %v1072_v31, %v1076_v46  ;;  %v619_v23 = vmax.f32 %v565_v53, 0.0  ;;  %v620_v27 = vmax.f32 %v566_v6, 0.0  ;;  %v520_v44 = vmul.f32 %v4694_v41, %v462_v8 }
  0x80   : > { %v1067_v19 = vsel %vm4789_vm6, %v1062_v5, %v1066_v18  ;;  %v1434_v22 = vunpack.c.l.b16 %v1077_v11  ;;  %v677_v39 = vsel %vm4731_vm5, %v618_v15, %v4335_v56  ;;  %v576_v51 = vadd.f32 %v4699_v43, %v518_v38 }
  0x81   : > { %v1433_v30 = vunpack.c.l.b16 %v1067_v19  ;;  %v678_v46 = vsel %vm4731_vm5, %v619_v23, %v4336_v7  ;;  %v679_v49 = vsel %vm4731_vm5, %v620_v27, %v450_v21  ;;  %v921_v18 = vsel %vm789_vm0, %v677_v39, 0.0  ;;  %v5123_v39 = vld [vmem:[#allocation2 + $0x50] sm:$0xff]  }
  0x82   : > { %v577_v10 = vadd.f32 %v4699_v43, %v519_v59  ;;  %v923_v56 = vsel %vm848_vm1, %v679_v49, 0.0  ;;  %v5106_v14 = vpack.c.bf16 %v921_v18, %v921_v18  ;;  %v5108_v55 = vpack.c.bf16 %v678_v46, %v678_v46 }
  0x83   : > { %v5102_v1 = vpack.c.b16 %v1434_v22, %v1433_v30  ;;  %v5110_v31 = vpack.c.bf16 %v923_v56, %v923_v56  ;;  %v578_v7 = vadd.f32 %v4699_v43, %v520_v44  ;;  %v630_v50 = vmax.f32 %v576_v51, 0.0  ;;  %v4260_v44 = vld [vmem:[%s6189_s1 + $0x98] sm:$0xff] }
  0x84   : > { %v631_v21 = vmax.f32 %v577_v10, 0.0  ;;  %v1175_v5 = vshrl.u32 %v5106_v14, 16  ;;  %v1178_v53 = vshll.u32 %v5106_v14, 16  ;;  %v1184_v6 = vshll.u32 %v5108_v55, 16  ;;  %2129 = vmatpush.bf16.msrb.mxu2 %v4260_v44  ;;  %v4244_v44 = vld [vmem:[%s6189_s1 + $0x18] sm:$0xff] }
  0x85   : > { %1556 = vmatmul.bf16.gmra.mxu0 %v5102_v1  ;;  %v1188_v11 = vshrl.u32 %v5108_v55, 16  ;;  %v1194_v15 = vshll.u32 %v5110_v31, 16  ;;  %v632_v38 = vmax.f32 %v578_v7, 0.0  ;;  %v689_v59 = vsel %vm4731_vm5, %v630_v50, %v4351_v26  ;;  %1780 = vmatpush.bf16.msrb.mxu1 %v4244_v44 }
  0x86   : > { %v690_v19 = vsel %vm4731_vm5, %v631_v21, %v4352_v3  ;;  %v1177_v22 = vrot.slane %v1175_v5, 4  ;;  %v1180_v23 = vrot.slane %v1178_v53, 5  ;;  %v1186_v27 = vrot.slane %v1184_v6, 5 }
  0x87   : > { %v1190_v30 = vrot.slane %v1188_v11, 4  ;;  %v1196_v51 = vrot.slane %v1194_v15, 5  ;;  %v691_v46 = vsel %vm4731_vm5, %v632_v38, %v462_v8  ;;  %v933_v26 = vsel %vm789_vm0, %v689_v59, 0.0  ;;  %v5145_v15 = vld [vmem:[#allocation2 + $0xf0] sm:$0xf] }
  0x88   : > { %v5132_v49 = vpack.c.bf16 %v690_v19, %v690_v19  ;;  %v1181_v3 = vor.u32 %v1180_v23, %v1177_v22  ;;  %v935_v10 = vsel %vm848_vm1, %v691_v46, 0.0  ;;  %v5136_v56 = vpack.c.bf16 %v933_v26, %v933_v26  ;;  %v4268_v23 = vld [vmem:[%s6189_s1 + $0xd8] sm:$0xff] }
  0x89   : > { %v1191_v18 = vor.u32 %v1190_v30, %v1186_v27  ;;  %v5138_v7 = vpack.c.bf16 %v935_v10, %v935_v10  ;;  %v4367_v8 = vunpack.c.l.bf16 %v5123_v39  ;;  %v4368_v22 = vunpack.c.h.bf16 %v5123_v39  ;;  %v4277_v30 = vld [vmem:[%s6189_s1 + $0x120] sm:$0xff]  ;;  %v4259_v10 = vld [vmem:[%s6189_s1 + $0x90] sm:$0xff]  ;;  %2321 = vmatpush.bf16.msrb.mxu3 %v4268_v23 }
  0x8a   : > { %6280 = vst [vmem:[#allocation18_spill] sm:$0xff] %v5136_v56  ;;  %v1280_v50 = vshll.u32 %v5132_v49, 16  ;;  %v1284_v21 = vshrl.u32 %v5132_v49, 16  ;;  %v1182_v5 = vrot.slane %v1181_v3, 4  ;;  %v1271_v6 = vshrl.u32 %v5136_v56, 16  ;;  %2534 = vmatpush.bf16.msrb.mxu0 %v4277_v30  ;;  %2130 = vmatpush.bf16.msrb.mxu2 %v4259_v10 }
  0x8b   : > { %6281 = vst [vmem:[#allocation19_spill] sm:$0xff] %v5138_v7  ;;  %v1192_v53 = vrot.slane %v1191_v18, 4  ;;  %v1274_v11 = vshll.u32 %v5136_v56, 16  ;;  %v1290_v19 = vshll.u32 %v5138_v7, 16  ;;  %v5162_v18 = vld [vmem:[#allocation2 + $0x108] sm:$0xff]   ;;  %vm3660_vm10 = vcmask 1040384  }
  0x8c   : > { %v1282_v38 = vrot.slane %v1280_v50, 5  ;;  %v1286_v59 = vrot.slane %v1284_v21, 4  ;;  %v1187_v46 = vsel %vm4789_vm6, %v1182_v5, %v1186_v27  ;;  %v1273_v3 = vrot.slane %v1271_v6, 4  ;;  %v4267_v27 = vld [vmem:[%s6189_s1 + $0xd0] sm:$0xff] }
  0x8d   : > { %v1197_v26 = vsel %vm4789_vm6, %v1192_v53, %v1196_v51  ;;  %v1276_v39 = vrot.slane %v1274_v11, 5  ;;  %v1443_v50 = vunpack.c.l.b16 %v1187_v46  ;;  %v1292_v60 = vrot.slane %v1290_v19, 5  ;;  %v384_v11 = vld [vmem:[#allocation2 + $0x68] sm:$0xf]  ;;  %v4243_v19 = vld [vmem:[%s6189_s1 + $0x10] sm:$0xff]  ;;  %2322 = vmatpush.bf16.msrb.mxu3 %v4267_v27 }
  0x8e   : > { %v1444_v21 = vunpack.c.l.b16 %v1197_v26  ;;  %v1287_v25 = vor.u32 %v1286_v59, %v1282_v38  ;;  %v474_v51 = vunpack.c.l.bf16 %v5145_v15  ;;  %v530_v53 = vmul.f32 %v4694_v41, %v4367_v8  ;;  %v4276_v59 = vld [vmem:[%s6189_s1 + $0x118] sm:$0xff]  ;;  %1781 = vmatpush.bf16.msrb.mxu1 %v4243_v19 }
  0x8f   : > { %v1277_v5 = vor.u32 %v1276_v39, %v1273_v3  ;;  %v531_v6 = vmul.f32 %v4694_v41, %v4368_v22  ;;  %v4319_v15 = vunpack.c.l.bf16 %v5162_v18  ;;  %v4320_v46 = vunpack.c.h.bf16 %v5162_v18  ;;  %2535 = vmatpush.bf16.msrb.mxu0 %v4276_v59 }
  0x90   : > { %v5179_v23 = vpack.c.b16 %v1444_v21, %v1443_v50  ;;  %v1288_v30 = vrot.slane %v1287_v25, 4  ;;  %v532_v3 = vmul.f32 %v4694_v41, %v474_v51  ;;  %v588_v44 = vadd.f32 %v4699_v43, %v530_v53  ;;  %v5191_v21 = vld [vmem:[#allocation2 + $0x8] sm:$0xff]  }
  0x91   : > { %v1278_v26 = vrot.slane %v1277_v5, 4  ;;  %v589_v39 = vadd.f32 %v4699_v43, %v531_v6  ;;  %v438_v2 = vunpack.c.l.bf16 %v384_v11  ;;  %v494_v50 = vmul.f32 %v4694_v41, %v4319_v15 }
  0x92   : > { %6282 = vst [vmem:[#allocation20_spill] sm:$0xff] %v5179_v23  ;;  %1581 = vmatmul.bf16.gmra.mxu1 %v5179_v23  ;;  %v1293_v10 = vsel %vm4789_vm6, %v1288_v30, %v1292_v60  ;;  %v495_v25 = vmul.f32 %v4694_v41, %v4320_v46  ;;  %v590_v53 = vadd.f32 %v4699_v43, %v532_v3  ;;  %v642_v6 = vmax.f32 %v588_v44, 0.0 }
  0x93   : > { %v1283_v18 = vsel %vm4789_vm6, %v1278_v26, %v1282_v38  ;;  %v1452_v5 = vunpack.c.l.b16 %v1293_v10  ;;  %v643_v12 = vmax.f32 %v589_v39, 0.0  ;;  %v496_v60 = vmul.f32 %v4694_v41, %v438_v2 }
  0x94   : > { %v1451_v37 = vunpack.c.l.b16 %v1283_v18  ;;  %v552_v11 = vadd.f32 %v4699_v43, %v494_v50  ;;  %v644_v30 = vmax.f32 %v590_v53, 0.0  ;;  %v701_v27 = vsel %vm4731_vm5, %v642_v6, %v4367_v8 }
  0x95   : > { %v553_v13 = vadd.f32 %v4699_v43, %v495_v25  ;;  %v6211_v38 = vunpack.c.l.bf16 %v5191_v21  ;;  %v702_v59 = vsel %vm4731_vm5, %v643_v12, %v4368_v22  ;;  %v945_v19 = vsel %vm789_vm0, %v701_v27, 0.0  ;;  %v399_v27 = vld [vmem:[#allocation2 + $0x78] sm:$0xf] }
  0x96   : > { %v5202_v26 = vpack.c.b16 %v1452_v5, %v1451_v37  ;;  %v554_v41 = vadd.f32 %v4699_v43, %v496_v60  ;;  %v703_v3 = vsel %vm4731_vm5, %v644_v30, %v474_v51  ;;  %v5211_v44 = vpack.c.bf16 %v945_v19, %v945_v19 }
  0x97   : > { %v5213_v8 = vpack.c.bf16 %v702_v59, %v702_v59  ;;  %v606_v39 = vmax.f32 %v552_v11, 0.0  ;;  %v947_v37 = vsel %vm848_vm1, %v703_v3, 0.0  ;;  %v607_v10 = vmax.f32 %v553_v13, 0.0 }
  0x98   : > { %6283 = vst [vmem:[#allocation21_spill] sm:$0xff] %v5202_v26  ;;  %1601 = vmatmul.bf16.gmra.mxu2 %v5202_v26  ;;  %v608_v12 = vmax.f32 %v554_v41, 0.0  ;;  %v6212_v22 = vunpack.c.h.bf16 %v5191_v21  ;;  %v5219_v50 = vpack.c.bf16 %v947_v37, %v947_v37  ;;  %v1367_v43 = vshrl.u32 %v5211_v44, 16 }
  0x99   : > { %6284 = vst [vmem:[#allocation22_spill] sm:$0xff] %v5211_v44  ;;  %v1370_v51 = vshll.u32 %v5211_v44, 16  ;;  %v1376_v25 = vshll.u32 %v5213_v8, 16  ;;  %v1380_v18 = vshrl.u32 %v5213_v8, 16  ;;  %v665_v5 = vsel %vm4731_vm5, %v606_v39, %v4319_v15 }
  0x9a   : > { %6285 = vst [vmem:[#allocation23_spill] sm:$0xff] %v5213_v8  ;;  %v666_v53 = vsel %vm4731_vm5, %v607_v10, %v4320_v46  ;;  %v667_v13 = vsel %vm4731_vm5, %v608_v12, %v438_v2  ;;  %v1369_v6 = vrot.slane %v1367_v43, 4  ;;  %v1386_v30 = vshll.u32 %v5219_v50, 16 }
  0x9b   : > { %6286 = vst [vmem:[#allocation24_spill] sm:$0xff] %v5219_v50  ;;  %v1372_v60 = vrot.slane %v1370_v51, 5  ;;  %v1378_v11 = vrot.slane %v1376_v25, 5  ;;  %v1382_v59 = vrot.slane %v1380_v18, 4  ;;  %v909_v19 = vsel %vm789_vm0, %v665_v5, 0.0 }
  0x9c   : > { %v911_v41 = vsel %vm848_vm1, %v667_v13, 0.0  ;;  %v5236_v15 = vpack.c.bf16 %v666_v53, %v666_v53  ;;  %v1388_v46 = vrot.slane %v1386_v30, 5  ;;  %v5238_v39 = vpack.c.bf16 %v909_v19, %v909_v19 }
  0x9d   : > { %v1373_v3 = vor.u32 %v1372_v60, %v1369_v6  ;;  %v5240_v2 = vpack.c.bf16 %v911_v41, %v911_v41  ;;  %v1383_v37 = vor.u32 %v1382_v59, %v1378_v11  ;;  %v453_v43 = vunpack.c.l.bf16 %v399_v27  ;;  %v5250_v60 = vld [vmem:[%s6191_s3] ss:$0 sm:$0xff] }
  0x9e   : > { %v1088_v10 = vshll.u32 %v5236_v15, 16  ;;  %v1092_v12 = vshrl.u32 %v5236_v15, 16  ;;  %v1079_v25 = vshrl.u32 %v5238_v39, 16  ;;  %v1082_v18 = vshll.u32 %v5238_v39, 16 }
  0x9f   : > { %v1374_v51 = vrot.slane %v1373_v3, 4  ;;  %v1098_v5 = vshll.u32 %v5240_v2, 16  ;;  %v1384_v53 = vrot.slane %v1383_v37, 4  ;;  %v509_v30 = vmul.f32 %v5250_v60, %v6211_v38  ;;  %v4467_v3 = vld [vmem:[#allocation2 + $0xe0] sm:$0xff]  }
  0xa0   : > { %v1090_v13 = vrot.slane %v1088_v10, 5  ;;  %v1094_v6 = vrot.slane %v1092_v12, 4  ;;  %v1081_v59 = vrot.slane %v1079_v25, 4  ;;  %v1084_v19 = vrot.slane %v1082_v18, 5  ;;  %v411_v25 = vld [vmem:[#allocation2 + $0x60] sm:$0xf] }
  0xa1   : > { %v1379_v27 = vsel %vm4789_vm6, %v1374_v51, %v1378_v11  ;;  %v1100_v41 = vrot.slane %v1098_v5, 5  ;;  %v1389_v37 = vsel %vm4789_vm6, %v1384_v53, %v1388_v46  ;;  %v510_v50 = vmul.f32 %v5250_v60, %v6212_v22  ;;  %v5266_v11 = vld [vmem:[%s6192_s4] ss:$0 sm:$0xff] }
  0xa2   : > { %v1459_v10 = vunpack.c.l.b16 %v1379_v27  ;;  %v1095_v12 = vor.u32 %v1094_v6, %v1090_v13  ;;  %v1460_v44 = vunpack.c.l.b16 %v1389_v37  ;;  %v1085_v8 = vor.u32 %v1084_v19, %v1081_v59 }
  0xa3   : > { %v511_v38 = vmul.f32 %v5250_v60, %v453_v43  ;;  %v567_v51 = vadd.f32 %v5266_v11, %v509_v30  ;;  %v568_v46 = vadd.f32 %v5266_v11, %v510_v50  ;;  %v4355_v5 = vunpack.c.l.bf16 %v4467_v3 }
  0xa4   : > { %v1096_v18 = vrot.slane %v1095_v12, 4  ;;  %v4356_v53 = vunpack.c.h.bf16 %v4467_v3  ;;  %v5270_v6 = vpack.c.b16 %v1460_v44, %v1459_v10  ;;  %v1086_v27 = vrot.slane %v1085_v8, 4 }
  0xa5   : > { %v569_v59 = vadd.f32 %v5266_v11, %v511_v38  ;;  %v621_v19 = vmax.f32 %v567_v51, 0.0  ;;  %v622_v22 = vmax.f32 %v568_v46, 0.0  ;;  %v465_v58 = vunpack.c.l.bf16 %v411_v25 }
  0xa6   : > { %6287 = vst [vmem:[#allocation25_spill] sm:$0xff] %v5270_v6  ;;  %v1101_v37 = vsel %vm4789_vm6, %v1096_v18, %v1100_v41  ;;  %v521_v54 = vmul.f32 %v5250_v60, %v4355_v5  ;;  %1621 = vmatmul.bf16.gmra.mxu3 %v5270_v6  ;;  %v1091_v50 = vsel %vm4789_vm6, %v1086_v27, %v1090_v13  ;;  %v6288_v44 = vunpack.c.l.bf16 %v5191_v21 }
  0xa7   : > { %v1436_v30 = vunpack.c.l.b16 %v1101_v37  ;;  %v623_v3 = vmax.f32 %v569_v59, 0.0  ;;  %v1435_v8 = vunpack.c.l.b16 %v1091_v50  ;;  %v6289_v10 = vunpack.c.h.bf16 %v5191_v21 }
  0xa8   : > { %v680_v38 = vsel %vm4731_vm5, %v621_v19, %v6288_v44  ;;  %v522_v51 = vmul.f32 %v5250_v60, %v4356_v53  ;;  %v523_v46 = vmul.f32 %v5250_v60, %v465_v58 }
  0xa9   : > { %v681_v41 = vsel %vm4731_vm5, %v622_v22, %v6289_v10  ;;  %v924_v12 = vsel %vm789_vm0, %v680_v38, 0.0  ;;  %v682_v13 = vsel %vm4731_vm5, %v623_v3, %v453_v43  ;;  %v5297_v27 = vpack.c.b16 %v1436_v30, %v1435_v8 }
  0xaa   : > { %v5292_v25 = vpack.c.bf16 %v924_v12, %v924_v12  ;;  %v5294_v18 = vpack.c.bf16 %v681_v41, %v681_v41  ;;  %v926_v21 = vsel %vm848_vm1, %v682_v13, 0.0  ;;  %v579_v22 = vadd.f32 %v5266_v11, %v521_v54  ;;  %v5312_v12 = vld [vmem:[#allocation2 + $0xb8] sm:$0xff]  }
  0xab   : > { %v580_v59 = vadd.f32 %v5266_v11, %v522_v51  ;;  %v5303_v19 = vpack.c.bf16 %v926_v21, %v926_v21  ;;  %1561 = vmatmul.bf16.gmra.mxu0 %v5297_v27  ;;  %v581_v3 = vadd.f32 %v5266_v11, %v523_v46  ;;  %v4258_v51 = vld [vmem:[%s6189_s1 + $0x88] sm:$0xff] }
  0xac   : > { %v1199_v37 = vshrl.u32 %v5292_v25, 16  ;;  %v1202_v43 = vshll.u32 %v5292_v25, 16  ;;  %v1208_v50 = vshll.u32 %v5294_v18, 16  ;;  %v1212_v30 = vshrl.u32 %v5294_v18, 16  ;;  %2131 = vmatpush.bf16.msrb.mxu2 %v4258_v51 }
  0xad   : > { %v633_v44 = vmax.f32 %v579_v22, 0.0  ;;  %v634_v38 = vmax.f32 %v580_v59, 0.0  ;;  %v1218_v41 = vshll.u32 %v5303_v19, 16  ;;  %v635_v21 = vmax.f32 %v581_v3, 0.0  ;;  %v4266_v3 = vld [vmem:[%s6189_s1 + $0xc8] sm:$0xff] }
  0xae   : > { %v1201_v8 = vrot.slane %v1199_v37, 4  ;;  %v1204_v54 = vrot.slane %v1202_v43, 5  ;;  %v1210_v10 = vrot.slane %v1208_v50, 5  ;;  %v1214_v13 = vrot.slane %v1212_v30, 4  ;;  %2323 = vmatpush.bf16.msrb.mxu3 %v4266_v3  ;;  %v4241_v3 = vld [vmem:[%s6189_s1] sm:$0xff] }
  0xaf   : > { %v692_v6 = vsel %vm4731_vm5, %v633_v44, %v4355_v5  ;;  %v693_v46 = vsel %vm4731_vm5, %v634_v38, %v4356_v53  ;;  %v1220_v59 = vrot.slane %v1218_v41, 5  ;;  %v694_v0 = vsel %vm4731_vm5, %v635_v21, %v465_v58  ;;  %v423_v58 = vld [vmem:[#allocation2 + $0x28] sm:$0xf] }
  0xb0   : > { %v1205_v22 = vor.u32 %v1204_v54, %v1201_v8  ;;  %v936_v37 = vsel %vm789_vm0, %v692_v6, 0.0  ;;  %v5323_v43 = vpack.c.bf16 %v693_v46, %v693_v46  ;;  %v1215_v50 = vor.u32 %v1214_v13, %v1210_v10 }
  0xb1   : > { %v5327_v30 = vpack.c.bf16 %v936_v37, %v936_v37  ;;  %v938_v53 = vsel %vm848_vm1, %v694_v0, 0.0  ;;  %v4372_v46 = vunpack.c.h.bf16 %v5312_v12  ;;  %v5341_v0 = vld [vmem:[#allocation2 + $0x30] sm:$0xff]  }
  0xb2   : > { %6290 = vst [vmem:[#allocation26_spill] sm:$0xff] %v5323_v43  ;;  %v1206_v5 = vrot.slane %v1205_v22, 4  ;;  %v1304_v44 = vshll.u32 %v5323_v43, 16  ;;  %v1308_v38 = vshrl.u32 %v5323_v43, 16  ;;  %v1216_v6 = vrot.slane %v1215_v50, 4 }
  0xb3   : > { %6291 = vst [vmem:[#allocation27_spill] sm:$0xff] %v5327_v30  ;;  %v5334_v8 = vpack.c.bf16 %v938_v53, %v938_v53  ;;  %v1295_v54 = vshrl.u32 %v5327_v30, 16  ;;  %v1298_v41 = vshll.u32 %v5327_v30, 16  ;;  %v534_v30 = vmul.f32 %v5250_v60, %v4372_v46 }
  0xb4   : > { %v1211_v51 = vsel %vm4789_vm6, %v1206_v5, %v1210_v10  ;;  %v1306_v13 = vrot.slane %v1304_v44, 5  ;;  %v1310_v21 = vrot.slane %v1308_v38, 4  ;;  %v1221_v22 = vsel %vm4789_vm6, %v1216_v6, %v1220_v59  ;;  %v4275_v10 = vld [vmem:[%s6189_s1 + $0x110] sm:$0xff]  ;;  %v4242_v5 = vld [vmem:[%s6189_s1 + $0x8] sm:$0xff]  ;;  %v4257_v6 = vld [vmem:[%s6189_s1 + $0x80] sm:$0xff] }
  0xb5   : > { %6292 = vst [vmem:[#allocation28_spill] sm:$0xff] %v5334_v8  ;;  %v1445_v37 = vunpack.c.l.b16 %v1211_v51  ;;  %v1297_v50 = vrot.slane %v1295_v54, 4  ;;  %v1300_v53 = vrot.slane %v1298_v41, 5  ;;  %v1446_v44 = vunpack.c.l.b16 %v1221_v22  ;;  %2536 = vmatpush.bf16.msrb.mxu0 %v4275_v10  ;;  %1782 = vmatpush.bf16.msrb.mxu1 %v4242_v5 }
  0xb6   : > { %v1311_v38 = vor.u32 %v1310_v21, %v1306_v13  ;;  %v1314_v26 = vshll.u32 %v5334_v8, 16  ;;  %v477_v59 = vunpack.c.l.bf16 %v423_v58  ;;  %v6293_v41 = vunpack.c.l.bf16 %v5312_v12  ;;  %v4265_v58 = vld [vmem:[%s6189_s1 + $0xc0] sm:$0xff]  ;;  %v4274_v21 = vld [vmem:[%s6189_s1 + $0x108] sm:$0xff]  ;;  %2132 = vmatpush.bf16.msrb.mxu2 %v4257_v6 }
  0xb7   : > { %v1301_v54 = vor.u32 %v1300_v53, %v1297_v50  ;;  %v4323_v43 = vunpack.c.l.bf16 %v5341_v0  ;;  %v5371_v22 = vpack.c.b16 %v1446_v44, %v1445_v37  ;;  %v592_v7 = vadd.f32 %v5266_v11, %v534_v30  ;;  %2324 = vmatpush.bf16.msrb.mxu3 %v4265_v58  ;;  %v4273_v30 = vld [vmem:[%s6189_s1 + $0x100] sm:$0xff] }
  0xb8   : > { %v533_v51 = vmul.f32 %v5250_v60, %v6293_v41  ;;  %v1312_v50 = vrot.slane %v1311_v38, 4  ;;  %v1316_v53 = vrot.slane %v1314_v26, 5  ;;  %v535_v41 = vmul.f32 %v5250_v60, %v477_v59 }
  0xb9   : > { %6294 = vst [vmem:[#allocation29_spill] sm:$0xff] %v5371_v22  ;;  %v1302_v10 = vrot.slane %v1301_v54, 4  ;;  %v4324_v56 = vunpack.c.h.bf16 %v5341_v0  ;;  %1586 = vmatmul.bf16.gmra.mxu1 %v5371_v22  ;;  %v441_v5 = vunpack.c.l.bf16 %v5363_v16  ;;  %v497_v44 = vmul.f32 %v5250_v60, %v4323_v43  ;;  %2537 = vmatpush.bf16.msrb.mxu0 %v4274_v21 }
  0xba   : > { %v591_v8 = vadd.f32 %v5266_v11, %v533_v51  ;;  %v1317_v26 = vsel %vm4789_vm6, %v1312_v50, %v1316_v53  ;;  %v593_v37 = vadd.f32 %v5266_v11, %v535_v41  ;;  %v646_v51 = vmax.f32 %v592_v7, 0.0  ;;  %1783 = vmatpush.bf16.msrb.mxu1 %v4241_v3 }
  0xbb   : > { %v1307_v38 = vsel %vm4789_vm6, %v1302_v10, %v1306_v13  ;;  %v1454_v6 = vunpack.c.l.b16 %v1317_v26  ;;  %v498_v53 = vmul.f32 %v5250_v60, %v4324_v56  ;;  %v499_v16 = vmul.f32 %v5250_v60, %v441_v5 }
  0xbc   : > { %v645_v54 = vmax.f32 %v591_v8, 0.0  ;;  %v1453_v0 = vunpack.c.l.b16 %v1307_v38  ;;  %v647_v50 = vmax.f32 %v593_v37, 0.0  ;;  %v6295_v41 = vunpack.c.l.bf16 %v5312_v12  ;;  %v4296_v12 = vld [vmem:[%s6189_s1 + $0x1b8] sm:$0xff] }
  0xbd   : > { %v705_v7 = vsel %vm4731_vm5, %v646_v51, %v4372_v46  ;;  %v555_v8 = vadd.f32 %v5266_v11, %v497_v44  ;;  %v556_v26 = vadd.f32 %v5266_v11, %v498_v53  ;;  %v557_v37 = vadd.f32 %v5266_v11, %v499_v16  ;;  %2538 = vmatpush.bf16.msrb.mxu0 %v4273_v30 }
  0xbe   : > { %v704_v13 = vsel %vm4731_vm5, %v645_v54, %v6295_v41  ;;  %v5400_v58 = vpack.c.b16 %v1454_v6, %v1453_v0  ;;  %v706_v21 = vsel %vm4731_vm5, %v647_v50, %v477_v59  ;;  %v5406_v60 = vpack.c.bf16 %v705_v7, %v705_v7  ;;  %2921 = vmatpush.bf16.msra.mxu2 %v4296_v12 }
  0xbf   : > { %v948_v10 = vsel %vm789_vm0, %v704_v13, 0.0  ;;  %v950_v3 = vsel %vm848_vm1, %v706_v21, 0.0  ;;  %v609_v6 = vmax.f32 %v555_v8, 0.0  ;;  %v610_v0 = vmax.f32 %v556_v26, 0.0 }
  0xc0   : > { %6296 = vst [vmem:[#allocation30_spill] sm:$0xff] %v5400_v58  ;;  %v5413_v46 = vpack.c.bf16 %v948_v10, %v948_v10  ;;  %1606 = vmatmul.bf16.gmra.mxu2 %v5400_v58  ;;  %v5418_v59 = vpack.c.bf16 %v950_v3, %v950_v3  ;;  %v1400_v44 = vshll.u32 %v5406_v60, 16  ;;  %v1404_v38 = vshrl.u32 %v5406_v60, 16 }
  0xc1   : > { %v611_v50 = vmax.f32 %v557_v37, 0.0  ;;  %v668_v30 = vsel %vm4731_vm5, %v609_v6, %v4323_v43  ;;  %v669_v7 = vsel %vm4731_vm5, %v610_v0, %v4324_v56  ;;  %v4304_v56 = vld [vmem:[%s6189_s1 + $0x1f8] sm:$0xff] }
  0xc2   : > { %6297 = vst [vmem:[#allocation31_spill] sm:$0xff] %v5413_v46  ;;  %v1391_v54 = vshrl.u32 %v5413_v46, 16  ;;  %v1394_v51 = vshll.u32 %v5413_v46, 16  ;;  %v1402_v53 = vrot.slane %v1400_v44, 5  ;;  %v1406_v41 = vrot.slane %v1404_v38, 4  ;;  %v4312_v38 = vld [vmem:[%s6189_s1 + $0x238] sm:$0xff]  ;;  %3135 = vmatpush.bf16.msra.mxu3 %v4304_v56 }
  0xc3   : > { %6298 = vst [vmem:[#allocation32_spill] sm:$0xff] %v5418_v59  ;;  %v1410_v11 = vshll.u32 %v5418_v59, 16  ;;  %v670_v8 = vsel %vm4731_vm5, %v611_v50, %v441_v5  ;;  %v912_v12 = vsel %vm789_vm0, %v668_v30, 0.0  ;;  %v5437_v43 = vpack.c.bf16 %v669_v7, %v669_v7  ;;  %v4288_v5 = vld [vmem:[%s6189_s1 + $0x178] sm:$0xff]  ;;  %3333 = vmatpush.bf16.msra.mxu0 %v4312_v38 }
  0xc4   : > { %v1393_v16 = vrot.slane %v1391_v54, 4  ;;  %v1396_v13 = vrot.slane %v1394_v51, 5  ;;  %v1407_v21 = vor.u32 %v1406_v41, %v1402_v53  ;;  %v914_v3 = vsel %vm848_vm1, %v670_v8, 0.0  ;;  %2729 = vmatpush.bf16.msra.mxu1 %v4288_v5 }
  0xc5   : > { %v1412_v10 = vrot.slane %v1410_v11, 5  ;;  %v5435_v37 = vpack.c.bf16 %v912_v12, %v912_v12  ;;  %v5439_v44 = vpack.c.bf16 %v914_v3, %v914_v3  ;;  %v4572_v54 = vmov 0.0|0.0  }
  0xc6   : > { %v1397_v26 = vor.u32 %v1396_v13, %v1393_v16  ;;  %v1408_v6 = vrot.slane %v1407_v21, 4  ;;  %v1664_v51 = vunpack.c.l.b16 %v4572_v54  ;;  %v3882_v0 = vrot.slane %v4572_v54, 9 }
  0xc7   : > { %v1886_v50 = vrot.slane %v4572_v54, 5  ;;  %v1103_v11 = vshrl.u32 %v5435_v37, 16  ;;  %v1106_v30 = vshll.u32 %v5435_v37, 16  ;;  %v1112_v16 = vshll.u32 %v5437_v43, 16 }
  0xc8   : > { %v1398_v41 = vrot.slane %v1397_v26, 4  ;;  %v1413_v13 = vsel %vm4789_vm6, %v1408_v6, %v1412_v10  ;;  %v1116_v7 = vshrl.u32 %v5437_v43, 16  ;;  %v1122_v8 = vshll.u32 %v5439_v44, 16 }
  0xc9   : > { %v5457_v21 = vpack.c.b16 %v1664_v51, %v1664_v51  ;;  %v1462_v3 = vunpack.c.l.b16 %v1413_v13  ;;  %v1105_v26 = vrot.slane %v1103_v11, 4  ;;  %v1108_v54 = vrot.slane %v1106_v30, 5 }
  0xca   : > { %v1403_v12 = vsel %vm4789_vm6, %v1398_v41, %v1402_v53  ;;  %v1114_v59 = vrot.slane %v1112_v16, 5  ;;  %v1118_v56 = vrot.slane %v1116_v7, 4  ;;  %v1888_v10 = vrot.slane %v1886_v50, 4 }
  0xcb   : > { %6299 = vst [vmem:[#allocation33_spill] sm:$0xff] %v5457_v21  ;;  %v1461_v34 = vunpack.c.l.b16 %v1403_v12  ;;  %1784 = vmatmul.bf16.vlgmr.msrb.gmra.mxu1 %v5457_v21  ;;  %v1109_v5 = vor.u32 %v1108_v54, %v1105_v26  ;;  %v1124_v46 = vrot.slane %v1122_v8, 5  ;;  %v6300_v38 = vmov 0 }
  0xcc   : > { %v1119_v51 = vor.u32 %v1118_v56, %v1114_v59  ;;  %v6301_v38 = vsel %vm5464_vm9, 4294967295, %v6300_v38  ;;  %v1887_v41 = vsel %vm5464_vm9, %v3882_v0, %v1886_v50  ;;  %v1890_v11 = vsel %vm5464_vm9, %v1888_v10, %v1886_v50 }
  0xcd   : > { %v5462_v6 = vpack.c.b16 %v1462_v3, %v1461_v34  ;;  %6302 = vst [vmem:[#allocation34_spill] sm:$0xff] %v6301_v38  ;;  %v1110_v53 = vrot.slane %v1109_v5, 4  ;;  %v2013_v16 = vunpack.c.l.b16 %v1887_v41  ;;  %v2014_v13 = vunpack.c.l.b16 %v1890_v11 }
  0xce   : > { %v1120_v30 = vrot.slane %v1119_v51, 4  ;;  %v1893_v7 = vrot.slane %v5059_v9, 5  ;;  %v1668_v8 = vunpack.c.l.b16 %v5238_v39  ;;  %v1669_v50 = vunpack.c.l.b16 %v5236_v15 }
  0xcf   : > { %1626 = vmatmul.bf16.gmra.mxu3 %v5462_v6  ;;  %v1115_v34 = vsel %vm4789_vm6, %v1110_v53, %v1114_v59  ;;  %v5479_v0 = vpack.c.b16 %v2014_v13, %v2013_v16  ;;  %v3883_v59 = vrot.slane %v5061_v36, 9  ;;  %v1896_v10 = vrot.slane %v5063_v35, 5 }
  0xd0   : > { %v1125_v12 = vsel %vm4789_vm6, %v1120_v30, %v1124_v46  ;;  %v1437_v3 = vunpack.c.l.b16 %v1115_v34  ;;  %v5483_v54 = vpack.c.b16 %v1669_v50, %v1668_v8  ;;  %v1895_v5 = vrot.slane %v1893_v7, 4  ;;  %v4287_v50 = vld [vmem:[%s6189_s1 + $0x170] sm:$0xff] }
  0xd1   : > { %6303 = vst [vmem:[#allocation35_spill] sm:$0xff] %v5479_v0  ;;  %v1438_v26 = vunpack.c.l.b16 %v1125_v12  ;;  %2133 = vmatmul.bf16.vlgmr.msrb.gmra.mxu2 %v5479_v0  ;;  %v1666_v51 = vunpack.c.l.b16 %v5061_v36  ;;  %v1667_v46 = vunpack.c.l.b16 %v5059_v9  ;;  %v3884_v53 = vrot.slane %v5238_v39, 9  ;;  %v4295_v12 = vld [vmem:[%s6189_s1 + $0x1b0] sm:$0xff]  ;;  %2730 = vmatpush.bf16.msra.mxu1 %v4287_v50 }
  0xd2   : > { %v1900_v41 = vrot.slane %v5236_v15, 5  ;;  %v1903_v11 = vrot.slane %v5240_v2, 5  ;;  %v1894_v30 = vsel %vm5464_vm9, %v3883_v59, %v1893_v7  ;;  %v1897_v16 = vsel %vm5464_vm9, %v1895_v5, %v1896_v10  ;;  %2922 = vmatpush.bf16.msra.mxu2 %v4295_v12  ;;  %v4310_v12 = vld [vmem:[%s6189_s1 + $0x228] sm:$0xff] }
  0xd3   : > { %v5485_v56 = vpack.c.b16 %v1438_v26, %v1437_v3  ;;  %v1697_v13 = vpack.c.b16 %v1667_v46, %v1666_v51  ;;  %v2015_v39 = vunpack.c.l.b16 %v1894_v30  ;;  %v2016_v15 = vunpack.c.l.b16 %v1897_v16  ;;  %v4303_v3 = vld [vmem:[%s6189_s1 + $0x1f0] sm:$0xff] }
  0xd4   : > { %v1901_v35 = vsel %vm5464_vm9, %v3884_v53, %v1900_v41  ;;  %v1902_v36 = vrot.slane %v1900_v41, 4  ;;  %v4311_v26 = vld [vmem:[%s6189_s1 + $0x230] sm:$0xff]  ;;  %3136 = vmatpush.bf16.msra.mxu3 %v4303_v3  ;;  %v3885_v59 = vrot.slane %v5435_v37, 9  ;;  %v1910_v10 = vrot.slane %v5439_v44, 5 }
  0xd5   : > { %1566 = vmatmul.bf16.gmra.mxu0 %v5485_v56  ;;  %v2017_v9 = vunpack.c.l.b16 %v1901_v35  ;;  %v5505_v7 = vpack.c.b16 %v2016_v15, %v2015_v39  ;;  %v1670_v51 = vunpack.c.l.b16 %v5435_v37  ;;  %v1671_v46 = vunpack.c.l.b16 %v5437_v43  ;;  %v5537_v35 = vpop.f32.mrf.mxu1  ;;  %v4302_v15 = vld [vmem:[%s6189_s1 + $0x1e8] sm:$0xff] }
  0xd6   : > { %v1904_v34 = vsel %vm5464_vm9, %v1902_v36, %v1903_v11  ;;  %3334 = vmatpush.bf16.msra.mxu0 %v4311_v26  ;;  %v1914_v44 = vrot.slane %v4752_v17, 5  ;;  %v3886_v36 = vrot.slane %v4756_v20, 9  ;;  %v1673_v39 = vunpack.c.l.b16 %v4752_v17 }
  0xd7   : > { %v2018_v8 = vunpack.c.l.b16 %v1904_v34  ;;  %v5534_v11 = vpack.c.b16 %v1671_v46, %v1670_v51  ;;  %v1672_v34 = vunpack.c.l.b16 %v4756_v20  ;;  %v3887_v46 = vrot.slane %v4929_v62, 9 }
  0xd8   : > { %v1915_v20 = vsel %vm5464_vm9, %v3886_v36, %v1914_v44  ;;  %3137 = vmatpush.bf16.msra.mxu3 %v4302_v15  ;;  %v4293_v15 = vld [vmem:[%s6189_s1 + $0x1a0] sm:$0xff] }
  0xd9   : > { %v5503_v2 = vpack.c.b16 %v2018_v8, %v2017_v9  ;;  %v1917_v9 = vrot.slane %v4761_v24, 5  ;;  %v4286_v8 = vld [vmem:[%s6189_s1 + $0x168] sm:$0xff]  ;;  %v5567_v24 = vpop.f32.mrf.mxu2  ;;  %v5569_v50 = vpack.c.b16 %v1673_v39, %v1672_v34  ;;  %v2021_v26 = vunpack.c.l.b16 %v1915_v20 }
  0xda   : > { %2731 = vmatpush.bf16.msra.mxu1 %v4286_v8  ;;  %3335 = vmatpush.bf16.msra.mxu0 %v4310_v12  ;;  %v1928_v12 = vrot.slane %v5108_v55, 5 }
  0xdb   : > { %1789 = vmatmul.bf16.gmra.mxu1 %v1697_v13 }
  0xdd   : > { %v5561_v3 = vpop.f32.mrf.mxu1 }
  0xdf   : > { %2325 = vmatmul.bf16.vlgmr.msrb.gmra.mxu3 %v1697_v13  ;;  %v1916_v13 = vrot.slane %v1914_v44, 4  ;;  %v5588_v44 = vpop.f32.mrf.mxu0 }
  0xe1   : > { %2138 = vmatmul.bf16.gmra.mxu2 %v5505_v7  ;;  %v1918_v17 = vsel %vm5464_vm9, %v1916_v13, %v1917_v9  ;;  %v5578_v51 = vpop.f32.mrf.mxu2 }
  0xe5   : > { %2539 = vmatmul.bf16.vlgmr.msrb.gmra.mxu0 %v5102_v1  ;;  %v1907_v1 = vrot.slane %v5437_v43, 5  ;;  %v4294_v43 = vld [vmem:[%s6189_s1 + $0x1a8] sm:$0xff] }
  0xe6   : > { %2923 = vmatpush.bf16.msra.mxu2 %v4294_v43  ;;  %v5586_v43 = vpop.f32.mrf.mxu3 }
  0xe7   : > { %v1909_v5 = vrot.slane %v1907_v1, 4  ;;  %v1908_v53 = vsel %vm5464_vm9, %v3885_v59, %v1907_v1  ;;  %v2022_v1 = vunpack.c.l.b16 %v1918_v17  ;;  %6304 = vst [vmem:[#allocation36_spill] sm:$0xff] %v5586_v43  ;;  %v5610_v20 = vpop.f32.mrf.mxu0 }
  0xe8   : > { %v2019_v30 = vunpack.c.l.b16 %v1908_v53 }
  0xe9   : > { %v1911_v41 = vsel %vm5464_vm9, %v1909_v5, %v1910_v10  ;;  %v5573_v59 = vpack.c.b16 %v2022_v1, %v2021_v26  ;;  %v5575_v5 = vpop.f32.mrf.mxu1  ;;  %v1921_v10 = vrot.slane %v4927_v61, 5  ;;  %v3888_v26 = vrot.slane %v5106_v14, 9 }
  0xea   : > { %v2020_v16 = vunpack.c.l.b16 %v1911_v41  ;;  %v1924_v41 = vrot.slane %v4931_v63, 5  ;;  %2924 = vmatpush.bf16.msra.mxu2 %v4293_v15  ;;  %v1930_v1 = vrot.slane %v1928_v12, 4 }
  0xeb   : > { %1794 = vmatmul.bf16.gmra.mxu1 %v5483_v54  ;;  %v1923_v53 = vrot.slane %v1921_v10, 4  ;;  %v1922_v36 = vsel %vm5464_vm9, %v3887_v46, %v1921_v10  ;;  %v1931_v10 = vrot.slane %v5110_v31, 5  ;;  %v1676_v46 = vunpack.c.l.b16 %v5106_v14  ;;  %v4309_v31 = vld [vmem:[%s6189_s1 + $0x220] sm:$0xff] }
  0xec   : > { %v5540_v37 = vpack.c.b16 %v2020_v16, %v2019_v30  ;;  %v1674_v30 = vunpack.c.l.b16 %v4929_v62  ;;  %v1675_v16 = vunpack.c.l.b16 %v4927_v61  ;;  %v2023_v62 = vunpack.c.l.b16 %v1922_v36  ;;  %3336 = vmatpush.bf16.msra.mxu0 %v4309_v31 }
  0xed   : > { %v1925_v13 = vsel %vm5464_vm9, %v1923_v53, %v1924_v41  ;;  %v1677_v53 = vunpack.c.l.b16 %v5108_v55  ;;  %v1929_v14 = vsel %vm5464_vm9, %v3888_v26, %v1928_v12  ;;  %v1932_v55 = vsel %vm5464_vm9, %v1930_v1, %v1931_v10 }
  0xee   : > { %v5594_v9 = vpack.c.b16 %v1675_v16, %v1674_v30  ;;  %v2024_v61 = vunpack.c.l.b16 %v1925_v13  ;;  %v5607_v8 = vpop.f32.mrf.mxu3  ;;  %v4301_v30 = vld [vmem:[%s6189_s1 + $0x1e0] sm:$0xff]  ;;  %v2026_v15 = vunpack.c.l.b16 %v1932_v55  ;;  %v1935_v1 = vrot.slane %v5294_v18, 5 }
  0xef   : > { %2330 = vmatmul.bf16.gmra.mxu3 %v5483_v54  ;;  %6305 = vst [vmem:[#allocation37_spill] sm:$0xff] %v5607_v8  ;;  %v4285_v16 = vld [vmem:[%s6189_s1 + $0x160] sm:$0xff]  ;;  %v5635_v36 = vpack.c.b16 %v1677_v53, %v1676_v46  ;;  %v3889_v46 = vrot.slane %v5292_v25, 9  ;;  %v1678_v31 = vunpack.c.l.b16 %v5292_v25 }
  0xf0   : > { %v5602_v39 = vpack.c.b16 %v2024_v61, %v2023_v62  ;;  %3138 = vmatpush.bf16.msra.mxu3 %v4301_v30  ;;  %2732 = vmatpush.bf16.msra.mxu1 %v4285_v16  ;;  %v2025_v61 = vunpack.c.l.b16 %v1929_v14  ;;  %v1937_v53 = vrot.slane %v1935_v1, 4  ;;  %v1938_v30 = vrot.slane %v5303_v19, 5 }
  0xf1   : > { %2143 = vmatmul.bf16.gmra.mxu2 %v5503_v2  ;;  %v5596_v34 = vpop.f32.mrf.mxu1  ;;  %v1679_v14 = vunpack.c.l.b16 %v5294_v18 }
  0xf2   : > { %v5645_v12 = vpack.c.b16 %v2026_v15, %v2025_v61  ;;  %v1936_v61 = vsel %vm5464_vm9, %v3889_v46, %v1935_v1  ;;  %v1939_v15 = vsel %vm5464_vm9, %v1937_v53, %v1938_v30  ;;  %v1942_v46 = vrot.slane %v4783_v47, 5  ;;  %v4292_v53 = vld [vmem:[%s6189_s1 + $0x198] sm:$0xff] }
  0xf3   : > { %v5666_v21 = vpack.c.b16 %v1679_v14, %v1678_v31  ;;  %v2027_v19 = vunpack.c.l.b16 %v1936_v61  ;;  %v2028_v25 = vunpack.c.l.b16 %v1939_v15  ;;  %v3890_v31 = vrot.slane %v4778_v42, 9  ;;  %2925 = vmatpush.bf16.msra.mxu2 %v4292_v53 }
  0xf4   : > { %v5599_v63 = vpop.f32.mrf.mxu2  ;;  %6307 = vst [vmem:[#allocation39_spill] sm:$0xff] %v5645_v12  ;;  %v1944_v14 = vrot.slane %v1942_v46, 4  ;;  %v1945_v61 = vrot.slane %v4785_v48, 5  ;;  %v1680_v15 = vunpack.c.l.b16 %v4778_v42 }
  0xf5   : > { %2544 = vmatmul.bf16.gmra.mxu0 %v5297_v27  ;;  %6309 = vst [vmem:[#allocation41_spill] sm:$0xff] %v5666_v21  ;;  %v1943_v48 = vsel %vm5464_vm9, %v3890_v31, %v1942_v46  ;;  %v1949_v31 = vrot.slane %v4961_v32, 5 }
  0xf6   : > { %v1946_v42 = vsel %vm5464_vm9, %v1944_v14, %v1945_v61 }
  0xf7   : > { %v2030_v8 = vunpack.c.l.b16 %v1946_v42 }
  0xfb   : > { %1799 = vmatmul.bf16.gmra.mxu1 %v5534_v11 }
  0xfc   : > { %v5620_v41 = vpop.f32.mrf.mxu2 }
  0xff   : > { %2335 = vmatmul.bf16.gmra.mxu3 %v5534_v11 }
 0x101   : > { %2148 = vmatmul.bf16.gmra.mxu2 %v5540_v37  ;;  %v5637_v13 = vpop.f32.mrf.mxu3 }
 0x102   : > { %6306 = vst [vmem:[#allocation38_spill] sm:$0xff] %v5637_v13  ;;  %v5639_v62 = vpop.f32.mrf.mxu0 }
 0x105   : > { %2549 = vmatmul.bf16.gmra.mxu0 %v5485_v56 }
 0x109   : > { %v5651_v10 = vpop.f32.mrf.mxu3 }
 0x10a   : > { %6308 = vst [vmem:[#allocation40_spill] sm:$0xff] %v5651_v10  ;;  %v5655_v16 = vpop.f32.mrf.mxu0 }
 0x10b   : > { %1804 = vmatmul.bf16.gmra.mxu1 %v5569_v50 }
 0x10f   : > { %2340 = vmatmul.bf16.gmra.mxu3 %v5569_v50  ;;  %v5613_v17 = vpop.f32.mrf.mxu1 }
 0x111   : > { %2153 = vmatmul.bf16.gmra.mxu2 %v5573_v59 }
 0x115   : > { %2554 = vmatmul.bf16.gmra.mxu0 %v4824_v28 }
 0x117   : > { %v5642_v0 = vpop.f32.mrf.mxu1 }
 0x11b   : > { %1809 = vmatmul.bf16.gmra.mxu1 %v5594_v9  ;;  %v5647_v26 = vpop.f32.mrf.mxu2 }
 0x11f   : > { %2345 = vmatmul.bf16.gmra.mxu3 %v5594_v9 }
 0x121   : > { %2158 = vmatmul.bf16.gmra.mxu2 %v5602_v39 }
 0x123   : > { %v5668_v10 = vpop.f32.mrf.mxu2 }
 0x125   : > { %2559 = vmatmul.bf16.gmra.mxu0 %v5005_v29 }
 0x128   : > { %v5673_v18 = vpop.f32.mrf.mxu0 }
 0x129   : > { %v5671_v13 = vpop.f32.mrf.mxu3 }
 0x12a   : > { %6310 = vst [vmem:[#allocation42_spill] sm:$0xff] %v5671_v13  ;;  %v4284_v13 = vld [vmem:[%s6189_s1 + $0x158] sm:$0xff] }
 0x12b   : > { %1814 = vmatmul.bf16.gmra.mxu1 %v5635_v36 }
 0x12c   : > { %2733 = vmatpush.bf16.msra.mxu1 %v4284_v13 }
 0x12f   : > { %2350 = vmatmul.bf16.gmra.mxu3 %v5635_v36 }
 0x131   : > { %2163 = vmatmul.bf16.gmra.mxu2 %v5645_v12 }
 0x135   : > { %2564 = vmatmul.bf16.gmra.mxu0 %v5179_v23  ;;  %v5676_v23 = vpack.c.b16 %v2028_v25, %v2027_v19  ;;  %v1681_v19 = vunpack.c.l.b16 %v4783_v47  ;;  %v4300_v25 = vld [vmem:[%s6189_s1 + $0x1d8] sm:$0xff]  ;;  %v5704_v47 = vpop.f32.mrf.mxu0 }
 0x136   : > { %v5660_v55 = vpop.f32.mrf.mxu1  ;;  %3139 = vmatpush.bf16.msra.mxu3 %v4300_v25  ;;  %v1952_v25 = vrot.slane %v4965_v45, 5 }
 0x137   : > { %6311 = vst [vmem:[#allocation43_spill] sm:$0xff] %v5676_v23  ;;  %v5706_v53 = vpack.c.b16 %v1681_v19, %v1680_v15  ;;  %v3891_v15 = vrot.slane %v4959_v40, 9  ;;  %v1951_v19 = vrot.slane %v1949_v31, 4 }
 0x139   : > { %6313 = vst [vmem:[#allocation45_spill] sm:$0xff] %v5706_v53 }
 0x13b   : > { %1819 = vmatmul.bf16.gmra.mxu1 %v5666_v21 }
 0x13e   : > { %v5678_v1 = vpop.f32.mrf.mxu1 }
 0x13f   : > { %2355 = vmatmul.bf16.gmra.mxu3 %v5666_v21 }
 0x141   : > { %2168 = vmatmul.bf16.gmra.mxu2 %v5676_v23  ;;  %v5698_v23 = vpop.f32.mrf.mxu3 }
 0x142   : > { %6312 = vst [vmem:[#allocation44_spill] sm:$0xff] %v5698_v23  ;;  %v4308_v23 = vld [vmem:[%s6189_s1 + $0x218] sm:$0xff] }
 0x143   : > { %v5685_v30 = vpop.f32.mrf.mxu2  ;;  %3337 = vmatpush.bf16.msra.mxu0 %v4308_v23 }
 0x145   : > { %2569 = vmatmul.bf16.gmra.mxu0 %v5371_v22  ;;  %v2029_v22 = vunpack.c.l.b16 %v1943_v48  ;;  %v1682_v48 = vunpack.c.l.b16 %v4959_v40 }
 0x147   : > { %v5715_v46 = vpack.c.b16 %v2030_v8, %v2029_v22  ;;  %v1683_v22 = vunpack.c.l.b16 %v4961_v32 }
 0x148   : > { %v1785_v21 = vpop.f32.mrf.mxu1 }
 0x149   : > { %6314 = vst [vmem:[#allocation46_spill] sm:$0xff] %v5715_v46  ;;  %v1786_v23 = vadd.f32 %v1785_v21, %v5588_v44  ;;  %v5733_v43 = vpack.c.b16 %v1683_v22, %v1682_v48 }
 0x14b   : > { %1824 = vmatmul.bf16.gmra.mxu1 %v5706_v53  ;;  %v5712_v12 = vpop.f32.mrf.mxu2  ;;  %6316 = vst [vmem:[#allocation48_spill] sm:$0xff] %v5733_v43 }
 0x14f   : > { %2360 = vmatmul.bf16.gmra.mxu3 %v5706_v53  ;;  %v1950_v53 = vsel %vm5464_vm9, %v3891_v15, %v1949_v31 }
 0x150   : > { %v1787_v13 = vpop.f32.mrf.mxu1  ;;  %v2031_v40 = vunpack.c.l.b16 %v1950_v53  ;;  %v4291_v53 = vld [vmem:[%s6189_s1 + $0x190] sm:$0xff] }
 0x151   : > { %2173 = vmatmul.bf16.gmra.mxu2 %v5715_v46  ;;  %v1953_v46 = vsel %vm5464_vm9, %v1951_v19, %v1952_v25  ;;  %v1788_v44 = vadd.f32 %v1787_v13, %v5610_v20  ;;  %v1956_v19 = vrot.slane %v5132_v49, 5 }
 0x152   : > { %v5718_v14 = vpop.f32.mrf.mxu3  ;;  %v5720_v61 = vpop.f32.mrf.mxu0  ;;  %v2032_v32 = vunpack.c.l.b16 %v1953_v46  ;;  %v6319_v46 = vld [vmem:[#allocation18_spill] sm:$0xff]  ;;  %2926 = vmatpush.bf16.msra.mxu2 %v4291_v53 }
 0x153   : > { %6315 = vst [vmem:[#allocation47_spill] sm:$0xff] %v5718_v14  ;;  %v3892_v20 = vrot.slane %v6319_v46, 9  ;;  %v1958_v13 = vrot.slane %v1956_v19, 4 }
 0x154   : > { %v2134_v8 = vpop.f32.mrf.mxu2  ;;  %v5742_v31 = vpack.c.b16 %v2032_v32, %v2031_v40  ;;  %v1684_v32 = vunpack.c.l.b16 %v6319_v46 }
 0x155   : > { %2574 = vmatmul.bf16.gmra.mxu0 %v4867_v57  ;;  %v2214_v42 = vadd.f32 %v2134_v8, %v1786_v23 }
 0x156   : > { %6318 = vst [vmem:[#allocation50_spill] sm:$0xff] %v5742_v31 }
 0x158   : > { %v1790_v14 = vpop.f32.mrf.mxu1 }
 0x159   : > { %v1791_v40 = vadd.f32 %v1790_v14, %v5639_v62  ;;  %v1957_v14 = vsel %vm5464_vm9, %v3892_v20, %v1956_v19  ;;  %v4307_v19 = vld [vmem:[%s6189_s1 + $0x210] sm:$0xff] }
 0x15a   : > { %v5735_v45 = vpop.f32.mrf.mxu3  ;;  %v5737_v21 = vpop.f32.mrf.mxu0  ;;  %3338 = vmatpush.bf16.msra.mxu0 %v4307_v19  ;;  %v6328_v19 = vld [vmem:[#allocation21_spill] sm:$0xff] }
 0x15b   : > { %6317 = vst [vmem:[#allocation49_spill] sm:$0xff] %v5735_v45  ;;  %1829 = vmatmul.bf16.gmra.mxu1 %v5733_v43  ;;  %v6320_v45 = vld [vmem:[#allocation19_spill] sm:$0xff] }
 0x15c   : > { %v2136_v23 = vpop.f32.mrf.mxu2 }
 0x15d   : > { %v2215_v8 = vadd.f32 %v2136_v23, %v1788_v44  ;;  %v1685_v44 = vunpack.c.l.b16 %v5132_v49 }
 0x15f   : > { %2365 = vmatmul.bf16.gmra.mxu3 %v5733_v43  ;;  %v1959_v43 = vrot.slane %v6320_v45, 5  ;;  %v4283_v45 = vld [vmem:[%s6189_s1 + $0x150] sm:$0xff] }
 0x160   : > { %v1792_v15 = vpop.f32.mrf.mxu1  ;;  %2734 = vmatpush.bf16.msra.mxu1 %v4283_v45 }
 0x161   : > { %2178 = vmatmul.bf16.gmra.mxu2 %v5742_v31  ;;  %v4299_v31 = vld [vmem:[%s6189_s1 + $0x1d0] sm:$0xff]  ;;  %v1960_v49 = vsel %vm5464_vm9, %v1958_v13, %v1959_v43  ;;  %v1793_v20 = vadd.f32 %v1792_v15, %v5655_v16  ;;  %v6325_v16 = vld [vmem:[#allocation27_spill] sm:$0xff] }
 0x162   : > { %v2326_v25 = vpop.f32.mrf.mxu3  ;;  %v2540_v48 = vpop.f32.mrf.mxu0  ;;  %3140 = vmatpush.bf16.msra.mxu3 %v4299_v31  ;;  %v3893_v15 = vrot.slane %v6325_v16, 9 }
 0x163   : > { %v2406_v22 = vadd.f32 %v2326_v25, %v2214_v42  ;;  %v6322_v42 = vld [vmem:[#allocation14_spill] sm:$0xff] }
 0x164   : > { %v2139_v25 = vpop.f32.mrf.mxu2 }
 0x165   : > { %v5754_v23 = vadd.f32 %v2540_v48, %v2406_v22  ;;  %2579 = vmatmul.bf16.gmra.mxu0 %v6322_v42  ;;  %v2216_v57 = vadd.f32 %v2139_v25, %v1791_v40  ;;  %v5767_v48 = vpack.c.b16 %v1685_v44, %v1684_v32  ;;  %v2033_v42 = vunpack.c.l.b16 %v1957_v14  ;;  %v6324_v32 = vld [vmem:[#allocation26_spill] sm:$0xff] }
 0x166   : > { %v2034_v40 = vunpack.c.l.b16 %v1960_v49  ;;  %v1963_v44 = vrot.slane %v6324_v32, 5  ;;  %v6326_v49 = vld [vmem:[#allocation28_spill] sm:$0xff] }
 0x167   : > { %6321 = vst [vmem:[#allocation18_spill] sm:$0xff] %v5754_v23 }
 0x168   : > { %v1795_v62 = vpop.f32.mrf.mxu1  ;;  %v5778_v13 = vpack.c.b16 %v2034_v40, %v2033_v42  ;;  %v1687_v42 = vunpack.c.l.b16 %v6324_v32 }
 0x169   : > { %v1796_v22 = vadd.f32 %v1795_v62, %v5673_v18 }
 0x16a   : > { %v2328_v53 = vpop.f32.mrf.mxu3  ;;  %v2542_v46 = vpop.f32.mrf.mxu0 }
 0x16b   : > { %v2407_v23 = vadd.f32 %v2328_v53, %v2215_v8  ;;  %1834 = vmatmul.bf16.gmra.mxu1 %v5767_v48  ;;  %v1966_v53 = vrot.slane %v6326_v49, 5 }
 0x16c   : > { %v2141_v31 = vpop.f32.mrf.mxu2 }
 0x16d   : > { %v5775_v43 = vadd.f32 %v2542_v46, %v2407_v23  ;;  %v2217_v18 = vadd.f32 %v2141_v31, %v1793_v20  ;;  %v1965_v23 = vrot.slane %v1963_v44, 4  ;;  %v1686_v46 = vunpack.c.l.b16 %v6325_v16 }
 0x16f   : > { %6323 = vst [vmem:[#allocation19_spill] sm:$0xff] %v5775_v43  ;;  %2370 = vmatmul.bf16.gmra.mxu3 %v5767_v48 }
 0x170   : > { %v1797_v8 = vpop.f32.mrf.mxu1 }
 0x171   : > { %v1798_v25 = vadd.f32 %v1797_v8, %v5704_v47  ;;  %2183 = vmatmul.bf16.gmra.mxu2 %v5778_v13  ;;  %v1967_v8 = vsel %vm5464_vm9, %v1965_v23, %v1966_v53  ;;  %v6332_v53 = vld [vmem:[#allocation7_spill] sm:$0xff] }
 0x172   : > { %v2331_v45 = vpop.f32.mrf.mxu3  ;;  %v2545_v62 = vpop.f32.mrf.mxu0 }
 0x173   : > { %v2408_v14 = vadd.f32 %v2331_v45, %v2216_v57  ;;  %v1964_v57 = vsel %vm5464_vm9, %v3893_v15, %v1963_v44  ;;  %v5794_v45 = vpack.c.b16 %v1687_v42, %v1686_v46  ;;  %v1970_v46 = vrot.slane %v6332_v53, 5 }
 0x174   : > { %v2144_v20 = vpop.f32.mrf.mxu2 }
 0x175   : > { %v5787_v40 = vadd.f32 %v2545_v62, %v2408_v14  ;;  %2584 = vmatmul.bf16.gmra.mxu0 %v6328_v19  ;;  %v2218_v47 = vadd.f32 %v2144_v20, %v1796_v22  ;;  %6329 = vst [vmem:[#allocation27_spill] sm:$0xff] %v5794_v45  ;;  %v2035_v62 = vunpack.c.l.b16 %v1964_v57  ;;  %v2036_v14 = vunpack.c.l.b16 %v1967_v8 }
 0x176   : > { %v1972_v8 = vrot.slane %v1970_v46, 4 }
 0x177   : > { %6327 = vst [vmem:[#allocation26_spill] sm:$0xff] %v5787_v40  ;;  %v5801_v15 = vpack.c.b16 %v2036_v14, %v2035_v62  ;;  %v1689_v62 = vunpack.c.l.b16 %v6332_v53  ;;  %v4298_v14 = vld [vmem:[%s6189_s1 + $0x1c8] sm:$0xff] }
 0x178   : > { %v1800_v31 = vpop.f32.mrf.mxu1  ;;  %3141 = vmatpush.bf16.msra.mxu3 %v4298_v14 }
 0x179   : > { %v1801_v49 = vadd.f32 %v1800_v31, %v5720_v61  ;;  %6331 = vst [vmem:[#allocation21_spill] sm:$0xff] %v5801_v15  ;;  %v6333_v31 = vld [vmem:[#allocation8_spill] sm:$0xff] }
 0x17a   : > { %v2333_v16 = vpop.f32.mrf.mxu3  ;;  %v2547_v43 = vpop.f32.mrf.mxu0  ;;  %v3894_v57 = vrot.slane %v6333_v31, 9 }
 0x17b   : > { %v2409_v32 = vadd.f32 %v2333_v16, %v2217_v18  ;;  %1839 = vmatmul.bf16.gmra.mxu1 %v5794_v45 }
 0x17c   : > { %v2146_v22 = vpop.f32.mrf.mxu2 }
 0x17d   : > { %v5798_v40 = vadd.f32 %v2547_v43, %v2409_v32  ;;  %v2219_v44 = vadd.f32 %v2146_v22, %v1798_v25  ;;  %v4290_v43 = vld [vmem:[%s6189_s1 + $0x188] sm:$0xff]  ;;  %v6334_v25 = vld [vmem:[#allocation10_spill] sm:$0xff]  ;;  %v1688_v32 = vunpack.c.l.b16 %v6333_v31  ;;  %v1971_v31 = vsel %vm5464_vm9, %v3894_v57, %v1970_v46 }
 0x17e   : > { %v1973_v16 = vrot.slane %v6334_v25, 5  ;;  %2927 = vmatpush.bf16.msra.mxu2 %v4290_v43  ;;  %v4282_v22 = vld [vmem:[%s6189_s1 + $0x148] sm:$0xff] }
 0x17f   : > { %6330 = vst [vmem:[#allocation28_spill] sm:$0xff] %v5798_v40  ;;  %2375 = vmatmul.bf16.gmra.mxu3 %v5794_v45  ;;  %2735 = vmatpush.bf16.msra.mxu1 %v4282_v22  ;;  %v1991_v45 = vrot.slane %v5406_v60, 5 }
 0x180   : > { %v1802_v23 = vpop.f32.mrf.mxu1  ;;  %v1974_v53 = vsel %vm5464_vm9, %v1972_v8, %v1973_v16 }
 0x181   : > { %v1803_v61 = vadd.f32 %v1802_v23, %v5737_v21  ;;  %2188 = vmatmul.bf16.gmra.mxu2 %v5801_v15  ;;  %v2038_v40 = vunpack.c.l.b16 %v1974_v53 }
 0x182   : > { %v2336_v42 = vpop.f32.mrf.mxu3  ;;  %v2550_v20 = vpop.f32.mrf.mxu0 }
 0x183   : > { %v2410_v18 = vadd.f32 %v2336_v42, %v2218_v47 }
 0x184   : > { %v2149_v47 = vpop.f32.mrf.mxu2 }
 0x185   : > { %v5813_v21 = vadd.f32 %v2550_v20, %v2410_v18  ;;  %2589 = vmatmul.bf16.gmra.mxu0 %v5400_v58  ;;  %v2220_v23 = vadd.f32 %v2149_v47, %v1801_v49  ;;  %v5826_v20 = vpack.c.b16 %v1689_v62, %v1688_v32  ;;  %v4306_v49 = vld [vmem:[%s6189_s1 + $0x208] sm:$0xff]  ;;  %v6339_v62 = vld [vmem:[#allocation13_spill] sm:$0xff]  ;;  %v4281_v58 = vld [vmem:[%s6189_s1 + $0x140] sm:$0xff] }
 0x186   : > { %3339 = vmatpush.bf16.msra.mxu0 %v4306_v49  ;;  %v6341_v49 = vld [vmem:[#allocation16_spill] sm:$0xff]  ;;  %2736 = vmatpush.bf16.msra.mxu1 %v4281_v58 }
 0x187   : > { %6335 = vst [vmem:[#allocation7_spill] sm:$0xff] %v5813_v21  ;;  %v2037_v21 = vunpack.c.l.b16 %v1971_v31  ;;  %v6340_v31 = vld [vmem:[#allocation15_spill] sm:$0xff] }
 0x188   : > { %v1805_v42 = vpop.f32.mrf.mxu1  ;;  %6336 = vst [vmem:[#allocation8_spill] sm:$0xff] %v5826_v20  ;;  %v3895_v53 = vrot.slane %v6340_v31, 9 }
 0x189   : > { %v5835_v16 = vpack.c.b16 %v2038_v40, %v2037_v21  ;;  %v1691_v40 = vunpack.c.l.b16 %v6339_v62  ;;  %v6343_v21 = vld [vmem:[#allocation12_spill] sm:$0xff] }
 0x18a   : > { %v2338_v18 = vpop.f32.mrf.mxu3  ;;  %v2552_v43 = vpop.f32.mrf.mxu0 }
 0x18b   : > { %v2411_v25 = vadd.f32 %v2338_v18, %v2219_v44  ;;  %1844 = vmatmul.bf16.gmra.mxu1 %v5826_v20  ;;  %6338 = vst [vmem:[#allocation51_spill] sm:$0xff] %v5835_v16  ;;  %v1977_v44 = vrot.slane %v6339_v62, 5 }
 0x18c   : > { %v2151_v57 = vpop.f32.mrf.mxu2 }
 0x18d   : > { %v5832_v46 = vadd.f32 %v2552_v43, %v2411_v25  ;;  %v2221_v8 = vadd.f32 %v2151_v57, %v1803_v61  ;;  %v1979_v18 = vrot.slane %v1977_v44, 4  ;;  %v1980_v43 = vrot.slane %v6341_v49, 5 }
 0x18e   : > { %v1806_v25 = vadd.f32 %v1805_v42, %v5537_v35 }
 0x18f   : > { %6337 = vst [vmem:[#allocation10_spill] sm:$0xff] %v5832_v46  ;;  %2380 = vmatmul.bf16.gmra.mxu3 %v5826_v20  ;;  %v1690_v46 = vunpack.c.l.b16 %v6340_v31 }
 0x190   : > { %v1807_v32 = vpop.f32.mrf.mxu1 }
 0x191   : > { %2193 = vmatmul.bf16.gmra.mxu2 %v5835_v16  ;;  %v1981_v16 = vsel %vm5464_vm9, %v1979_v18, %v1980_v43  ;;  %v5851_v49 = vpack.c.b16 %v1691_v40, %v1690_v46  ;;  %v6347_v18 = vld [vmem:[#allocation23_spill] sm:$0xff] }
 0x192   : > { %v2341_v47 = vpop.f32.mrf.mxu3  ;;  %v2555_v14 = vpop.f32.mrf.mxu0  ;;  %v1984_v43 = vrot.slane %v6347_v18, 5 }
 0x193   : > { %v2412_v22 = vadd.f32 %v2341_v47, %v2220_v23  ;;  %v1978_v47 = vsel %vm5464_vm9, %v3895_v53, %v1977_v44  ;;  %6344 = vst [vmem:[#allocation15_spill] sm:$0xff] %v5851_v49 }
 0x194   : > { %v2154_v57 = vpop.f32.mrf.mxu2  ;;  %v2039_v62 = vunpack.c.l.b16 %v1978_v47 }
 0x195   : > { %v5844_v61 = vadd.f32 %v2555_v14, %v2412_v22  ;;  %2594 = vmatmul.bf16.gmra.mxu0 %v6343_v21  ;;  %v2222_v20 = vadd.f32 %v2154_v57, %v1806_v25  ;;  %v2040_v14 = vunpack.c.l.b16 %v1981_v16  ;;  %v1808_v22 = vadd.f32 %v1807_v32, %v5561_v3  ;;  %v6348_v3 = vld [vmem:[#allocation22_spill] sm:$0xff] }
 0x196   : > { %v3896_v32 = vrot.slane %v6348_v3, 9 }
 0x197   : > { %6342 = vst [vmem:[#allocation13_spill] sm:$0xff] %v5844_v61  ;;  %v5855_v61 = vld [vmem:[#allocation2 + $0x100] sm:$0xff]   ;;  %v5860_v53 = vpack.c.b16 %v2040_v14, %v2039_v62  ;;  %v6349_v62 = vld [vmem:[#allocation24_spill] sm:$0xff] }
 0x198   : > { %v1810_v23 = vpop.f32.mrf.mxu1  ;;  %v1987_v14 = vrot.slane %v6349_v62, 5  ;;  %v4297_v62 = vld [vmem:[%s6189_s1 + $0x1c0] sm:$0xff] }
 0x199   : > { %6346 = vst [vmem:[#allocation52_spill] sm:$0xff] %v5860_v53  ;;  %3142 = vmatpush.bf16.msra.mxu3 %v4297_v62 }
 0x19a   : > { %v2343_v35 = vpop.f32.mrf.mxu3  ;;  %v2557_v42 = vpop.f32.mrf.mxu0 }
 0x19b   : > { %v2413_v31 = vadd.f32 %v2343_v35, %v2221_v8  ;;  %1849 = vmatmul.bf16.gmra.mxu1 %v5851_v49  ;;  %v4375_v8 = vunpack.c.l.bf16 %v5855_v61  ;;  %v4289_v35 = vld [vmem:[%s6189_s1 + $0x180] sm:$0xff] }
 0x19c   : > { %v2156_v25 = vpop.f32.mrf.mxu2  ;;  %2928 = vmatpush.bf16.msra.mxu2 %v4289_v35 }
 0x19d   : > { %v5857_v57 = vadd.f32 %v2557_v42, %v2413_v31  ;;  %v2223_v44 = vadd.f32 %v2156_v25, %v1808_v22  ;;  %v4376_v42 = vunpack.c.h.bf16 %v5855_v61  ;;  %v1986_v31 = vrot.slane %v1984_v43, 4  ;;  %v4543_v22 = vld [vmem:[%s6191_s3] ss:$0 sm:$0xff]  ;;  %v6351_v61 = vld [vmem:[#allocation17_spill] sm:$0xff] }
 0x19e   : > { %v536_v25 = vmul.f32 %v4543_v22, %v4375_v8 }
 0x19f   : > { %6345 = vst [vmem:[#allocation16_spill] sm:$0xff] %v5857_v57  ;;  %2385 = vmatmul.bf16.gmra.mxu3 %v5851_v49  ;;  %v5874_v57 = vld [vmem:[#allocation2] sm:$0xf] }
 0x1a0   : > { %v1812_v46 = vpop.f32.mrf.mxu1 }
 0x1a1   : > { %2198 = vmatmul.bf16.gmra.mxu2 %v5860_v53  ;;  %v1693_v53 = vunpack.c.l.b16 %v6347_v18  ;;  %v480_v18 = vunpack.c.l.bf16 %v5874_v57  ;;  %v1813_v62 = vadd.f32 %v1812_v46, %v5596_v34 }
 0x1a2   : > { %v2346_v40 = vpop.f32.mrf.mxu3  ;;  %v2560_v47 = vpop.f32.mrf.mxu0 }
 0x1a3   : > { %v2414_v16 = vadd.f32 %v2346_v40, %v2222_v20  ;;  %v1811_v20 = vadd.f32 %v1810_v23, %v5575_v5  ;;  %v1692_v40 = vunpack.c.l.b16 %v6348_v3  ;;  %v1985_v5 = vsel %vm5464_vm9, %v3896_v32, %v1984_v43  ;;  %v4544_v3 = vld [vmem:[%s6192_s4] ss:$0 sm:$0xff] }
 0x1a4   : > { %v2159_v21 = vpop.f32.mrf.mxu2  ;;  %v537_v23 = vmul.f32 %v4543_v22, %v4376_v42  ;;  %v594_v35 = vadd.f32 %v4544_v3, %v536_v25  ;;  %v4305_v32 = vld [vmem:[%s6189_s1 + $0x200] sm:$0xff]  ;;  %v538_v58 = vmul.f32 %v4543_v22, %v480_v18 }
 0x1a5   : > { %v5879_v49 = vadd.f32 %v2560_v47, %v2414_v16  ;;  %2599 = vmatmul.bf16.gmra.mxu0 %v6351_v61  ;;  %v2224_v15 = vadd.f32 %v2159_v21, %v1811_v20  ;;  %v1988_v16 = vsel %vm5464_vm9, %v1986_v31, %v1987_v14  ;;  %v2041_v20 = vunpack.c.l.b16 %v1985_v5 }
 0x1a6   : > { %v2042_v57 = vunpack.c.l.b16 %v1988_v16  ;;  %v595_v31 = vadd.f32 %v4544_v3, %v537_v23  ;;  %v648_v14 = vmax.f32 %v594_v35, 0.0  ;;  %3340 = vmatpush.bf16.msra.mxu0 %v4305_v32  ;;  %v596_v16 = vadd.f32 %v4544_v3, %v538_v58  ;;  %v6353_v32 = vld [vmem:[#allocation32_spill] sm:$0xff] }
 0x1a7   : > { %6350 = vst [vmem:[#allocation23_spill] sm:$0xff] %v5879_v49  ;;  %v5896_v49 = vpack.c.b16 %v1693_v53, %v1692_v40 }
 0x1a8   : > { %v1815_v47 = vpop.f32.mrf.mxu1  ;;  %v649_v5 = vmax.f32 %v595_v31, 0.0  ;;  %v707_v22 = vsel %vm4731_vm5, %v648_v14, %v4375_v8  ;;  %v1994_v31 = vrot.slane %v6353_v32, 5 }
 0x1a9   : > { %v1816_v58 = vadd.f32 %v1815_v47, %v5613_v17 }
 0x1aa   : > { %v2348_v21 = vpop.f32.mrf.mxu3  ;;  %v2562_v61 = vpop.f32.mrf.mxu0  ;;  %v708_v46 = vsel %vm4731_vm5, %v649_v5, %v4376_v42 }
 0x1ab   : > { %v2415_v43 = vadd.f32 %v2348_v21, %v2223_v44  ;;  %1854 = vmatmul.bf16.gmra.mxu1 %v5896_v49  ;;  %v5906_v44 = vpack.c.b16 %v2042_v57, %v2041_v20  ;;  %v650_v20 = vmax.f32 %v596_v16, 0.0  ;;  %v1993_v57 = vrot.slane %v1991_v45, 4 }
 0x1ac   : > { %v2161_v25 = vpop.f32.mrf.mxu2  ;;  %v5926_v33 = vpack.c.bf16 %v708_v46, %v708_v46 }
 0x1ad   : > { %v5903_v53 = vadd.f32 %v2562_v61, %v2415_v43  ;;  %v2225_v40 = vadd.f32 %v2161_v25, %v1813_v62  ;;  %v951_v61 = vsel %vm789_vm0, %v707_v22, 0.0  ;;  %v6352_v43 = vld [vmem:[#allocation31_spill] sm:$0xff]  ;;  %v6354_v62 = vld [vmem:[#allocation25_spill] sm:$0xff]  ;;  %v709_v16 = vsel %vm4731_vm5, %v650_v20, %v480_v18 }
 0x1ae   : > { %v3897_v3 = vrot.slane %v6352_v43, 9  ;;  %v1694_v8 = vunpack.c.l.b16 %v6352_v43  ;;  %v5924_v25 = vpack.c.bf16 %v951_v61, %v951_v61  ;;  %v2448_v4 = vshll.u32 %v5926_v33, 16 }
 0x1af   : > { %2390 = vmatmul.bf16.gmra.mxu3 %v5896_v49 }
 0x1b0   : > { %v1817_v21 = vpop.f32.mrf.mxu1  ;;  %v1992_v17 = vsel %vm5464_vm9, %v3897_v3, %v1991_v45  ;;  %v2439_v46 = vshrl.u32 %v5924_v25, 16  ;;  %v2442_v61 = vshll.u32 %v5924_v25, 16  ;;  %v2452_v3 = vshrl.u32 %v5926_v33, 16 }
 0x1b1   : > { %2203 = vmatmul.bf16.gmra.mxu2 %v5906_v44  ;;  %v2043_v45 = vunpack.c.l.b16 %v1992_v17 }
 0x1b2   : > { %v2351_v23 = vpop.f32.mrf.mxu3  ;;  %v2565_v35 = vpop.f32.mrf.mxu0 }
 0x1b3   : > { %v2416_v34 = vadd.f32 %v2351_v23, %v2224_v15  ;;  %v1695_v15 = vunpack.c.l.b16 %v5406_v60  ;;  %v1995_v60 = vsel %vm5464_vm9, %v1993_v57, %v1994_v31  ;;  %v1818_v57 = vadd.f32 %v1817_v21, %v5642_v0 }
 0x1b4   : > { %v2164_v42 = vpop.f32.mrf.mxu2  ;;  %v2044_v43 = vunpack.c.l.b16 %v1995_v60 }
 0x1b5   : > { %v5921_v14 = vadd.f32 %v2565_v35, %v2416_v34  ;;  %2604 = vmatmul.bf16.gmra.mxu0 %v6354_v62  ;;  %v2226_v5 = vadd.f32 %v2164_v42, %v1816_v58  ;;  %v5934_v47 = vpack.c.b16 %v1695_v15, %v1694_v8  ;;  %v953_v34 = vsel %vm848_vm1, %v709_v16, 0.0 }
 0x1b6   : > { %v5946_v58 = vpack.c.bf16 %v953_v34, %v953_v34  ;;  %v2441_v8 = vrot.slane %v2439_v46, 4  ;;  %v2444_v15 = vrot.slane %v2442_v61, 5  ;;  %v5949_v16 = vpack.c.b16 %v2044_v43, %v2043_v45 }
 0x1b7   : > { %v2266_v45 = vunpack.c.l.b16 %v5926_v33 }
 0x1b8   : > { %v1820_v22 = vpop.f32.mrf.mxu1  ;;  %v2458_v35 = vshll.u32 %v5946_v58, 16  ;;  %v2445_v21 = vor.u32 %v2444_v15, %v2441_v8 }
 0x1b9   : > { %v1821_v46 = vadd.f32 %v1820_v22, %v5660_v55 }
 0x1ba   : > { %v2353_v23 = vpop.f32.mrf.mxu3  ;;  %v2567_v18 = vpop.f32.mrf.mxu0  ;;  %v2446_v43 = vrot.slane %v2445_v21, 4 }
 0x1bb   : > { %v2417_v20 = vadd.f32 %v2353_v23, %v2225_v40  ;;  %1859 = vmatmul.bf16.gmra.mxu1 %v5934_v47  ;;  %v2450_v40 = vrot.slane %v2448_v4, 5  ;;  %v2454_v23 = vrot.slane %v2452_v3, 4  ;;  %v2460_v4 = vrot.slane %v2458_v35, 5 }
 0x1bc   : > { %v2166_v31 = vpop.f32.mrf.mxu2 }
 0x1bd   : > { %v5944_v32 = vadd.f32 %v2567_v18, %v2417_v20  ;;  %v2227_v42 = vadd.f32 %v2166_v31, %v1818_v57  ;;  %v2455_v34 = vor.u32 %v2454_v23, %v2450_v40  ;;  %v2265_v18 = vunpack.c.l.b16 %v5924_v25 }
 0x1bf   : > { %2395 = vmatmul.bf16.gmra.mxu3 %v5934_v47  ;;  %v2456_v3 = vrot.slane %v2455_v34, 4  ;;  %v5959_v15 = vpack.c.b16 %v2266_v45, %v2265_v18 }
 0x1c0   : > { %v1822_v17 = vpop.f32.mrf.mxu1 }
 0x1c1   : > { %2208 = vmatmul.bf16.gmra.mxu2 %v5949_v16  ;;  %v2461_v55 = vsel %vm4789_vm6, %v2456_v3, %v2460_v4  ;;  %v1823_v22 = vadd.f32 %v1822_v17, %v5678_v1 }
 0x1c2   : > { %v2356_v60 = vpop.f32.mrf.mxu3  ;;  %v2570_v38 = vpop.f32.mrf.mxu0 }
 0x1c3   : > { %v2418_v0 = vadd.f32 %v2356_v60, %v2226_v5 }
 0x1c4   : > { %v2169_v20 = vpop.f32.mrf.mxu2 }
 0x1c5   : > { %v5954_v61 = vadd.f32 %v2570_v38, %v2418_v0  ;;  %2609 = vmatmul.bf16.gmra.mxu0 %v5462_v6  ;;  %v2228_v57 = vadd.f32 %v2169_v20, %v1821_v46  ;;  %v2451_v38 = vsel %vm4789_vm6, %v2446_v43, %v2450_v40  ;;  %v2480_v0 = vunpack.c.l.b16 %v2461_v55 }
 0x1c6   : > { %v2479_v35 = vunpack.c.l.b16 %v2451_v38 }
 0x1c8   : > { %v1825_v5 = vpop.f32.mrf.mxu1  ;;  %v5970_v46 = vpack.c.b16 %v2480_v0, %v2479_v35 }
 0x1c9   : > { %v1826_v52 = vadd.f32 %v1825_v5, %v5567_v24 }
 0x1ca   : > { %v2358_v31 = vpop.f32.mrf.mxu3  ;;  %v2572_v60 = vpop.f32.mrf.mxu0 }
 0x1cb   : > { %v2419_v8 = vadd.f32 %v2358_v31, %v2227_v42  ;;  %2737 = vmatmul.bf16.vlgmr.msra.gmra.mxu1 %v5505_v7 }
 0x1cc   : > { %v2171_v21 = vpop.f32.mrf.mxu2 }
 0x1cd   : > { %v5967_v23 = vadd.f32 %v2572_v60, %v2419_v8  ;;  %v2229_v42 = vadd.f32 %v2171_v21, %v1823_v22 }
 0x1cf   : > { %2400 = vmatmul.bf16.gmra.mxu3 %v5959_v15 }
 0x1d0   : > { %v1827_v34 = vpop.f32.mrf.mxu1 }
 0x1d1   : > { %2929 = vmatmul.bf16.vlgmr.msra.gmra.mxu2 %v5483_v54  ;;  %v1828_v31 = vadd.f32 %v1827_v34, %v5578_v51 }
 0x1d2   : > { %v2361_v18 = vpop.f32.mrf.mxu3  ;;  %v2575_v40 = vpop.f32.mrf.mxu0 }
 0x1d3   : > { %v2420_v20 = vadd.f32 %v2361_v18, %v2228_v57 }
 0x1d4   : > { %v2174_v1 = vpop.f32.mrf.mxu2 }
 0x1d5   : > { %v5974_v7 = vadd.f32 %v2575_v40, %v2420_v20  ;;  %2614 = vmatmul.bf16.gmra.mxu0 %v5970_v46  ;;  %v2230_v17 = vadd.f32 %v2174_v1, %v1826_v52 }
 0x1d8   : > { %v1830_v4 = vpop.f32.mrf.mxu1 }
 0x1d9   : > { %v1831_v55 = vadd.f32 %v1830_v4, %v5599_v63 }
 0x1da   : > { %v2363_v45 = vpop.f32.mrf.mxu3  ;;  %v2577_v43 = vpop.f32.mrf.mxu0 }
 0x1db   : > { %v2421_v3 = vadd.f32 %v2363_v45, %v2229_v42  ;;  %2742 = vmatmul.bf16.gmra.mxu1 %v5503_v2 }
 0x1dc   : > { %v2176_v57 = vpop.f32.mrf.mxu2 }
 0x1dd   : > { %v5979_v60 = vadd.f32 %v2577_v43, %v2421_v3  ;;  %v2231_v54 = vadd.f32 %v2176_v57, %v1828_v31 }
 0x1df   : > { %3143 = vmatmul.bf16.vlgmr.msra.gmra.mxu3 %v5297_v27 }
 0x1e0   : > { %v1832_v24 = vpop.f32.mrf.mxu1 }
 0x1e1   : > { %2934 = vmatmul.bf16.gmra.mxu2 %v5534_v11  ;;  %v1833_v27 = vadd.f32 %v1832_v24, %v5620_v41 }
 0x1e2   : > { %v2366_v5 = vpop.f32.mrf.mxu3  ;;  %v2580_v8 = vpop.f32.mrf.mxu0 }
 0x1e3   : > { %v2422_v38 = vadd.f32 %v2366_v5, %v2230_v17 }
 0x1e4   : > { %v2179_v35 = vpop.f32.mrf.mxu2 }
 0x1e5   : > { %v5984_v22 = vadd.f32 %v2580_v8, %v2422_v38  ;;  %3341 = vmatmul.bf16.vlgmr.msra.gmra.mxu0 %v5503_v2  ;;  %v2232_v51 = vadd.f32 %v2179_v35, %v1831_v55 }
 0x1e8   : > { %v1835_v0 = vpop.f32.mrf.mxu1 }
 0x1e9   : > { %v1836_v1 = vadd.f32 %v1835_v0, %v5647_v26 }
 0x1ea   : > { %v2368_v21 = vpop.f32.mrf.mxu3  ;;  %v2582_v42 = vpop.f32.mrf.mxu0 }
 0x1eb   : > { %v2423_v34 = vadd.f32 %v2368_v21, %v2231_v54  ;;  %2747 = vmatmul.bf16.gmra.mxu1 %v5540_v37 }
 0x1ec   : > { %v2181_v40 = vpop.f32.mrf.mxu2 }
 0x1ed   : > { %v5989_v18 = vadd.f32 %v2582_v42, %v2423_v34  ;;  %v2233_v11 = vadd.f32 %v2181_v40, %v1833_v27 }
 0x1ef   : > { %3148 = vmatmul.bf16.gmra.mxu3 %v5485_v56 }
 0x1f0   : > { %v1837_v63 = vpop.f32.mrf.mxu1 }
 0x1f1   : > { %2939 = vmatmul.bf16.gmra.mxu2 %v5569_v50  ;;  %v1838_v56 = vadd.f32 %v1837_v63, %v5668_v10 }
 0x1f2   : > { %v2371_v20 = vpop.f32.mrf.mxu3  ;;  %v2585_v52 = vpop.f32.mrf.mxu0 }
 0x1f3   : > { %v2424_v2 = vadd.f32 %v2371_v20, %v2232_v51 }
 0x1f4   : > { %v2184_v4 = vpop.f32.mrf.mxu2 }
 0x1f5   : > { %v5994_v17 = vadd.f32 %v2585_v52, %v2424_v2  ;;  %3346 = vmatmul.bf16.gmra.mxu0 %v5540_v37  ;;  %v2234_v41 = vadd.f32 %v2184_v4, %v1836_v1 }
 0x1f8   : > { %v1840_v45 = vpop.f32.mrf.mxu1 }
 0x1f9   : > { %v1841_v8 = vadd.f32 %v1840_v45, %v5685_v30  ;;  %v6358_v45 = vld [vmem:[#allocation37_spill] sm:$0xff] }
 0x1fa   : > { %v2373_v43 = vpop.f32.mrf.mxu3  ;;  %v2587_v3 = vpop.f32.mrf.mxu0 }
 0x1fb   : > { %v2425_v31 = vadd.f32 %v2373_v43, %v2233_v11  ;;  %2752 = vmatmul.bf16.gmra.mxu1 %v5573_v59  ;;  %v6356_v11 = vld [vmem:[#allocation36_spill] sm:$0xff] }
 0x1fc   : > { %v2186_v54 = vpop.f32.mrf.mxu2 }
 0x1fd   : > { %v5999_v57 = vadd.f32 %v2587_v3, %v2425_v31  ;;  %v2235_v50 = vadd.f32 %v2186_v54, %v1838_v56 }
 0x1ff   : > { %3153 = vmatmul.bf16.gmra.mxu3 %v4824_v28 }
 0x200   : > { %v1842_v26 = vpop.f32.mrf.mxu1 }
 0x201   : > { %2944 = vmatmul.bf16.gmra.mxu2 %v5594_v9  ;;  %v1843_v28 = vadd.f32 %v1842_v26, %v5712_v12 }
 0x202   : > { %v2376_v24 = vpop.f32.mrf.mxu3  ;;  %v2590_v5 = vpop.f32.mrf.mxu0 }
 0x203   : > { %v2426_v37 = vadd.f32 %v2376_v24, %v2234_v41  ;;  %v6360_v24 = vld [vmem:[#allocation41_spill] sm:$0xff] }
 0x204   : > { %v2189_v55 = vpop.f32.mrf.mxu2 }
 0x205   : > { %v6004_v38 = vadd.f32 %v2590_v5, %v2426_v37  ;;  %3351 = vmatmul.bf16.gmra.mxu0 %v5573_v59  ;;  %v2236_v10 = vadd.f32 %v2189_v55, %v1841_v8  ;;  %v6361_v5 = vld [vmem:[#allocation38_spill] sm:$0xff] }
 0x208   : > { %v1845_v35 = vpop.f32.mrf.mxu1 }
 0x209   : > { %v1846_v63 = vadd.f32 %v1845_v35, %v6356_v11 }
 0x20a   : > { %v2378_v51 = vpop.f32.mrf.mxu3  ;;  %v2592_v0 = vpop.f32.mrf.mxu0 }
 0x20b   : > { %v2427_v21 = vadd.f32 %v2378_v51, %v2235_v50  ;;  %2757 = vmatmul.bf16.gmra.mxu1 %v5602_v39 }
 0x20c   : > { %v2191_v34 = vpop.f32.mrf.mxu2 }
 0x20d   : > { %v6009_v42 = vadd.f32 %v2592_v0, %v2427_v21  ;;  %v2237_v9 = vadd.f32 %v2191_v34, %v1843_v28  ;;  %v6362_v28 = vld [vmem:[#allocation43_spill] sm:$0xff]  ;;  %v6363_v34 = vld [vmem:[#allocation40_spill] sm:$0xff] }
 0x20f   : > { %3158 = vmatmul.bf16.gmra.mxu3 %v5005_v29  ;;  %v6357_v29 = vld [vmem:[#allocation39_spill] sm:$0xff] }
 0x210   : > { %v1847_v30 = vpop.f32.mrf.mxu1 }
 0x211   : > { %2949 = vmatmul.bf16.gmra.mxu2 %v5635_v36  ;;  %v1848_v43 = vadd.f32 %v1847_v30, %v6358_v45  ;;  %v6359_v36 = vld [vmem:[#allocation20_spill] sm:$0xff] }
 0x212   : > { %v2381_v27 = vpop.f32.mrf.mxu3  ;;  %v2595_v40 = vpop.f32.mrf.mxu0 }
 0x213   : > { %v2428_v59 = vadd.f32 %v2381_v27, %v2236_v10 }
 0x214   : > { %v2194_v52 = vpop.f32.mrf.mxu2 }
 0x215   : > { %v6014_v20 = vadd.f32 %v2595_v40, %v2428_v59  ;;  %3356 = vmatmul.bf16.gmra.mxu0 %v5602_v39  ;;  %v2238_v12 = vadd.f32 %v2194_v52, %v1846_v63  ;;  %v6364_v40 = vld [vmem:[#allocation29_spill] sm:$0xff] }
 0x218   : > { %v1850_v2 = vpop.f32.mrf.mxu1 }
 0x219   : > { %v1851_v37 = vadd.f32 %v1850_v2, %v6361_v5  ;;  %v6365_v2 = vld [vmem:[#allocation45_spill] sm:$0xff] }
 0x21a   : > { %v2383_v1 = vpop.f32.mrf.mxu3  ;;  %v2597_v4 = vpop.f32.mrf.mxu0  ;;  %v6369_v5 = vld [vmem:[#allocation9_spill] sm:$0xff] }
 0x21b   : > { %v2429_v41 = vadd.f32 %v2383_v1, %v2237_v9  ;;  %2762 = vmatmul.bf16.gmra.mxu1 %v6357_v29  ;;  %v6366_v1 = vld [vmem:[#allocation42_spill] sm:$0xff] }
 0x21c   : > { %v2196_v31 = vpop.f32.mrf.mxu2 }
 0x21d   : > { %v6019_v3 = vadd.f32 %v2597_v4, %v2429_v41  ;;  %v2239_v56 = vadd.f32 %v2196_v31, %v1848_v43 }
 0x21f   : > { %3163 = vmatmul.bf16.gmra.mxu3 %v6359_v36 }
 0x220   : > { %v1852_v54 = vpop.f32.mrf.mxu1 }
 0x221   : > { %2954 = vmatmul.bf16.gmra.mxu2 %v6360_v24  ;;  %v1853_v9 = vadd.f32 %v1852_v54, %v6363_v34  ;;  %v6367_v54 = vld [vmem:[#allocation46_spill] sm:$0xff] }
 0x222   : > { %v2386_v50 = vpop.f32.mrf.mxu3  ;;  %v2600_v26 = vpop.f32.mrf.mxu0 }
 0x223   : > { %v2430_v39 = vadd.f32 %v2386_v50, %v2238_v12  ;;  %v6368_v50 = vld [vmem:[#allocation44_spill] sm:$0xff] }
 0x224   : > { %v2199_v55 = vpop.f32.mrf.mxu2 }
 0x225   : > { %v6024_v8 = vadd.f32 %v2600_v26, %v2430_v39  ;;  %3361 = vmatmul.bf16.gmra.mxu0 %v6357_v29  ;;  %v2240_v10 = vadd.f32 %v2199_v55, %v1851_v37 }
 0x228   : > { %v1855_v35 = vpop.f32.mrf.mxu1 }
 0x229   : > { %v1856_v4 = vadd.f32 %v1855_v35, %v6366_v1 }
 0x22a   : > { %v2388_v51 = vpop.f32.mrf.mxu3  ;;  %v2602_v0 = vpop.f32.mrf.mxu0 }
 0x22b   : > { %v2431_v21 = vadd.f32 %v2388_v51, %v2239_v56  ;;  %2767 = vmatmul.bf16.gmra.mxu1 %v6362_v28 }
 0x22c   : > { %v2201_v27 = vpop.f32.mrf.mxu2 }
 0x22d   : > { %v6029_v30 = vadd.f32 %v2602_v0, %v2431_v21  ;;  %v2241_v59 = vadd.f32 %v2201_v27, %v1853_v9  ;;  %v6370_v0 = vld [vmem:[#allocation48_spill] sm:$0xff]  ;;  %v6371_v21 = vld [vmem:[#allocation47_spill] sm:$0xff] }
 0x22f   : > { %3168 = vmatmul.bf16.gmra.mxu3 %v6364_v40 }
 0x230   : > { %v1857_v11 = vpop.f32.mrf.mxu1 }
 0x231   : > { %2959 = vmatmul.bf16.gmra.mxu2 %v6365_v2  ;;  %v1858_v26 = vadd.f32 %v1857_v11, %v6368_v50 }
 0x232   : > { %v2391_v63 = vpop.f32.mrf.mxu3  ;;  %v2605_v52 = vpop.f32.mrf.mxu0 }
 0x233   : > { %v2432_v12 = vadd.f32 %v2391_v63, %v2240_v10 }
 0x234   : > { %v2204_v29 = vpop.f32.mrf.mxu2 }
 0x235   : > { %v6034_v41 = vadd.f32 %v2605_v52, %v2432_v12  ;;  %3366 = vmatmul.bf16.gmra.mxu0 %v6362_v28  ;;  %v2242_v45 = vadd.f32 %v2204_v29, %v1856_v4  ;;  %v6372_v52 = vld [vmem:[#allocation50_spill] sm:$0xff]  ;;  %v6373_v12 = vld [vmem:[#allocation49_spill] sm:$0xff] }
 0x236   : > { %v6374_v29 = vld [vmem:[#allocation14_spill] sm:$0xff] }
 0x238   : > { %v1860_v43 = vpop.f32.mrf.mxu1 }
 0x239   : > { %v1861_v28 = vadd.f32 %v1860_v43, %v6371_v21 }
 0x23a   : > { %v2393_v31 = vpop.f32.mrf.mxu3  ;;  %v2607_v36 = vpop.f32.mrf.mxu0 }
 0x23b   : > { %v2433_v56 = vadd.f32 %v2393_v31, %v2241_v59  ;;  %2772 = vmatmul.bf16.gmra.mxu1 %v6367_v54 }
 0x23c   : > { %v2206_v24 = vpop.f32.mrf.mxu2 }
 0x23d   : > { %v6039_v39 = vadd.f32 %v2607_v36, %v2433_v56  ;;  %v2243_v37 = vadd.f32 %v2206_v24, %v1858_v26 }
 0x23f   : > { %3173 = vmatmul.bf16.gmra.mxu3 %v6369_v5 }
 0x240   : > { %v1862_v55 = vpop.f32.mrf.mxu1 }
 0x241   : > { %2964 = vmatmul.bf16.gmra.mxu2 %v6370_v0  ;;  %v1863_v2 = vadd.f32 %v1862_v55, %v6373_v12 }
 0x242   : > { %v2396_v10 = vpop.f32.mrf.mxu3  ;;  %v2610_v35 = vpop.f32.mrf.mxu0 }
 0x243   : > { %v2434_v51 = vadd.f32 %v2396_v10, %v2242_v45 }
 0x244   : > { %v2209_v9 = vpop.f32.mrf.mxu2 }
 0x245   : > { %v6044_v34 = vadd.f32 %v2610_v35, %v2434_v51  ;;  %3371 = vmatmul.bf16.gmra.mxu0 %v6367_v54  ;;  %v2244_v27 = vadd.f32 %v2209_v9, %v1861_v28  ;;  %v6375_v35 = vld [vmem:[#allocation18_spill] sm:$0xff]  ;;  %v6376_v9 = vld [vmem:[#allocation27_spill] sm:$0xff] }
 0x248   : > { %v2738_v40 = vpop.f32.mrf.mxu1 }
 0x249   : > { %v2818_v51 = vadd.f32 %v2738_v40, %v6375_v35  ;;  %v6067_v40 = vld [vmem:[%s6190_s2] ss:$0 sm:$0xff] }
 0x24a   : > { %v2398_v59 = vpop.f32.mrf.mxu3  ;;  %v2612_v11 = vpop.f32.mrf.mxu0 }
 0x24b   : > { %v2435_v63 = vadd.f32 %v2398_v59, %v2243_v37  ;;  %2777 = vmatmul.bf16.gmra.mxu1 %v6372_v52  ;;  %v6377_v59 = vld [vmem:[#allocation19_spill] sm:$0xff] }
 0x24c   : > { %v2211_v4 = vpop.f32.mrf.mxu2 }
 0x24d   : > { %v6049_v1 = vadd.f32 %v2612_v11, %v2435_v63  ;;  %v2245_v45 = vadd.f32 %v2211_v4, %v1863_v2 }
 0x24f   : > { %3178 = vmatmul.bf16.gmra.mxu3 %v6374_v29 }
 0x250   : > { %v2740_v43 = vpop.f32.mrf.mxu1 }
 0x251   : > { %2969 = vmatmul.bf16.gmra.mxu2 %v5767_v48  ;;  %v2819_v11 = vadd.f32 %v2740_v43, %v6377_v59  ;;  %v6381_v59 = vld [vmem:[#allocation8_spill] sm:$0xff] }
 0x252   : > { %v2401_v31 = vpop.f32.mrf.mxu3  ;;  %v2615_v36 = vpop.f32.mrf.mxu0 }
 0x253   : > { %v2436_v56 = vadd.f32 %v2401_v31, %v2244_v27 }
 0x254   : > { %v2930_v50 = vpop.f32.mrf.mxu2 }
 0x255   : > { %v6053_v54 = vadd.f32 %v2615_v36, %v2436_v56  ;;  %3376 = vmatmul.bf16.gmra.mxu0 %v6372_v52  ;;  %v3010_v48 = vadd.f32 %v2930_v50, %v2818_v51  ;;  %v6379_v36 = vld [vmem:[#allocation26_spill] sm:$0xff] }
 0x258   : > { %v2743_v26 = vpop.f32.mrf.mxu1 }
 0x25a   : > { %v2403_v24 = vpop.f32.mrf.mxu3  ;;  %v2617_v5 = vpop.f32.mrf.mxu0 }
 0x25b   : > { %v2437_v37 = vadd.f32 %v2403_v24, %v2245_v45  ;;  %2782 = vmatmul.bf16.gmra.mxu1 %v5778_v13  ;;  %v6378_v45 = vld [vmem:[#allocation21_spill] sm:$0xff]  ;;  %v6380_v24 = vld [vmem:[#allocation30_spill] sm:$0xff] }
 0x25c   : > { %v2932_v10 = vpop.f32.mrf.mxu2 }
 0x25d   : > { %v6057_v55 = vadd.f32 %v2617_v5, %v2437_v37  ;;  %v3011_v52 = vadd.f32 %v2932_v10, %v2819_v11 }
 0x25f   : > { %3183 = vmatmul.bf16.gmra.mxu3 %v6328_v19 }
 0x260   : > { %v2745_v0 = vpop.f32.mrf.mxu1 }
 0x261   : > { %2974 = vmatmul.bf16.gmra.mxu2 %v6376_v9 }
 0x262   : > { %v3144_v21 = vpop.f32.mrf.mxu3  ;;  %v3342_v28 = vpop.f32.mrf.mxu0 }
 0x263   : > { %v3224_v27 = vadd.f32 %v3144_v21, %v3010_v48 }
 0x264   : > { %v2935_v63 = vpop.f32.mrf.mxu2 }
 0x265   : > { %3381 = vmatmul.bf16.gmra.mxu0 %v5778_v13  ;;  %v3422_v2 = vadd.f32 %v3342_v28, %v3224_v27  ;;  %v2820_v13 = vadd.f32 %v2743_v26, %v6379_v36  ;;  %v6382_v26 = vld [vmem:[#allocation28_spill] sm:$0xff] }
 0x267   : > { %v3458_v31 = vadd.f32 %v6067_v40, %v3422_v2  ;;  %v3012_v5 = vadd.f32 %v2935_v63, %v2820_v13 }
 0x268   : > { %v2748_v12 = vpop.f32.mrf.mxu1 }
 0x269   : > { %v3591_v10 = vmul.f32 %v3458_v31, %v3458_v31 }
 0x26a   : > { %v3146_v19 = vpop.f32.mrf.mxu3  ;;  %v3344_v4 = vpop.f32.mrf.mxu0 }
 0x26b   : > { %v3225_v29 = vadd.f32 %v3146_v19, %v3011_v52  ;;  %2787 = vmatmul.bf16.gmra.mxu1 %v6378_v45  ;;  %v2821_v52 = vadd.f32 %v2745_v0, %v6382_v26 }
 0x26c   : > { %v2937_v56 = vpop.f32.mrf.mxu2 }
 0x26d   : > { %v3423_v43 = vadd.f32 %v3344_v4, %v3225_v29  ;;  %v3013_v19 = vadd.f32 %v2937_v56, %v2821_v52  ;;  %v6386_v52 = vld [vmem:[#allocation15_spill] sm:$0xff] }
 0x26f   : > { %v3459_v50 = vadd.f32 %v6067_v40, %v3423_v43  ;;  %3188 = vmatmul.bf16.gmra.mxu3 %v6380_v24  ;;  %v6383_v24 = vld [vmem:[#allocation51_spill] sm:$0xff] }
 0x270   : > { %v2750_v37 = vpop.f32.mrf.mxu1 }
 0x271   : > { %v4380_v35 = vpack.c.bf16 %v3459_v50, %v3458_v31  ;;  %v3554_v51 = vadd.f32 %v3459_v50, %v3458_v31  ;;  %v3592_v48 = vmul.f32 %v3459_v50, %v3459_v50  ;;  %2979 = vmatmul.bf16.gmra.mxu2 %v6381_v59 }
 0x272   : > { %v3149_v21 = vpop.f32.mrf.mxu3  ;;  %v3347_v9 = vpop.f32.mrf.mxu0 }
 0x273   : > { %4381 = vst [vmem:[%s4640_s13] sm:$0xff] %v4380_v35   ;;  %v3623_v28 = vadd.f32 %v3592_v48, %v3591_v10  ;;  %v3226_v27 = vadd.f32 %v3149_v21, %v3012_v5  ;;  %v6384_v10 = vld [vmem:[#allocation7_spill] sm:$0xff]  ;;  %v6385_v48 = vld [vmem:[#allocation12_spill] sm:$0xff] }
 0x274   : > { %v2940_v2 = vpop.f32.mrf.mxu2  ;;  %v2822_v35 = vadd.f32 %v2748_v12, %v6384_v10 }
 0x275   : > { %v3424_v11 = vadd.f32 %v3347_v9, %v3226_v27  ;;  %3386 = vmatmul.bf16.gmra.mxu0 %v6378_v45 }
 0x276   : > { %v3014_v21 = vadd.f32 %v2940_v2, %v2822_v35 }
 0x277   : > { %v3460_v63 = vadd.f32 %v6067_v40, %v3424_v11 }
 0x278   : > { %v2753_v4 = vpop.f32.mrf.mxu1 }
 0x279   : > { %v3555_v29 = vadd.f32 %v3554_v51, %v3460_v63  ;;  %v3593_v31 = vmul.f32 %v3460_v63, %v3460_v63 }
 0x27a   : > { %v3151_v43 = vpop.f32.mrf.mxu3  ;;  %v3349_v13 = vpop.f32.mrf.mxu0 }
 0x27b   : > { %v3624_v36 = vadd.f32 %v3623_v28, %v3593_v31  ;;  %v3227_v50 = vadd.f32 %v3151_v43, %v3013_v19  ;;  %2792 = vmatmul.bf16.gmra.mxu1 %v6383_v24  ;;  %v6387_v31 = vld [vmem:[#allocation10_spill] sm:$0xff] }
 0x27c   : > { %v2942_v0 = vpop.f32.mrf.mxu2  ;;  %v2823_v12 = vadd.f32 %v2750_v37, %v6387_v31 }
 0x27d   : > { %v3425_v5 = vadd.f32 %v3349_v13, %v3227_v50 }
 0x27e   : > { %v3015_v2 = vadd.f32 %v2942_v0, %v2823_v12 }
 0x27f   : > { %v3461_v45 = vadd.f32 %v6067_v40, %v3425_v5  ;;  %3193 = vmatmul.bf16.gmra.mxu3 %v6385_v48 }
 0x280   : > { %v2755_v56 = vpop.f32.mrf.mxu1 }
 0x281   : > { %v4385_v9 = vpack.c.bf16 %v3461_v45, %v3460_v63  ;;  %v3556_v51 = vadd.f32 %v3555_v29, %v3461_v45  ;;  %v3594_v27 = vmul.f32 %v3461_v45, %v3461_v45  ;;  %2984 = vmatmul.bf16.gmra.mxu2 %v6386_v52  ;;  %v6388_v45 = vld [vmem:[#allocation52_spill] sm:$0xff] }
 0x282   : > { %v3154_v59 = vpop.f32.mrf.mxu3  ;;  %v3352_v11 = vpop.f32.mrf.mxu0 }
 0x283   : > { %4473 = vst [vmem:[%s4640_s13 + $0x8] sm:$0xff] %v4385_v9   ;;  %v3625_v28 = vadd.f32 %v3624_v36, %v3594_v27  ;;  %v3228_v26 = vadd.f32 %v3154_v59, %v3014_v21  ;;  %v6389_v21 = vld [vmem:[#allocation13_spill] sm:$0xff] }
 0x284   : > { %v2945_v43 = vpop.f32.mrf.mxu2  ;;  %v2824_v9 = vadd.f32 %v2753_v4, %v6389_v21  ;;  %v6390_v27 = vld [vmem:[#allocation17_spill] sm:$0xff] }
 0x285   : > { %v3426_v19 = vadd.f32 %v3352_v11, %v3228_v26  ;;  %3391 = vmatmul.bf16.gmra.mxu0 %v6383_v24 }
 0x286   : > { %v3016_v59 = vadd.f32 %v2945_v43, %v2824_v9  ;;  %v6392_v9 = vld [vmem:[#allocation23_spill] sm:$0xff] }
 0x287   : > { %v3462_v13 = vadd.f32 %v6067_v40, %v3426_v19 }
 0x288   : > { %v2758_v50 = vpop.f32.mrf.mxu1 }
 0x289   : > { %v3557_v63 = vadd.f32 %v3556_v51, %v3462_v13  ;;  %v3595_v29 = vmul.f32 %v3462_v13, %v3462_v13 }
 0x28a   : > { %v3156_v5 = vpop.f32.mrf.mxu3  ;;  %v3354_v36 = vpop.f32.mrf.mxu0 }
 0x28b   : > { %v3626_v10 = vadd.f32 %v3625_v28, %v3595_v29  ;;  %v3229_v35 = vadd.f32 %v3156_v5, %v3015_v2  ;;  %2797 = vmatmul.bf16.gmra.mxu1 %v6388_v45  ;;  %v6391_v2 = vld [vmem:[#allocation16_spill] sm:$0xff] }
 0x28c   : > { %v2947_v37 = vpop.f32.mrf.mxu2  ;;  %v2825_v4 = vadd.f32 %v2755_v56, %v6391_v2 }
 0x28d   : > { %v3427_v48 = vadd.f32 %v3354_v36, %v3229_v35 }
 0x28e   : > { %v3017_v43 = vadd.f32 %v2947_v37, %v2825_v4 }
 0x28f   : > { %v3463_v24 = vadd.f32 %v6067_v40, %v3427_v48  ;;  %3198 = vmatmul.bf16.gmra.mxu3 %v6390_v27 }
 0x290   : > { %v2760_v0 = vpop.f32.mrf.mxu1 }
 0x291   : > { %v4390_v11 = vpack.c.bf16 %v3463_v24, %v3462_v13  ;;  %v3558_v51 = vadd.f32 %v3557_v63, %v3463_v24  ;;  %v3596_v26 = vmul.f32 %v3463_v24, %v3463_v24  ;;  %2989 = vmatmul.bf16.gmra.mxu2 %v5896_v49  ;;  %v2826_v24 = vadd.f32 %v2758_v50, %v6392_v9 }
 0x292   : > { %v3159_v52 = vpop.f32.mrf.mxu3  ;;  %v3357_v19 = vpop.f32.mrf.mxu0  ;;  %v2827_v50 = vadd.f32 %v2760_v0, %v5903_v53  ;;  %v4042_v0 = vrot.slane %v5924_v25, 9 }
 0x293   : > { %4474 = vst [vmem:[%s4640_s13 + $0x10] sm:$0xff] %v4390_v11   ;;  %v3627_v28 = vadd.f32 %v3626_v10, %v3596_v26  ;;  %v3230_v31 = vadd.f32 %v3159_v52, %v3016_v59 }
 0x294   : > { %v2950_v29 = vpop.f32.mrf.mxu2 }
 0x295   : > { %v3428_v12 = vadd.f32 %v3357_v19, %v3230_v31  ;;  %3396 = vmatmul.bf16.gmra.mxu0 %v6388_v45  ;;  %v3018_v27 = vadd.f32 %v2950_v29, %v2826_v24 }
 0x297   : > { %v3464_v5 = vadd.f32 %v6067_v40, %v3428_v12 }
 0x298   : > { %v2763_v36 = vpop.f32.mrf.mxu1 }
 0x299   : > { %v3559_v13 = vadd.f32 %v3558_v51, %v3464_v5  ;;  %v3597_v63 = vmul.f32 %v3464_v5, %v3464_v5  ;;  %v2828_v53 = vadd.f32 %v2763_v36, %v5921_v14 }
 0x29a   : > { %v3161_v35 = vpop.f32.mrf.mxu3  ;;  %v3359_v10 = vpop.f32.mrf.mxu0 }
 0x29b   : > { %v3628_v48 = vadd.f32 %v3627_v28, %v3597_v63  ;;  %v3231_v21 = vadd.f32 %v3161_v35, %v3017_v43  ;;  %2802 = vmatmul.bf16.gmra.mxu1 %v5906_v44 }
 0x29c   : > { %v2952_v56 = vpop.f32.mrf.mxu2 }
 0x29d   : > { %v3429_v49 = vadd.f32 %v3359_v10, %v3231_v21  ;;  %v3019_v2 = vadd.f32 %v2952_v56, %v2827_v50  ;;  %v2658_v21 = vrot.slane %v5946_v58, 5 }
 0x29f   : > { %v3465_v45 = vadd.f32 %v6067_v40, %v3429_v49  ;;  %3203 = vmatmul.bf16.gmra.mxu3 %v6354_v62 }
 0x2a0   : > { %v2765_v37 = vpop.f32.mrf.mxu1 }
 0x2a1   : > { %v4395_v59 = vpack.c.bf16 %v3465_v45, %v3464_v5  ;;  %v3560_v11 = vadd.f32 %v3559_v13, %v3465_v45  ;;  %v3598_v51 = vmul.f32 %v3465_v45, %v3465_v45  ;;  %2994 = vmatmul.bf16.gmra.mxu2 %v5934_v47  ;;  %v2655_v13 = vrot.slane %v5926_v33, 5 }
 0x2a2   : > { %v3164_v26 = vpop.f32.mrf.mxu3  ;;  %v3362_v28 = vpop.f32.mrf.mxu0 }
 0x2a3   : > { %4475 = vst [vmem:[%s4640_s13 + $0x18] sm:$0xff] %v4395_v59   ;;  %v3629_v52 = vadd.f32 %v3628_v48, %v3598_v51  ;;  %v3232_v19 = vadd.f32 %v3164_v26, %v3018_v27  ;;  %v2657_v10 = vrot.slane %v2655_v13, 4 }
 0x2a4   : > { %v2955_v12 = vpop.f32.mrf.mxu2 }
 0x2a5   : > { %v3430_v31 = vadd.f32 %v3362_v28, %v3232_v19  ;;  %3401 = vmatmul.bf16.gmra.mxu0 %v5906_v44  ;;  %v3020_v33 = vadd.f32 %v2955_v12, %v2828_v53  ;;  %v2659_v14 = vsel %vm5464_vm9, %v2657_v10, %v2658_v21 }
 0x2a7   : > { %v3466_v62 = vadd.f32 %v6067_v40, %v3430_v31 }
 0x2a8   : > { %v2768_v4 = vpop.f32.mrf.mxu1 }
 0x2a9   : > { %v3561_v29 = vadd.f32 %v3560_v11, %v3466_v62  ;;  %v3599_v5 = vmul.f32 %v3466_v62, %v3466_v62  ;;  %v2656_v11 = vsel %vm5464_vm9, %v4042_v0, %v2655_v13 }
 0x2aa   : > { %v3166_v43 = vpop.f32.mrf.mxu3  ;;  %v3364_v35 = vpop.f32.mrf.mxu0  ;;  %v2677_v26 = vunpack.c.l.b16 %v2656_v11 }
 0x2ab   : > { %v3630_v63 = vadd.f32 %v3629_v52, %v3599_v5  ;;  %v3233_v48 = vadd.f32 %v3166_v43, %v3019_v2  ;;  %2807 = vmatmul.bf16.gmra.mxu1 %v5949_v16  ;;  %v2678_v52 = vunpack.c.l.b16 %v2659_v14 }
 0x2ac   : > { %v2957_v44 = vpop.f32.mrf.mxu2 }
 0x2ad   : > { %v3431_v47 = vadd.f32 %v3364_v35, %v3233_v48  ;;  %v2679_v2 = vpack.c.b16 %v2678_v52, %v2677_v26 }
 0x2af   : > { %v3467_v49 = vadd.f32 %v6067_v40, %v3431_v47  ;;  %3208 = vmatmul.bf16.gmra.mxu3 %v5462_v6  ;;  %v2829_v6 = vadd.f32 %v2765_v37, %v5944_v32  ;;  %v2830_v32 = vadd.f32 %v2768_v4, %v5954_v61 }
 0x2b0   : > { %v2770_v9 = vpop.f32.mrf.mxu1 }
 0x2b1   : > { %v4400_v24 = vpack.c.bf16 %v3467_v49, %v3466_v62  ;;  %v3562_v56 = vadd.f32 %v3561_v29, %v3467_v49  ;;  %v3600_v45 = vmul.f32 %v3467_v49, %v3467_v49  ;;  %2999 = vmatmul.bf16.gmra.mxu2 %v5959_v15  ;;  %v3021_v31 = vadd.f32 %v2957_v44, %v2829_v6  ;;  %v6394_v49 = vld [vmem:[#allocation33_spill] sm:$0xff] }
 0x2b2   : > { %v3169_v27 = vpop.f32.mrf.mxu3  ;;  %v3367_v36 = vpop.f32.mrf.mxu0  ;;  %v2831_v61 = vadd.f32 %v2770_v9, %v5967_v23  ;;  %v6395_v23 = vld [vmem:[#allocation11_spill] sm:$0xff] }
 0x2b3   : > { %4476 = vst [vmem:[%s4640_s13 + $0x20] sm:$0xff] %v4400_v24   ;;  %v3631_v25 = vadd.f32 %v3630_v63, %v3600_v45  ;;  %v3234_v58 = vadd.f32 %v3169_v27, %v3020_v33 }
 0x2b4   : > { %v2960_v28 = vpop.f32.mrf.mxu2 }
 0x2b5   : > { %v3432_v51 = vadd.f32 %v3367_v36, %v3234_v58  ;;  %3406 = vmatmul.bf16.gmra.mxu0 %v5949_v16  ;;  %v3022_v63 = vadd.f32 %v2960_v28, %v2830_v32 }
 0x2b7   : > { %v3468_v19 = vadd.f32 %v6067_v40, %v3432_v51 }
 0x2b8   : > { %v2773_v50 = vpop.f32.mrf.mxu1 }
 0x2b9   : > { %v3563_v12 = vadd.f32 %v3562_v56, %v3468_v19  ;;  %v3601_v62 = vmul.f32 %v3468_v19, %v3468_v19  ;;  %v2832_v58 = vadd.f32 %v2773_v50, %v5974_v7 }
 0x2ba   : > { %v3171_v29 = vpop.f32.mrf.mxu3  ;;  %v3369_v43 = vpop.f32.mrf.mxu0 }
 0x2bb   : > { %v3632_v5 = vadd.f32 %v3631_v25, %v3601_v62  ;;  %v3235_v15 = vadd.f32 %v3171_v29, %v3021_v31  ;;  %2812 = vmatmul.bf16.gmra.mxu1 %v2679_v2 }
 0x2bc   : > { %v2962_v37 = vpop.f32.mrf.mxu2 }
 0x2bd   : > { %v3433_v13 = vadd.f32 %v3369_v43, %v3235_v15  ;;  %v6396_v43 = vld [vmem:[#allocation35_spill] sm:$0xff] }
 0x2bf   : > { %v3469_v16 = vadd.f32 %v6067_v40, %v3433_v13  ;;  %3213 = vmatmul.bf16.gmra.mxu3 %v5970_v46  ;;  %v3023_v46 = vadd.f32 %v2962_v37, %v2831_v61 }
 0x2c0   : > { %v2775_v35 = vpop.f32.mrf.mxu1 }
 0x2c1   : > { %v4405_v48 = vpack.c.bf16 %v3469_v16, %v3468_v19  ;;  %v3564_v47 = vadd.f32 %v3563_v12, %v3469_v16  ;;  %v3602_v53 = vmul.f32 %v3469_v16, %v3469_v16  ;;  %3004 = vmatmul.bf16.gmra.mxu2 %v6394_v49 }
 0x2c2   : > { %v3174_v44 = vpop.f32.mrf.mxu3  ;;  %v3372_v10 = vpop.f32.mrf.mxu0 }
 0x2c3   : > { %4477 = vst [vmem:[%s4640_s13 + $0x28] sm:$0xff] %v4405_v48   ;;  %v3633_v0 = vadd.f32 %v3632_v5, %v3602_v53  ;;  %v3236_v21 = vadd.f32 %v3174_v44, %v3022_v63  ;;  %v2833_v5 = vadd.f32 %v2775_v35, %v5979_v60 }
 0x2c4   : > { %v2965_v4 = vpop.f32.mrf.mxu2 }
 0x2c5   : > { %v3434_v33 = vadd.f32 %v3372_v10, %v3236_v21  ;;  %3411 = vmatmul.bf16.gmra.mxu0 %v2679_v2  ;;  %v3024_v9 = vadd.f32 %v2965_v4, %v2832_v58 }
 0x2c7   : > { %v3470_v24 = vadd.f32 %v6067_v40, %v3434_v33 }
 0x2c8   : > { %v2778_v56 = vpop.f32.mrf.mxu1 }
 0x2c9   : > { %v3565_v45 = vadd.f32 %v3564_v47, %v3470_v24  ;;  %v3603_v27 = vmul.f32 %v3470_v24, %v3470_v24  ;;  %v2834_v44 = vadd.f32 %v2778_v56, %v5984_v22 }
 0x2ca   : > { %v3176_v59 = vpop.f32.mrf.mxu3  ;;  %v3374_v14 = vpop.f32.mrf.mxu0 }
 0x2cb   : > { %v3634_v11 = vadd.f32 %v3633_v0, %v3603_v27  ;;  %v3237_v25 = vadd.f32 %v3176_v59, %v3023_v46 }
 0x2cc   : > { %v2967_v51 = vpop.f32.mrf.mxu2 }
 0x2cd   : > { %v3435_v36 = vadd.f32 %v3374_v14, %v3237_v25  ;;  %v3025_v15 = vadd.f32 %v2967_v51, %v2833_v5 }
 0x2cf   : > { %v3471_v6 = vadd.f32 %v6067_v40, %v3435_v36  ;;  %3218 = vmatmul.bf16.gmra.mxu3 %v6395_v23 }
 0x2d0   : > { %v2780_v26 = vpop.f32.mrf.mxu1 }
 0x2d1   : > { %v4410_v52 = vpack.c.bf16 %v3471_v6, %v3470_v24  ;;  %v3566_v28 = vadd.f32 %v3565_v45, %v3471_v6  ;;  %v3604_v19 = vmul.f32 %v3471_v6, %v3471_v6  ;;  %v2835_v27 = vadd.f32 %v2780_v26, %v5989_v18 }
 0x2d2   : > { %v3179_v31 = vpop.f32.mrf.mxu3  ;;  %v3377_v62 = vpop.f32.mrf.mxu0 }
 0x2d3   : > { %4478 = vst [vmem:[%s4640_s13 + $0x30] sm:$0xff] %v4410_v52   ;;  %v3635_v12 = vadd.f32 %v3634_v11, %v3604_v19  ;;  %v3238_v2 = vadd.f32 %v3179_v31, %v3024_v9 }
 0x2d4   : > { %v2970_v7 = vpop.f32.mrf.mxu2 }
 0x2d5   : > { %v3436_v29 = vadd.f32 %v3377_v62, %v3238_v2  ;;  %3416 = vmatmul.bf16.gmra.mxu0 %v6396_v43  ;;  %v3026_v35 = vadd.f32 %v2970_v7, %v2834_v44 }
 0x2d7   : > { %v3472_v50 = vadd.f32 %v6067_v40, %v3436_v29 }
 0x2d8   : > { %v2783_v13 = vpop.f32.mrf.mxu1 }
 0x2d9   : > { %v3567_v32 = vadd.f32 %v3566_v28, %v3472_v50  ;;  %v3605_v37 = vmul.f32 %v3472_v50, %v3472_v50  ;;  %v2836_v9 = vadd.f32 %v2783_v13, %v5994_v17 }
 0x2da   : > { %v3181_v16 = vpop.f32.mrf.mxu3  ;;  %v3379_v48 = vpop.f32.mrf.mxu0 }
 0x2db   : > { %v3636_v63 = vadd.f32 %v3635_v12, %v3605_v37  ;;  %v3239_v47 = vadd.f32 %v3181_v16, %v3025_v15 }
 0x2dc   : > { %v2972_v0 = vpop.f32.mrf.mxu2 }
 0x2dd   : > { %v3437_v53 = vadd.f32 %v3379_v48, %v3239_v47  ;;  %v3027_v22 = vadd.f32 %v2972_v0, %v2835_v27 }
 0x2df   : > { %v3473_v60 = vadd.f32 %v6067_v40, %v3437_v53 }
 0x2e0   : > { %v2785_v10 = vpop.f32.mrf.mxu1 }
 0x2e1   : > { %v4415_v21 = vpack.c.bf16 %v3473_v60, %v3472_v50  ;;  %v3568_v49 = vadd.f32 %v3567_v32, %v3473_v60  ;;  %v3606_v33 = vmul.f32 %v3473_v60, %v3473_v60  ;;  %v2837_v7 = vadd.f32 %v2785_v10, %v5999_v57 }
 0x2e2   : > { %v3184_v61 = vpop.f32.mrf.mxu3  ;;  %v3382_v24 = vpop.f32.mrf.mxu0 }
 0x2e3   : > { %4479 = vst [vmem:[%s4640_s13 + $0x38] sm:$0xff] %v4415_v21   ;;  %v3637_v4 = vadd.f32 %v3636_v63, %v3606_v33  ;;  %v3240_v46 = vadd.f32 %v3184_v61, %v3026_v35 }
 0x2e4   : > { %v2975_v59 = vpop.f32.mrf.mxu2 }
 0x2e5   : > { %v3438_v45 = vadd.f32 %v3382_v24, %v3240_v46  ;;  %v3028_v19 = vadd.f32 %v2975_v59, %v2836_v9 }
 0x2e7   : > { %v3474_v11 = vadd.f32 %v6067_v40, %v3438_v45 }
 0x2e8   : > { %v2788_v56 = vpop.f32.mrf.mxu1 }
 0x2e9   : > { %v3569_v14 = vadd.f32 %v3568_v49, %v3474_v11  ;;  %v3607_v25 = vmul.f32 %v3474_v11, %v3474_v11  ;;  %v2838_v44 = vadd.f32 %v2788_v56, %v6004_v38 }
 0x2ea   : > { %v3186_v36 = vpop.f32.mrf.mxu3  ;;  %v3384_v51 = vpop.f32.mrf.mxu0 }
 0x2eb   : > { %v3638_v58 = vadd.f32 %v3637_v4, %v3607_v25  ;;  %v3241_v6 = vadd.f32 %v3186_v36, %v3027_v22 }
 0x2ec   : > { %v2977_v52 = vpop.f32.mrf.mxu2 }
 0x2ed   : > { %v3439_v23 = vadd.f32 %v3384_v51, %v3241_v6  ;;  %v3029_v17 = vadd.f32 %v2977_v52, %v2837_v7 }
 0x2ef   : > { %v3475_v28 = vadd.f32 %v6067_v40, %v3439_v23 }
 0x2f0   : > { %v2790_v18 = vpop.f32.mrf.mxu1 }
 0x2f1   : > { %v4420_v26 = vpack.c.bf16 %v3475_v28, %v3474_v11  ;;  %v3570_v31 = vadd.f32 %v3569_v14, %v3475_v28  ;;  %v3608_v12 = vmul.f32 %v3475_v28, %v3475_v28  ;;  %v2839_v45 = vadd.f32 %v2790_v18, %v6009_v42 }
 0x2f2   : > { %v3189_v62 = vpop.f32.mrf.mxu3  ;;  %v3387_v29 = vpop.f32.mrf.mxu0 }
 0x2f3   : > { %4480 = vst [vmem:[%s4640_s13 + $0x40] sm:$0xff] %v4420_v26   ;;  %v3639_v2 = vadd.f32 %v3638_v58, %v3608_v12  ;;  %v3242_v5 = vadd.f32 %v3189_v62, %v3028_v19 }
 0x2f4   : > { %v2980_v50 = vpop.f32.mrf.mxu2 }
 0x2f5   : > { %v3440_v43 = vadd.f32 %v3387_v29, %v3242_v5  ;;  %v3030_v35 = vadd.f32 %v2980_v50, %v2838_v44 }
 0x2f7   : > { %v3476_v15 = vadd.f32 %v6067_v40, %v3440_v43 }
 0x2f8   : > { %v2793_v13 = vpop.f32.mrf.mxu1 }
 0x2f9   : > { %v3571_v32 = vadd.f32 %v3570_v31, %v3476_v15  ;;  %v3609_v37 = vmul.f32 %v3476_v15, %v3476_v15  ;;  %v2840_v6 = vadd.f32 %v2793_v13, %v6014_v20 }
 0x2fa   : > { %v3191_v16 = vpop.f32.mrf.mxu3  ;;  %v3389_v48 = vpop.f32.mrf.mxu0 }
 0x2fb   : > { %v3640_v63 = vadd.f32 %v3639_v2, %v3609_v37  ;;  %v3243_v47 = vadd.f32 %v3191_v16, %v3029_v17 }
 0x2fc   : > { %v2982_v0 = vpop.f32.mrf.mxu2 }
 0x2fd   : > { %v3441_v53 = vadd.f32 %v3389_v48, %v3243_v47  ;;  %v3031_v38 = vadd.f32 %v2982_v0, %v2839_v45 }
 0x2ff   : > { %v3477_v60 = vadd.f32 %v6067_v40, %v3441_v53 }
 0x300   : > { %v2795_v33 = vpop.f32.mrf.mxu1 }
 0x301   : > { %v4425_v57 = vpack.c.bf16 %v3477_v60, %v3476_v15  ;;  %v3572_v10 = vadd.f32 %v3571_v32, %v3477_v60  ;;  %v3610_v21 = vmul.f32 %v3477_v60, %v3477_v60  ;;  %v2841_v2 = vadd.f32 %v2795_v33, %v6019_v3 }
 0x302   : > { %v3194_v49 = vpop.f32.mrf.mxu3  ;;  %v3392_v4 = vpop.f32.mrf.mxu0 }
 0x303   : > { %4481 = vst [vmem:[%s4640_s13 + $0x48] sm:$0xff] %v4425_v57   ;;  %v3641_v61 = vadd.f32 %v3640_v63, %v3610_v21  ;;  %v3244_v24 = vadd.f32 %v3194_v49, %v3030_v35 }
 0x304   : > { %v2985_v27 = vpop.f32.mrf.mxu2 }
 0x305   : > { %v3442_v46 = vadd.f32 %v3392_v4, %v3244_v24  ;;  %v3032_v52 = vadd.f32 %v2985_v27, %v2840_v6 }
 0x307   : > { %v3478_v59 = vadd.f32 %v6067_v40, %v3442_v46 }
 0x308   : > { %v2798_v58 = vpop.f32.mrf.mxu1 }
 0x309   : > { %v3573_v11 = vadd.f32 %v3572_v10, %v3478_v59  ;;  %v3611_v22 = vmul.f32 %v3478_v59, %v3478_v59  ;;  %v2842_v16 = vadd.f32 %v2798_v58, %v6024_v8 }
 0x30a   : > { %v3196_v56 = vpop.f32.mrf.mxu3  ;;  %v3394_v25 = vpop.f32.mrf.mxu0 }
 0x30b   : > { %v3642_v14 = vadd.f32 %v3641_v61, %v3611_v22  ;;  %v3245_v36 = vadd.f32 %v3196_v56, %v3031_v38 }
 0x30c   : > { %v2987_v23 = vpop.f32.mrf.mxu2 }
 0x30d   : > { %v3443_v51 = vadd.f32 %v3394_v25, %v3245_v36  ;;  %v3033_v20 = vadd.f32 %v2987_v23, %v2841_v2 }
 0x30f   : > { %v3479_v9 = vadd.f32 %v6067_v40, %v3443_v51 }
 0x310   : > { %v2800_v5 = vpop.f32.mrf.mxu1 }
 0x311   : > { %v4430_v42 = vpack.c.bf16 %v3479_v9, %v3478_v59  ;;  %v3574_v28 = vadd.f32 %v3573_v11, %v3479_v9  ;;  %v3612_v19 = vmul.f32 %v3479_v9, %v3479_v9  ;;  %v2843_v49 = vadd.f32 %v2800_v5, %v6029_v30 }
 0x312   : > { %v3199_v18 = vpop.f32.mrf.mxu3  ;;  %v3397_v31 = vpop.f32.mrf.mxu0 }
 0x313   : > { %4482 = vst [vmem:[%s4640_s13 + $0x50] sm:$0xff] %v4430_v42   ;;  %v3643_v26 = vadd.f32 %v3642_v14, %v3612_v19  ;;  %v3246_v12 = vadd.f32 %v3199_v18, %v3032_v52 }
 0x314   : > { %v2990_v29 = vpop.f32.mrf.mxu2 }
 0x315   : > { %v3444_v62 = vadd.f32 %v3397_v31, %v3246_v12  ;;  %v3034_v47 = vadd.f32 %v2990_v29, %v2842_v16 }
 0x317   : > { %v3480_v43 = vadd.f32 %v6067_v40, %v3444_v62 }
 0x318   : > { %v2803_v3 = vpop.f32.mrf.mxu1 }
 0x319   : > { %v3575_v7 = vadd.f32 %v3574_v28, %v3480_v43  ;;  %v3613_v50 = vmul.f32 %v3480_v43, %v3480_v43  ;;  %v2844_v22 = vadd.f32 %v2803_v3, %v6034_v41 }
 0x31a   : > { %v3201_v15 = vpop.f32.mrf.mxu3  ;;  %v3399_v13 = vpop.f32.mrf.mxu0 }
 0x31b   : > { %v3644_v17 = vadd.f32 %v3643_v26, %v3613_v50  ;;  %v3247_v32 = vadd.f32 %v3201_v15, %v3033_v20 }
 0x31c   : > { %v2992_v63 = vpop.f32.mrf.mxu2 }
 0x31d   : > { %v3445_v37 = vadd.f32 %v3399_v13, %v3247_v32  ;;  %v3035_v8 = vadd.f32 %v2992_v63, %v2843_v49 }
 0x31f   : > { %v3481_v48 = vadd.f32 %v6067_v40, %v3445_v37 }
 0x320   : > { %v2805_v45 = vpop.f32.mrf.mxu1 }
 0x321   : > { %v4435_v53 = vpack.c.bf16 %v3481_v48, %v3480_v43  ;;  %v3576_v44 = vadd.f32 %v3575_v7, %v3481_v48  ;;  %v3614_v0 = vmul.f32 %v3481_v48, %v3481_v48  ;;  %v2845_v28 = vadd.f32 %v2805_v45, %v6039_v39 }
 0x322   : > { %v3204_v60 = vpop.f32.mrf.mxu3  ;;  %v3402_v57 = vpop.f32.mrf.mxu0 }
 0x323   : > { %4483 = vst [vmem:[%s4640_s13 + $0x58] sm:$0xff] %v4435_v53   ;;  %v3645_v35 = vadd.f32 %v3644_v17, %v3614_v0  ;;  %v3248_v10 = vadd.f32 %v3204_v60, %v3034_v47 }
 0x324   : > { %v2995_v33 = vpop.f32.mrf.mxu2 }
 0x325   : > { %v3446_v21 = vadd.f32 %v3402_v57, %v3248_v10  ;;  %v3036_v25 = vadd.f32 %v2995_v33, %v2844_v22 }
 0x327   : > { %v3482_v61 = vadd.f32 %v6067_v40, %v3446_v21 }
 0x328   : > { %v2808_v52 = vpop.f32.mrf.mxu1 }
 0x329   : > { %v3577_v4 = vadd.f32 %v3576_v44, %v3482_v61  ;;  %v3615_v24 = vmul.f32 %v3482_v61, %v3482_v61  ;;  %v2846_v43 = vadd.f32 %v2808_v52, %v6044_v34 }
 0x32a   : > { %v3206_v46 = vpop.f32.mrf.mxu3  ;;  %v3404_v59 = vpop.f32.mrf.mxu0 }
 0x32b   : > { %v3646_v27 = vadd.f32 %v3645_v35, %v3615_v24  ;;  %v3249_v38 = vadd.f32 %v3206_v46, %v3035_v8 }
 0x32c   : > { %v2997_v56 = vpop.f32.mrf.mxu2 }
 0x32d   : > { %v3447_v11 = vadd.f32 %v3404_v59, %v3249_v38  ;;  %v3037_v41 = vadd.f32 %v2997_v56, %v2845_v28 }
 0x32f   : > { %v3483_v14 = vadd.f32 %v6067_v40, %v3447_v11 }
 0x330   : > { %v2810_v20 = vpop.f32.mrf.mxu1 }
 0x331   : > { %v4440_v30 = vpack.c.bf16 %v3483_v14, %v3482_v61  ;;  %v3578_v36 = vadd.f32 %v3577_v4, %v3483_v14  ;;  %v3616_v58 = vmul.f32 %v3483_v14, %v3483_v14  ;;  %v2847_v47 = vadd.f32 %v2810_v20, %v6049_v1 }
 0x332   : > { %v3209_v51 = vpop.f32.mrf.mxu3  ;;  %v3407_v23 = vpop.f32.mrf.mxu0 }
 0x333   : > { %4484 = vst [vmem:[%s4640_s13 + $0x60] sm:$0xff] %v4440_v30   ;;  %v3647_v6 = vadd.f32 %v3646_v27, %v3616_v58  ;;  %v3250_v9 = vadd.f32 %v3209_v51, %v3036_v25 }
 0x334   : > { %v3000_v19 = vpop.f32.mrf.mxu2 }
 0x335   : > { %v3448_v42 = vadd.f32 %v3407_v23, %v3250_v9  ;;  %v3038_v50 = vadd.f32 %v3000_v19, %v2846_v43 }
 0x337   : > { %v3484_v18 = vadd.f32 %v6067_v40, %v3448_v42 }
 0x338   : > { %v2813_v34 = vpop.f32.mrf.mxu1 }
 0x339   : > { %v3579_v26 = vadd.f32 %v3578_v36, %v3484_v18  ;;  %v3617_v31 = vmul.f32 %v3484_v18, %v3484_v18  ;;  %v2848_v33 = vadd.f32 %v2813_v34, %v6053_v54 }
 0x33a   : > { %v3211_v12 = vpop.f32.mrf.mxu3  ;;  %v3409_v2 = vpop.f32.mrf.mxu0 }
 0x33b   : > { %v3648_v62 = vadd.f32 %v3647_v6, %v3617_v31  ;;  %v3251_v29 = vadd.f32 %v3211_v12, %v3037_v41 }
 0x33c   : > { %v3002_v15 = vpop.f32.mrf.mxu2 }
 0x33d   : > { %v3449_v5 = vadd.f32 %v3409_v2, %v3251_v29  ;;  %v3039_v53 = vadd.f32 %v3002_v15, %v2847_v47 }
 0x33f   : > { %v3485_v7 = vadd.f32 %v6067_v40, %v3449_v5 }
 0x340   : > { %v2815_v45 = vpop.f32.mrf.mxu1 }
 0x341   : > { %v4445_v39 = vpack.c.bf16 %v3485_v7, %v3484_v18  ;;  %v3580_v17 = vadd.f32 %v3579_v26, %v3485_v7  ;;  %v3618_v13 = vmul.f32 %v3485_v7, %v3485_v7  ;;  %v2849_v56 = vadd.f32 %v2815_v45, %v6057_v55 }
 0x342   : > { %v3214_v32 = vpop.f32.mrf.mxu3  ;;  %v3412_v16 = vpop.f32.mrf.mxu0 }
 0x343   : > { %4485 = vst [vmem:[%s4640_s13 + $0x68] sm:$0xff] %v4445_v39   ;;  %v3649_v37 = vadd.f32 %v3648_v62, %v3618_v13  ;;  %v3252_v63 = vadd.f32 %v3214_v32, %v3038_v50 }
 0x344   : > { %v3005_v35 = vpop.f32.mrf.mxu2 }
 0x345   : > { %v3450_v48 = vadd.f32 %v3412_v16, %v3252_v63  ;;  %v3040_v8 = vadd.f32 %v3005_v35, %v2848_v33 }
 0x347   : > { %v3486_v3 = vadd.f32 %v6067_v40, %v3450_v48 }
 0x349   : > { %v3581_v44 = vadd.f32 %v3580_v17, %v3486_v3  ;;  %v3619_v0 = vmul.f32 %v3486_v3, %v3486_v3 }
 0x34a   : > { %v3216_v60 = vpop.f32.mrf.mxu3  ;;  %v3414_v10 = vpop.f32.mrf.mxu0 }
 0x34b   : > { %v3650_v57 = vadd.f32 %v3649_v37, %v3619_v0  ;;  %v3253_v21 = vadd.f32 %v3216_v60, %v3039_v53 }
 0x34c   : > { %v3007_v11 = vpop.f32.mrf.mxu2 }
 0x34d   : > { %v3451_v49 = vadd.f32 %v3414_v10, %v3253_v21  ;;  %v3041_v54 = vadd.f32 %v3007_v11, %v2849_v56 }
 0x34f   : > { %v3487_v61 = vadd.f32 %v6067_v40, %v3451_v49 }
 0x351   : > { %v4450_v4 = vpack.c.bf16 %v3487_v61, %v3486_v3  ;;  %v3582_v1 = vadd.f32 %v3581_v44, %v3487_v61  ;;  %v3620_v24 = vmul.f32 %v3487_v61, %v3487_v61 }
 0x352   : > { %v3219_v46 = vpop.f32.mrf.mxu3  ;;  %v3417_v59 = vpop.f32.mrf.mxu0 }
 0x353   : > { %4486 = vst [vmem:[%s4640_s13 + $0x70] sm:$0xff] %v4450_v4   ;;  %v3651_v27 = vadd.f32 %v3650_v57, %v3620_v24  ;;  %v3254_v38 = vadd.f32 %v3219_v46, %v3040_v8 }
 0x355   : > { %v3452_v22 = vadd.f32 %v3417_v59, %v3254_v38 }
 0x357   : > { %v3488_v14 = vadd.f32 %v6067_v40, %v3452_v22 }
 0x359   : > { %v3583_v25 = vadd.f32 %v3582_v1, %v3488_v14  ;;  %v3621_v30 = vmul.f32 %v3488_v14, %v3488_v14 }
 0x35a   : > { %v3221_v36 = vpop.f32.mrf.mxu3  ;;  %v3419_v6 = vpop.f32.mrf.mxu0 }
 0x35b   : > { %v3652_v58 = vadd.f32 %v3651_v27, %v3621_v30  ;;  %v3255_v51 = vadd.f32 %v3221_v36, %v3041_v54 }
 0x35d   : > { %v3453_v23 = vadd.f32 %v3419_v6, %v3255_v51 }
 0x35f   : > { %v3489_v9 = vadd.f32 %v6067_v40, %v3453_v23 }
 0x361   : > { %v4455_v52 = vpack.c.bf16 %v3489_v9, %v3488_v14  ;;  %v3584_v42 = vadd.f32 %v3583_v25, %v3489_v9  ;;  %v3622_v28 = vmul.f32 %v3489_v9, %v3489_v9 }
 0x363   : > { %4487 = vst [vmem:[%s4640_s13 + $0x78] sm:$0xff] %v4455_v52   ;;  %v3585_v19 = vrot.slane %v3584_v42, 4  ;;  %v3653_v18 = vadd.f32 %v3652_v58, %v3622_v28 }
 0x365   : > { %v3586_v55 = vadd.f32 %v3585_v19, %v3584_v42  ;;  %v3654_v41 = vrot.slane %v3653_v18, 4 }
 0x367   : > { %v3587_v26 = vrot.slane %v3586_v55, 2  ;;  %v3655_v31 = vadd.f32 %v3654_v41, %v3653_v18 }
 0x369   : > { %v3588_v12 = vadd.f32 %v3587_v26, %v3586_v55  ;;  %v3656_v62 = vrot.slane %v3655_v31, 2 }
 0x36b   : > { %v3589_v2 = vrot.slane %v3588_v12, 1  ;;  %v3657_v29 = vadd.f32 %v3656_v62, %v3655_v31 }
 0x36d   : > { %v3658_v5 = vrot.slane %v3657_v29, 1  ;;  %v3590_v43 = vadd.f32 %v3589_v2, %v3588_v12 }
 0x36f   : > { %v3659_v20 = vadd.f32 %v3658_v5, %v3657_v29 }
 0x371   : > { %v3661_v40 = vsel %vm3660_vm10, %v3590_v43, %v3659_v20 }
 0x372   : > { %3662 = vst [vmem:[%s4645_s16] sm:$0x3] %v3661_v40 }
 0x373 PF: > { %s18_s26 = sadd.s32 1, %s4569_s26   ;;  %s6397_s24 = smov %s4565_s25 }
 0x374   : > { %p15_p5 = scmp.ge.s32.totalorder %s18_s26, 4   ;;  %s6398_s25 = smov %s6400_s27 }
 0x376   :  { %17 = sbr.rel (!%p15_p5) target bundleno = 2 (0x2), region = 111 }
 0x37b   :  { %3715 = vsyncmov [#allocation3] }
 0x37e   :  { %s3716_s13 = vpop.sfrf %3715 }
 0x37f   :  { %p4238_p6 = scmp.ne.s32.totalorder %s3716_s13, 0 }
 0x381   :  { %3720 = shalt.err (%p4238_p6)  }

</bundles_post_ra>
